<compile_context>
chip_gen: v6e
topology: v6e:2x2x1
jax: 0.10.0
libtpu: 0.0.40
codegen_flags: <defaults>
</compile_context>

<pallas_src>
import functools

import jax
import jax.numpy as jnp
from jax import lax
from jax.experimental import pallas as pl
from jax.experimental.pallas import tpu as pltpu

EXPANSION = 4
BN_EPS = 1e-5
LANE = 128


def _rup(x, m):
    return ((x + m - 1) // m) * m


# ------------------------------ Pallas kernel ------------------------------ #

def _bottleneck_kernel(x_ref, w1_ref, b1_ref, w2_ref, b2_ref, w3_ref, b3_ref,
                       o_ref, h1_ref, *, stride, th, h, w, wo, has_proj):
    """One grid step = TH output rows x full width of one batch element.

    x_ref  : (1, H+2, Wp, Cin_p)   f32, spatially (+channel) zero-padded input
    w1_ref : (Cin_p, Pp)           bf16  conv1 weight * bn1 scale
    w2_ref : (9*Pp, Pp)            bf16  conv2 taps (ky*3+kx) * bn2 scale
    w3_ref : (Pp [+Cin_p], Cout_p) bf16  conv3 [; proj shortcut], bn folded
    b*_ref : (1, C)                f32   folded BN biases
    o_ref  : (1, TH*Wo, Cout_p)
    h1_ref : (TH_in, Wp, Pp)       f32 VMEM scratch holding the conv1 output
    """
    s = stride
    th_in = (th - 1) * s + 3          # halo'd rows needed by the 3x3 conv
    hi = (th - 1) * s + 1             # input-row span of this tile's outputs
    wi = (wo - 1) * s + 1             # input-col span of this tile's outputs
    wp = x_ref.shape[2]               # padded width (multiple of 8)
    cin = x_ref.shape[3]
    pp = w1_ref.shape[1]
    cout = o_ref.shape[2]

    r0 = pl.multiple_of(pl.program_id(1) * (th * s), th * s)
    xt = x_ref[0, pl.ds(r0, th_in), :, :]                    # (th_in, wp, cin)

    # ---- conv1 (1x1) + bn1 + relu over the halo'd tile (bf16 MXU, f32 acc) --
    h1 = jnp.dot(xt.reshape(th_in * wp, cin).astype(jnp.bfloat16), w1_ref[...],
                 preferred_element_type=jnp.float32)
    h1 = jnp.maximum(h1 + b1_ref[...], 0.0).reshape(th_in, wp, pp)

    # Zero the left/right spatial-padding columns (bias + relu would otherwise
    # leak relu(b1) into the 3x3 halo).  Tiny 2D mask broadcast over rows.
    cols = lax.broadcasted_iota(jnp.int32, (wp, pp), 0)
    h1 = jnp.where((cols >= 1) & (cols <= w), h1, 0.0)
    h1_ref[...] = h1

    # Zero the top/bottom padding rows; only the boundary tiles contain them.
    @pl.when(r0 == 0)
    def _():
        h1_ref[0, :, :] = jnp.zeros((wp, pp), jnp.float32)

    @pl.when(r0 + th_in - 1 == h + 1)
    def _():
        h1_ref[th_in - 1, :, :] = jnp.zeros((wp, pp), jnp.float32)

    # ---- conv2 (3x3, stride, pad=1): 9 statically-offset taps read back from
    #      VMEM, lane-concatenated, contracted in ONE K = 9*Pp matmul ---------
    taps = []
    for ky in range(3):
        for kx in range(3):
            t = h1_ref[pl.ds(ky, hi), pl.ds(kx, wi), :]
            if s > 1:
                # TODO(synk): stride>1 taps still use an in-register strided
                # slice; a strided VMEM load would be cheaper.
                t = t[::s, ::s, :]
            taps.append(t.reshape(th * wo, pp).astype(jnp.bfloat16))
    patch = jnp.concatenate(taps, axis=-1)                   # (th*wo, 9*pp)
    h2 = jnp.dot(patch, w2_ref[...], preferred_element_type=jnp.float32)
    h2 = jnp.maximum(h2 + b2_ref[...], 0.0)                  # (th*wo, pp)

    # ---- shortcut slab, read straight from x_ref ----------------------------
    if s == 1:
        x_sub = x_ref[0, pl.ds(r0 + 1, th), pl.ds(1, wo), :]
    else:
        x_sub = xt[1:1 + hi:s, 1:1 + wi:s, :]
    x_sub = x_sub.reshape(th * wo, cin)

    # ---- conv3 (1x1) + bn3 (+ fused projection shortcut) + relu -------------
    if has_proj:
        lhs = jnp.concatenate(
            [h2.astype(jnp.bfloat16), x_sub.astype(jnp.bfloat16)], axis=-1)
        out = jnp.dot(lhs, w3_ref[...], preferred_element_type=jnp.float32)
        out = out + b3_ref[...]
    else:
        out = jnp.dot(h2.astype(jnp.bfloat16), w3_ref[...],
                      preferred_element_type=jnp.float32)
        out = out + b3_ref[...] + x_sub          # identity: Cin_p == Cout_p

    o_ref[...] = (jnp.maximum(out, 0.0)
                  .reshape(1, th * wo, cout).astype(o_ref.dtype))


# ------------------------------- weight prep -------------------------------- #

def _fold_bn(bn):
    gamma, beta, mean, var = bn
    scale = gamma / jnp.sqrt(var + BN_EPS)
    return scale, beta - mean * scale


def _pad2d(a, r, c):
    return jnp.pad(a, ((0, r - a.shape[0]), (0, c - a.shape[1])))


def prepare_bottleneck(params, stride=1):
    """Fold BN, lane-pad, cast MXU weights to bf16, stack conv3+proj.

    Call once per parameter set (not per forward call).
    """
    planes, in_planes = params["conv1_w"].shape[:2]
    out_planes = params["conv3_w"].shape[0]
    cin_p = _rup(in_planes, LANE)
    pp = _rup(planes, LANE)
    cout_p = _rup(out_planes, LANE)

    s1, b1 = _fold_bn(params["bn1"])
    w1 = _pad2d(params["conv1_w"][:, :, 0, 0].T * s1[None, :], cin_p, pp)
    b1 = _pad2d(b1.reshape(1, -1), 1, pp)

    s2, b2 = _fold_bn(params["bn2"])
    w2 = jnp.transpose(params["conv2_w"], (2, 3, 1, 0)).reshape(9, planes, planes)
    w2 = w2 * s2[None, None, :]
    w2 = jnp.pad(w2, ((0, 0), (0, pp - planes), (0, pp - planes)))
    w2 = w2.reshape(9 * pp, pp)
    b2 = _pad2d(b2.reshape(1, -1), 1, pp)

    s3, b3 = _fold_bn(params["bn3"])
    w3 = _pad2d(params["conv3_w"][:, :, 0, 0].T * s3[None, :], pp, cout_p)
    b3 = _pad2d(b3.reshape(1, -1), 1, cout_p)

    has_proj = "sc_conv_w" in params
    if has_proj:
        ssc, bsc = _fold_bn(params["bn_sc"])
        wsc = _pad2d(params["sc_conv_w"][:, :, 0, 0].T * ssc[None, :],
                     cin_p, cout_p)
        bsc = _pad2d(bsc.reshape(1, -1), 1, cout_p)
        w3 = jnp.concatenate([w3, wsc], axis=0)      # (pp + cin_p, cout_p)
        b3 = b3 + bsc

    return {
        "w1": w1.astype(jnp.bfloat16), "b1": b1,
        "w2": w2.astype(jnp.bfloat16), "b2": b2,
        "w3": w3.astype(jnp.bfloat16), "b3": b3,
        "stride": stride, "has_proj": has_proj,
        "in_planes": in_planes, "out_planes": out_planes,
        "cin_p": cin_p, "pp": pp, "cout_p": cout_p,
    }


# --------------------------------- forward ---------------------------------- #

def _pick_row_tile(ho, wo, s, wp, pp, target_m=512, scratch_budget=8 << 20):
    """Largest th dividing ho with th*wo ~ target_m, sublane-aligned output."""
    cap = max(1, min(ho, max(1, target_m // max(wo, 1))))
    while cap > 1 and ((cap - 1) * s + 3) * wp * pp * 4 > scratch_budget:
        cap -= 1
    for th in range(cap, 0, -1):
        if ho % th == 0 and ((th * wo) % 8 == 0 or th == ho):
            return th
    return ho


def _vmem_limit_bytes():
    try:
        cap = int(pltpu.get_tpu_info().vmem_capacity_bytes)
        return min((cap * 3) // 4, 100 * 1024 * 1024)
    except Exception:
        return 32 * 1024 * 1024


def bottleneck_apply(x_nchw, prepped):
    n, cin, h, w = x_nchw.shape
    s = prepped["stride"]
    out_planes = prepped["out_planes"]
    cin_p, pp, cout_p = prepped["cin_p"], prepped["pp"], prepped["cout_p"]
    assert cin == prepped["in_planes"]
    ho = (h - 1) // s + 1
    wo = (w - 1) // s + 1
    wp_pad = _rup(w + 2, 8)                  # sublane-aligned padded width

    # NHWC, spatial pad=1 (extra right-pad to align sublanes), channel pad.
    x_nhwc = jnp.transpose(x_nchw, (0, 2, 3, 1))
    xp = jnp.pad(x_nhwc,
                 ((0, 0), (1, 1), (1, wp_pad - w - 1), (0, cin_p - cin)))

    th = _pick_row_tile(ho, wo, s, wp_pad, pp)
    th_in = (th - 1) * s + 3
    grid = (n, ho // th)

    w3_rows = prepped["w3"].shape[0]
    in_specs = [
        pl.BlockSpec((1, h + 2, wp_pad, cin_p), lambda nn, jj: (nn, 0, 0, 0)),
        pl.BlockSpec((cin_p, pp), lambda nn, jj: (0, 0)),
        pl.BlockSpec((1, pp), lambda nn, jj: (0, 0)),
        pl.BlockSpec((9 * pp, pp), lambda nn, jj: (0, 0)),
        pl.BlockSpec((1, pp), lambda nn, jj: (0, 0)),
        pl.BlockSpec((w3_rows, cout_p), lambda nn, jj: (0, 0)),
        pl.BlockSpec((1, cout_p), lambda nn, jj: (0, 0)),
    ]

    kern = functools.partial(_bottleneck_kernel, stride=s, th=th, h=h, w=w,
                             wo=wo, has_proj=prepped["has_proj"])
    out_p = pl.pallas_call(
        kern,
        out_shape=jax.ShapeDtypeStruct((n, ho * wo, cout_p), x_nchw.dtype),
        grid=grid,
        in_specs=in_specs,
        out_specs=pl.BlockSpec((1, th * wo, cout_p),
                               lambda nn, jj: (nn, jj, 0)),
        scratch_shapes=[pltpu.VMEM((th_in, wp_pad, pp), jnp.float32)],
        compiler_params=pltpu.CompilerParams(
            dimension_semantics=("parallel", "parallel"),
            vmem_limit_bytes=_vmem_limit_bytes()),
    )(xp, prepped["w1"], prepped["b1"], prepped["w2"], prepped["b2"],
      prepped["w3"], prepped["b3"])

    out = out_p.reshape(n, ho, wo, cout_p)[..., :out_planes]
    return jnp.transpose(out, (0, 3, 1, 2))                  # back to NCHW


def bottleneck_forward(x_nchw, params, *, stride=1):
    return bottleneck_apply(x_nchw, prepare_bottleneck(params, stride))


# ------------------------------ parameter init ------------------------------ #

def init_bottleneck_params(key, in_planes, planes, stride):
    out_planes = EXPANSION * planes
    keys = jax.random.split(key, 8)

    def conv_w(k, cout, cin, kh, kw):
        fan_in = cin * kh * kw
        std = (2.0 / fan_in) ** 0.5
        return std * jax.random.normal(k, (cout, cin, kh, kw), jnp.float32)

    def bn_params(k, c):
        k1, k2, k3, k4 = jax.random.split(k, 4)
        gamma = 1.0 + 0.1 * jax.random.normal(k1, (c,), jnp.float32)
        beta = 0.1 * jax.random.normal(k2, (c,), jnp.float32)
        mean = 0.1 * jax.random.normal(k3, (c,), jnp.float32)
        var = jnp.abs(jax.random.normal(k4, (c,), jnp.float32)) + 0.5
        return gamma, beta, mean, var

    params = {
        "conv1_w": conv_w(keys[0], planes, in_planes, 1, 1),
        "bn1": bn_params(keys[1], planes),
        "conv2_w": conv_w(keys[2], planes, planes, 3, 3),
        "bn2": bn_params(keys[3], planes),
        "conv3_w": conv_w(keys[4], out_planes, planes, 1, 1),
        "bn3": bn_params(keys[5], out_planes),
    }
    if stride != 1 or in_planes != out_planes:
        params["sc_conv_w"] = conv_w(keys[6], out_planes, in_planes, 1, 1)
        params["bn_sc"] = bn_params(keys[7], out_planes)
    return params


# ---------------------------- pure-JAX reference ---------------------------- #

def reference_forward(x, params, stride):
    def conv(xx, ww, st=1, pad=0):
        return lax.conv_general_dilated(
            xx, ww, window_strides=(st, st), padding=[(pad, pad)] * 2,
            dimension_numbers=("NCHW", "OIHW", "NCHW"),
            precision=lax.Precision.HIGHEST)

    def bn(xx, bnp):
        gamma, beta, mean, var = bnp
        inv = gamma / jnp.sqrt(var + BN_EPS)
        return (xx - mean[None, :, None, None]) * inv[None, :, None, None] \
            + beta[None, :, None, None]

    out = jax.nn.relu(bn(conv(x, params["conv1_w"]), params["bn1"]))
    out = jax.nn.relu(bn(conv(out, params["conv2_w"], st=stride, pad=1),
                         params["bn2"]))
    out = bn(conv(out, params["conv3_w"]), params["bn3"])
    if "sc_conv_w" in params:
        sc = bn(conv(x, params["sc_conv_w"], st=stride), params["bn_sc"])
    else:
        sc = x[:, :, ::stride, ::stride]
    return jax.nn.relu(out + sc)


# ----------------------------------- main ----------------------------------- #

if __name__ == "__main__":
    key = jax.random.PRNGKey(0)
    k_x, k_p1, k_p2 = jax.random.split(key, 3)

    # Config 1: projection shortcut (in_planes != expansion*planes), stride=1.
    in_planes, planes, stride = 4, 4, 1
    x = jax.random.normal(k_x, (2, in_planes, 16, 16), jnp.float32)
    params = init_bottleneck_params(k_p1, in_planes, planes, stride)
    out = jax.block_until_ready(bottleneck_forward(x, params, stride=stride))
    assert out.shape == (2, EXPANSION * planes, 16, 16), out.shape
    ref = reference_forward(x, params, stride)
    err = float(jnp.max(jnp.abs(out - ref)))
    # bf16 MXU operands -> looser tolerance than the f32 HIGHEST reference.
    assert jnp.allclose(out, ref, atol=5e-2, rtol=5e-2), err

    # Config 2: identity shortcut (in_planes == expansion*planes), stride=1.
    in_planes2, planes2 = 16, 4
    x2 = jax.random.normal(k_x, (2, in_planes2, 16, 16), jnp.float32)
    params2 = init_bottleneck_params(k_p2, in_planes2, planes2, 1)
    out2 = jax.block_until_ready(bottleneck_forward(x2, params2, stride=1))
    assert out2.shape == (2, EXPANSION * planes2, 16, 16), out2.shape
    ref2 = reference_forward(x2, params2, 1)
    err2 = float(jnp.max(jnp.abs(out2 - ref2)))
    assert jnp.allclose(out2, ref2, atol=5e-2, rtol=5e-2), err2

    print("KERNEL_OK")
</pallas_src>

<mosaic_0001>
module attributes {stable_mosaic.version = 11 : i64} {
  func.func @_bottleneck_kernel(%arg0: i32, %arg1: i32, %arg2: memref<1x18x24x128xf32, #tpu.memory_space<vmem>>, %arg3: memref<128x128xbf16, #tpu.memory_space<vmem>>, %arg4: memref<1x128xf32, #tpu.memory_space<vmem>>, %arg5: memref<1152x128xbf16, #tpu.memory_space<vmem>>, %arg6: memref<1x128xf32, #tpu.memory_space<vmem>>, %arg7: memref<256x128xbf16, #tpu.memory_space<vmem>>, %arg8: memref<1x128xf32, #tpu.memory_space<vmem>>, %arg9: memref<1x256x128xf32, #tpu.memory_space<vmem>>, %arg10: memref<18x24x128xf32, #tpu.memory_space<vmem>>) attributes {dimension_semantics = [#tpu.dimension_semantics<parallel>, #tpu.dimension_semantics<parallel>], iteration_bounds = array<i64: 2, 1>, scalar_prefetch = 0 : i64, scratch_operands = 1 : i64, tpu.core_type = #tpu.core_type<tc>, window_params = [{transform_indices = @transform_0, window_bounds = array<i64: 1, 18, 24, 128>}, {pipeline_mode = #tpu.pipeline_mode<synchronous>, transform_indices = @transform_1, window_bounds = array<i64: 128, 128>}, {pipeline_mode = #tpu.pipeline_mode<synchronous>, transform_indices = @transform_2, window_bounds = array<i64: 1, 128>}, {pipeline_mode = #tpu.pipeline_mode<synchronous>, transform_indices = @transform_3, window_bounds = array<i64: 1152, 128>}, {pipeline_mode = #tpu.pipeline_mode<synchronous>, transform_indices = @transform_4, window_bounds = array<i64: 1, 128>}, {pipeline_mode = #tpu.pipeline_mode<synchronous>, transform_indices = @transform_5, window_bounds = array<i64: 256, 128>}, {pipeline_mode = #tpu.pipeline_mode<synchronous>, transform_indices = @transform_6, window_bounds = array<i64: 1, 128>}, {transform_indices = @transform_7, window_bounds = array<i64: 1, 256, 128>}]} {
    %c16_i32 = arith.constant 16 : i32
    %0 = arith.muli %arg1, %c16_i32 : i32
    %1 = tpu.assume_multiple %0, 16 : i32
    %c0 = arith.constant 0 : index
    %2 = arith.index_cast %1 : i32 to index
    %c0_0 = arith.constant 0 : index
    %c0_1 = arith.constant 0 : index
    %3 = vector.load %arg2[%c0, %2, %c0_0, %c0_1] : memref<1x18x24x128xf32, #tpu.memory_space<vmem>>, vector<1x18x24x128xf32>
    %4 = vector.shape_cast %3 : vector<1x18x24x128xf32> to vector<18x24x128xf32>
    %5 = vector.shape_cast %4 : vector<18x24x128xf32> to vector<432x128xf32>
    %6 = arith.truncf %5 : vector<432x128xf32> to vector<432x128xbf16>
    %c0_2 = arith.constant 0 : index
    %c0_3 = arith.constant 0 : index
    %7 = vector.load %arg3[%c0_2, %c0_3] : memref<128x128xbf16, #tpu.memory_space<vmem>>, vector<128x128xbf16>
    %cst = arith.constant dense<0.000000e+00> : vector<432x128xf32>
    %8 = tpu.matmul %6, %7, %cst {dimension_numbers = #tpu.dot_dimension_numbers<[1], [0], [0], [1], [0, 0, 1, 1], [], []>} : vector<432x128xbf16>, vector<128x128xbf16>, vector<432x128xf32> -> vector<432x128xf32>
    %c0_4 = arith.constant 0 : index
    %c0_5 = arith.constant 0 : index
    %9 = vector.load %arg4[%c0_4, %c0_5] : memref<1x128xf32, #tpu.memory_space<vmem>>, vector<1x128xf32>
    %10 = vector.broadcast %9 : vector<1x128xf32> to vector<432x128xf32>
    %11 = arith.addf %8, %10 : vector<432x128xf32>
    %cst_6 = arith.constant 0.000000e+00 : f32
    %12 = vector.broadcast %cst_6 : f32 to vector<432x128xf32>
    %13 = arith.maximumf %11, %12 : vector<432x128xf32>
    %14 = vector.shape_cast %13 : vector<432x128xf32> to vector<18x24x128xf32>
    %15 = tpu.iota {dimensions = array<i32: 0>} : vector<24x128xi32>
    %c1_i32 = arith.constant 1 : i32
    %16 = vector.broadcast %c1_i32 : i32 to vector<24x128xi32>
    %17 = arith.cmpi sge, %15, %16 : vector<24x128xi32>
    %c16_i32_7 = arith.constant 16 : i32
    %18 = vector.broadcast %c16_i32_7 : i32 to vector<24x128xi32>
    %19 = arith.cmpi sle, %15, %18 : vector<24x128xi32>
    %20 = arith.andi %17, %19 : vector<24x128xi1>
    %cst_8 = arith.constant 0.000000e+00 : f32
    %21 = vector.shape_cast %20 : vector<24x128xi1> to vector<1x24x128xi1>
    %22 = vector.broadcast %21 : vector<1x24x128xi1> to vector<18x24x128xi1>
    %23 = vector.broadcast %cst_8 : f32 to vector<18x24x128xf32>
    %24 = arith.select %22, %14, %23 : vector<18x24x128xi1>, vector<18x24x128xf32>
    %c0_9 = arith.constant 0 : index
    %c0_10 = arith.constant 0 : index
    %c0_11 = arith.constant 0 : index
    %25 = vector.load %arg10[%c0_9, %c0_10, %c0_11] : memref<18x24x128xf32, #tpu.memory_space<vmem>>, vector<18x24x128xf32>
    tpu.vector_store %arg10[%c0_9, %c0_10, %c0_11], %24 {strides = array<i32>} : memref<18x24x128xf32, #tpu.memory_space<vmem>>, vector<18x24x128xf32>,
    %c0_i32 = arith.constant 0 : i32
    %26 = arith.cmpi eq, %1, %c0_i32 : i32
    %27 = arith.extui %26 : i1 to i32
    %c0_i32_12 = arith.constant 0 : i32
    %28 = arith.cmpi ne, %27, %c0_i32_12 : i32
    scf.if %28 {
      %cst_59 = arith.constant 0.000000e+00 : f32
      %86 = vector.broadcast %cst_59 : f32 to vector<24x128xf32>
      %c0_60 = arith.constant 0 : index
      %c0_61 = arith.constant 0 : index
      %c0_62 = arith.constant 0 : index
      %87 = vector.load %arg10[%c0_60, %c0_61, %c0_62] : memref<18x24x128xf32, #tpu.memory_space<vmem>>, vector<1x24x128xf32>
      %88 = vector.shape_cast %87 : vector<1x24x128xf32> to vector<24x128xf32>
      %89 = vector.shape_cast %86 : vector<24x128xf32> to vector<1x24x128xf32>
      tpu.vector_store %arg10[%c0_60, %c0_61, %c0_62], %89 {strides = array<i32>} : memref<18x24x128xf32, #tpu.memory_space<vmem>>, vector<1x24x128xf32>,
    } else {
    }
    %c18_i32 = arith.constant 18 : i32
    %29 = arith.addi %1, %c18_i32 : i32
    %c1_i32_13 = arith.constant 1 : i32
    %30 = arith.subi %29, %c1_i32_13 : i32
    %c17_i32 = arith.constant 17 : i32
    %31 = arith.cmpi eq, %30, %c17_i32 : i32
    %32 = arith.extui %31 : i1 to i32
    %c0_i32_14 = arith.constant 0 : i32
    %33 = arith.cmpi ne, %32, %c0_i32_14 : i32
    scf.if %33 {
      %cst_59 = arith.constant 0.000000e+00 : f32
      %86 = vector.broadcast %cst_59 : f32 to vector<24x128xf32>
      %c17 = arith.constant 17 : index
      %c0_60 = arith.constant 0 : index
      %c0_61 = arith.constant 0 : index
      %87 = vector.load %arg10[%c17, %c0_60, %c0_61] : memref<18x24x128xf32, #tpu.memory_space<vmem>>, vector<1x24x128xf32>
      %88 = vector.shape_cast %87 : vector<1x24x128xf32> to vector<24x128xf32>
      %89 = vector.shape_cast %86 : vector<24x128xf32> to vector<1x24x128xf32>
      tpu.vector_store %arg10[%c17, %c0_60, %c0_61], %89 {strides = array<i32>} : memref<18x24x128xf32, #tpu.memory_space<vmem>>, vector<1x24x128xf32>,
    } else {
    }
    %c0_15 = arith.constant 0 : index
    %c0_16 = arith.constant 0 : index
    %c0_17 = arith.constant 0 : index
    %34 = vector.load %arg10[%c0_15, %c0_16, %c0_17] : memref<18x24x128xf32, #tpu.memory_space<vmem>>, vector<16x16x128xf32>
    %35 = vector.shape_cast %34 : vector<16x16x128xf32> to vector<256x128xf32>
    %36 = arith.truncf %35 : vector<256x128xf32> to vector<256x128xbf16>
    %c0_18 = arith.constant 0 : index
    %c1 = arith.constant 1 : index
    %c0_19 = arith.constant 0 : index
    %37 = vector.load %arg10[%c0_18, %c1, %c0_19] : memref<18x24x128xf32, #tpu.memory_space<vmem>>, vector<16x16x128xf32>
    %38 = vector.shape_cast %37 : vector<16x16x128xf32> to vector<256x128xf32>
    %39 = arith.truncf %38 : vector<256x128xf32> to vector<256x128xbf16>
    %c0_20 = arith.constant 0 : index
    %c2 = arith.constant 2 : index
    %c0_21 = arith.constant 0 : index
    %40 = vector.load %arg10[%c0_20, %c2, %c0_21] : memref<18x24x128xf32, #tpu.memory_space<vmem>>, vector<16x16x128xf32>
    %41 = vector.shape_cast %40 : vector<16x16x128xf32> to vector<256x128xf32>
    %42 = arith.truncf %41 : vector<256x128xf32> to vector<256x128xbf16>
    %c1_22 = arith.constant 1 : index
    %c0_23 = arith.constant 0 : index
    %c0_24 = arith.constant 0 : index
    %43 = vector.load %arg10[%c1_22, %c0_23, %c0_24] : memref<18x24x128xf32, #tpu.memory_space<vmem>>, vector<16x16x128xf32>
    %44 = vector.shape_cast %43 : vector<16x16x128xf32> to vector<256x128xf32>
    %45 = arith.truncf %44 : vector<256x128xf32> to vector<256x128xbf16>
    %c1_25 = arith.constant 1 : index
    %c1_26 = arith.constant 1 : index
    %c0_27 = arith.constant 0 : index
    %46 = vector.load %arg10[%c1_25, %c1_26, %c0_27] : memref<18x24x128xf32, #tpu.memory_space<vmem>>, vector<16x16x128xf32>
    %47 = vector.shape_cast %46 : vector<16x16x128xf32> to vector<256x128xf32>
    %48 = arith.truncf %47 : vector<256x128xf32> to vector<256x128xbf16>
    %c1_28 = arith.constant 1 : index
    %c2_29 = arith.constant 2 : index
    %c0_30 = arith.constant 0 : index
    %49 = vector.load %arg10[%c1_28, %c2_29, %c0_30] : memref<18x24x128xf32, #tpu.memory_space<vmem>>, vector<16x16x128xf32>
    %50 = vector.shape_cast %49 : vector<16x16x128xf32> to vector<256x128xf32>
    %51 = arith.truncf %50 : vector<256x128xf32> to vector<256x128xbf16>
    %c2_31 = arith.constant 2 : index
    %c0_32 = arith.constant 0 : index
    %c0_33 = arith.constant 0 : index
    %52 = vector.load %arg10[%c2_31, %c0_32, %c0_33] : memref<18x24x128xf32, #tpu.memory_space<vmem>>, vector<16x16x128xf32>
    %53 = vector.shape_cast %52 : vector<16x16x128xf32> to vector<256x128xf32>
    %54 = arith.truncf %53 : vector<256x128xf32> to vector<256x128xbf16>
    %c2_34 = arith.constant 2 : index
    %c1_35 = arith.constant 1 : index
    %c0_36 = arith.constant 0 : index
    %55 = vector.load %arg10[%c2_34, %c1_35, %c0_36] : memref<18x24x128xf32, #tpu.memory_space<vmem>>, vector<16x16x128xf32>
    %56 = vector.shape_cast %55 : vector<16x16x128xf32> to vector<256x128xf32>
    %57 = arith.truncf %56 : vector<256x128xf32> to vector<256x128xbf16>
    %c2_37 = arith.constant 2 : index
    %c2_38 = arith.constant 2 : index
    %c0_39 = arith.constant 0 : index
    %58 = vector.load %arg10[%c2_37, %c2_38, %c0_39] : memref<18x24x128xf32, #tpu.memory_space<vmem>>, vector<16x16x128xf32>
    %59 = vector.shape_cast %58 : vector<16x16x128xf32> to vector<256x128xf32>
    %60 = arith.truncf %59 : vector<256x128xf32> to vector<256x128xbf16>
    %61 = tpu.concatenate %36, %39, %42, %45, %48, %51, %54, %57, %60 in 1 : vector<256x128xbf16>, vector<256x128xbf16>, vector<256x128xbf16>, vector<256x128xbf16>, vector<256x128xbf16>, vector<256x128xbf16>, vector<256x128xbf16>, vector<256x128xbf16>, vector<256x128xbf16> -> vector<256x1152xbf16>
    %c0_40 = arith.constant 0 : index
    %c0_41 = arith.constant 0 : index
    %62 = vector.load %arg5[%c0_40, %c0_41] : memref<1152x128xbf16, #tpu.memory_space<vmem>>, vector<1152x128xbf16>
    %cst_42 = arith.constant dense<0.000000e+00> : vector<256x128xf32>
    %63 = tpu.matmul %61, %62, %cst_42 {dimension_numbers = #tpu.dot_dimension_numbers<[1], [0], [0], [1], [0, 0, 1, 1], [], []>} : vector<256x1152xbf16>, vector<1152x128xbf16>, vector<256x128xf32> -> vector<256x128xf32>
    %c0_43 = arith.constant 0 : index
    %c0_44 = arith.constant 0 : index
    %64 = vector.load %arg6[%c0_43, %c0_44] : memref<1x128xf32, #tpu.memory_space<vmem>>, vector<1x128xf32>
    %65 = vector.broadcast %64 : vector<1x128xf32> to vector<256x128xf32>
    %66 = arith.addf %63, %65 : vector<256x128xf32>
    %cst_45 = arith.constant 0.000000e+00 : f32
    %67 = vector.broadcast %cst_45 : f32 to vector<256x128xf32>
    %68 = arith.maximumf %66, %67 : vector<256x128xf32>
    %c1_i32_46 = arith.constant 1 : i32
    %69 = arith.addi %1, %c1_i32_46 : i32
    %c0_47 = arith.constant 0 : index
    %70 = arith.index_cast %69 : i32 to index
    %c1_48 = arith.constant 1 : index
    %c0_49 = arith.constant 0 : index
    %71 = vector.load %arg2[%c0_47, %70, %c1_48, %c0_49] : memref<1x18x24x128xf32, #tpu.memory_space<vmem>>, vector<1x16x16x128xf32>
    %72 = vector.shape_cast %71 : vector<1x16x16x128xf32> to vector<16x16x128xf32>
    %73 = vector.shape_cast %72 : vector<16x16x128xf32> to vector<256x128xf32>
    %74 = arith.truncf %68 : vector<256x128xf32> to vector<256x128xbf16>
    %75 = arith.truncf %73 : vector<256x128xf32> to vector<256x128xbf16>
    %76 = tpu.concatenate %74, %75 in 1 : vector<256x128xbf16>, vector<256x128xbf16> -> vector<256x256xbf16>
    %c0_50 = arith.constant 0 : index
    %c0_51 = arith.constant 0 : index
    %77 = vector.load %arg7[%c0_50, %c0_51] : memref<256x128xbf16, #tpu.memory_space<vmem>>, vector<256x128xbf16>
    %cst_52 = arith.constant dense<0.000000e+00> : vector<256x128xf32>
    %78 = tpu.matmul %76, %77, %cst_52 {dimension_numbers = #tpu.dot_dimension_numbers<[1], [0], [0], [1], [0, 0, 1, 1], [], []>} : vector<256x256xbf16>, vector<256x128xbf16>, vector<256x128xf32> -> vector<256x128xf32>
    %c0_53 = arith.constant 0 : index
    %c0_54 = arith.constant 0 : index
    %79 = vector.load %arg8[%c0_53, %c0_54] : memref<1x128xf32, #tpu.memory_space<vmem>>, vector<1x128xf32>
    %80 = vector.broadcast %79 : vector<1x128xf32> to vector<256x128xf32>
    %81 = arith.addf %78, %80 : vector<256x128xf32>
    %cst_55 = arith.constant 0.000000e+00 : f32
    %82 = vector.broadcast %cst_55 : f32 to vector<256x128xf32>
    %83 = arith.maximumf %81, %82 : vector<256x128xf32>
    %84 = vector.shape_cast %83 : vector<256x128xf32> to vector<1x256x128xf32>
    %c0_56 = arith.constant 0 : index
    %c0_57 = arith.constant 0 : index
    %c0_58 = arith.constant 0 : index
    %85 = vector.load %arg9[%c0_56, %c0_57, %c0_58] : memref<1x256x128xf32, #tpu.memory_space<vmem>>, vector<1x256x128xf32>
    tpu.vector_store %arg9[%c0_56, %c0_57, %c0_58], %84 {strides = array<i32>} : memref<1x256x128xf32, #tpu.memory_space<vmem>>, vector<1x256x128xf32>,
    return
  }
  func.func @transform_0(%arg0: i32, %arg1: i32) -> (i32, i32, i32, i32) {
    %c0_i32 = arith.constant 0 : i32
    %c0_i32_0 = arith.constant 0 : i32
    %c0_i32_1 = arith.constant 0 : i32
    %c0_i32_2 = arith.constant 0 : i32
    return %arg0, %c0_i32, %c0_i32_0, %c0_i32_1 : i32, i32, i32, i32
  }
  func.func @transform_1(%arg0: i32, %arg1: i32) -> (i32, i32) {
    %c0_i32 = arith.constant 0 : i32
    %c0_i32_0 = arith.constant 0 : i32
    %c0_i32_1 = arith.constant 0 : i32
    return %c0_i32, %c0_i32_0 : i32, i32
  }
  func.func @transform_2(%arg0: i32, %arg1: i32) -> (i32, i32) {
    %c0_i32 = arith.constant 0 : i32
    %c0_i32_0 = arith.constant 0 : i32
    %c0_i32_1 = arith.constant 0 : i32
    return %c0_i32, %c0_i32_0 : i32, i32
  }
  func.func @transform_3(%arg0: i32, %arg1: i32) -> (i32, i32) {
    %c0_i32 = arith.constant 0 : i32
    %c0_i32_0 = arith.constant 0 : i32
    %c0_i32_1 = arith.constant 0 : i32
    return %c0_i32, %c0_i32_0 : i32, i32
  }
  func.func @transform_4(%arg0: i32, %arg1: i32) -> (i32, i32) {
    %c0_i32 = arith.constant 0 : i32
    %c0_i32_0 = arith.constant 0 : i32
    %c0_i32_1 = arith.constant 0 : i32
    return %c0_i32, %c0_i32_0 : i32, i32
  }
  func.func @transform_5(%arg0: i32, %arg1: i32) -> (i32, i32) {
    %c0_i32 = arith.constant 0 : i32
    %c0_i32_0 = arith.constant 0 : i32
    %c0_i32_1 = arith.constant 0 : i32
    return %c0_i32, %c0_i32_0 : i32, i32
  }
  func.func @transform_6(%arg0: i32, %arg1: i32) -> (i32, i32) {
    %c0_i32 = arith.constant 0 : i32
    %c0_i32_0 = arith.constant 0 : i32
    %c0_i32_1 = arith.constant 0 : i32
    return %c0_i32, %c0_i32_0 : i32, i32
  }
  func.func @transform_7(%arg0: i32, %arg1: i32) -> (i32, i32, i32) {
    %c0_i32 = arith.constant 0 : i32
    %c0_i32_0 = arith.constant 0 : i32
    return %arg0, %arg1, %c0_i32 : i32, i32, i32
  }
}

</mosaic_0001>

<bundles_post_ra>
// kernel: tpu_custom_call.1
= control target key start
LH: loop header
LB: loop body
LE: loop exit
PB: predicated region body
PF: predicated region fallthrough
CT: control target
= control target key end

     0   :  { %s6012_s0 = inlined_call_operand.hbm [shape: f32[2,18,24,128], index: 0, kind: input, shape index: {}]   ;;  %s6013_s1 = inlined_call_operand.hbm [shape: bf16[128,128], index: 1, kind: input, shape index: {}]   ;;  %s6014_s2 = inlined_call_operand.vmem [shape: f32[1,128], index: 2, kind: input, shape index: {}]   ;;  %s6015_s3 = inlined_call_operand.hbm [shape: bf16[1152,128], index: 3, kind: input, shape index: {}]   ;;  %s6016_s4 = inlined_call_operand.vmem [shape: f32[1,128], index: 4, kind: input, shape index: {}]   ;;  %s6017_s5 = inlined_call_operand.hbm [shape: bf16[256,128], index: 5, kind: input, shape index: {}]   ;;  %s6018_s6 = inlined_call_operand.vmem [shape: f32[1,128], index: 6, kind: input, shape index: {}]   ;;  %s6019_s7 = inlined_call_operand.hbm [shape: f32[2,256,128], index: 7, kind: output, shape index: {}]  }
   0x1   :  { %6026 = sst [smem:[#allocation40_spill]] %s6013_s1 }
   0x2   :  { %6027 = sst [smem:[#allocation41_spill]] %s6015_s3 }
   0x3   :  { %6028 = sst [smem:[#allocation42_spill]] %s6017_s5 }
   0x4   :  { %12 = vsyncpa [#allocation4], 0 }
   0x5   :  { %14 = vsyncpa [#allocation4 + $0x1], 0 }
   0x6   :  { %15 = vsyncpa [#allocation7], 0 }
   0x7   :  { %16 = vsyncpa [#allocation10], 0 }
   0x8   :  { %17 = vsyncpa [#allocation5], 0 }
   0x9   :  { %19 = vsyncpa [#allocation5 + $0x1], 0  ;;  %s4835_s24 = smov 0   ;;  %s4837_s25 = smov 0  }
   0xa   :  { %s4839_s26 = smov 0   ;;  %s4841_s27 = smov 0  }
   0xb   :  { %s4843_s28 = smov 0   ;;  %s4845_s29 = smov 0  }
   0xc LB: > { %6029 = sst [smem:[#allocation16_spill]] %s4774_s28  ;;  %s3374_s30 = sadd.s32 4294967295, %s4778_s29   ;;  %s4778_s29 = sphi %s4845_s29, %s25_s29   ;;  %s4774_s28 = sphi %s4843_s28, %s6094_s28   ;;  %s4770_s27 = sphi %s4841_s27, %s6093_s27   ;;  %s4766_s26 = sphi %s4839_s26, %s6097_s26   ;;  %s4762_s25 = sphi %s4837_s25, %s6096_s25   ;;  %s4758_s24 = sphi %s4835_s24, %s6095_s24  }
   0xd   : > { %s3375_s8 = sadd.s32 4294967294, %s4778_s29   ;;  %p57_p0 = scmp.ne.s32.totalorder %s4762_s25, %s4758_s24 }
   0xe   : > { %p4869_p1 = scmp.eq.s32.totalorder %s3374_s30, 0  ;;  %p4873_p2 = scmp.eq.s32.totalorder %s3374_s30, 1 }
   0xf   : > { %p215_p3 = scmp.eq.s32.totalorder %s3375_s8, 1  ;;  %p3376_p5 = scmp.ge.s32.totalorder %s4778_s29, 1 }
  0x10   : > { %s6030_s9 = scalar_select %p4869_p1, 1, 0 }
  0x11   : > { %p4879_p4 = por %p4869_p1, %p57_p0  ;;  %p4884_p6 = por %p215_p3, %p57_p0 }
  0x12   : > { %p222_p7 = scmp.lt.s32.totalorder %s4778_s29, 3  ;;  %s4780_s14 = smov [#allocation6]  }
  0x13   : > { %s6032_s11 = scalar_select %p4879_p4, 1, 0 }
  0x14   : > { %s6033_s12 = scalar_select %p4884_p6, 1, 0 }
  0x15   : > { %p4889_p8 = pnand %p3376_p5, %p222_p7  ;;  %s234_s15 = sshll.u32 %s4780_s14, 4  ;;  %s235_s15 = int_to_ptr.vmem [resolvable:$true] %s234_s15 }
  0x16   : > { %s4781_s17 = smov [#allocation8]   ;;  %s4782_s19 = smov [#allocation9]  }
  0x17   : > { %s6034_s13 = scalar_select %p4889_p8, 1, 0 }
  0x18   : > { %p4350_p9 = pneg %p4889_p8  ;;  %s250_s18 = sshll.u32 %s4781_s17, 4  ;;  %s251_s18 = int_to_ptr.vmem [resolvable:$true] %s250_s18 }
  0x19   : > { %s266_s20 = sshll.u32 %s4782_s19, 4  ;;  %s4595_s21 = scalar_lea.vmem %s235_s15, 1024  ;;  %s267_s20 = int_to_ptr.vmem [resolvable:$true] %s266_s20 }
  0x1a   : > { %p4898_p11 = pnand %p4350_p9, %p4869_p1  ;;  %p4596_p13 = scmp.ne.s32.totalorder %s235_s15, %s4595_s21 }
  0x1b   : > { %p4603_p5 = scmp.lt.s32.totalorder %s235_s15, %s235_s15  ;;  %p4604_p7 = scmp.lt.s32.totalorder %s4595_s21, %s4595_s21 }
  0x1c   : > { %p4586_p12 = pneg %p4898_p11 }
  0x1d   : > { %p4605_p9 = por %p4604_p7, %p4603_p5 }
  0x1e   : > { %p4598_p0 = pnand %p4596_p13, %p4586_p12 }
  0x20   : > { %p4599_p3 = pneg %p4598_p0 }
  0x22   : > { %p4606_p10 = pnand %p4605_p9, %p4599_p3 }
  0x24   : > { %4609 = shalt.err (!%p4606_p10)
}
  0x25   : > { %s4783_s22 = smov 64   ;;  %s4784_s23 = smov 4  }
  0x26   : > { %s6036_s1 = sld [smem:[#allocation40_spill]]  ;;  %s4621_s14 = scalar_lea.vmem %s251_s18, 9216 }
  0x27   : > { %p4622_p6 = scmp.ne.s32.totalorder %s251_s18, %s4621_s14  ;;  %p4629_p1 = scmp.lt.s32.totalorder %s251_s18, %s251_s18 }
  0x28   : > { %p4630_p4 = scmp.lt.s32.totalorder %s4621_s14, %s4621_s14 }
  0x29   : > { %p4624_p13 = pnand %p4622_p6, %p4586_p12 }
  0x2a   : > { %p4631_p5 = por %p4630_p4, %p4629_p1 }
  0x2b   : > { %p4625_p0 = pneg %p4624_p13 }
  0x2c   : > { %4353 = dma.hbm_to_vmem [thread:$0]  (!%p4898_p11), %s6036_s1, 1024, %s235_s15, [#allocation7], %s4783_s22, %s4783_s22, %s4784_s23  }
  0x2d   : > { %p4632_p3 = pnand %p4631_p5, %p4625_p0 }
  0x2f   : > { %4635 = shalt.err (!%p4632_p3)
}
  0x30   : > { %s6037_s3 = sld [smem:[#allocation41_spill]]  ;;  %s4647_s15 = scalar_lea.vmem %s267_s20, 2048 }
  0x31   : > { %p4648_p10 = scmp.ne.s32.totalorder %s267_s20, %s4647_s15  ;;  %p4655_p9 = scmp.lt.s32.totalorder %s267_s20, %s267_s20 }
  0x32   : > { %p4656_p13 = scmp.lt.s32.totalorder %s4647_s15, %s4647_s15 }
  0x33   : > { %p4650_p7 = pnand %p4648_p10, %p4586_p12 }
  0x34   : > { %p4657_p8 = por %p4656_p13, %p4655_p9 }
  0x35   : > { %p4651_p6 = pneg %p4650_p7 }
  0x36   : > { %4356 = dma.hbm_to_vmem [thread:$0]  (!%p4898_p11), %s6037_s3, 9216, %s251_s18, [#allocation7], %s4783_s22, %s4783_s22, %s4784_s23  }
  0x37   : > { %p4658_p1 = pnand %p4657_p8, %p4651_p6 }
  0x39   : > { %4661 = shalt.err (!%p4658_p1)
}
  0x3a   : > { %s6038_s5 = sld [smem:[#allocation42_spill]]  ;;  %s44_s18 = sadd.s32 1, %s4766_s26 }
  0x3b   : > { %s37_s8 = sadd.s32 1, %s4774_s28  ;;  %p51_p4 = scmp.ne.s32.totalorder %s4766_s26, %s4762_s25 }
  0x3c   : > { %p39_p8 = scmp.ge.s32.totalorder %s37_s8, 2  ;;  %p52_p12 = scmp.eq.s32.totalorder %s4778_s29, 0 }
  0x3d   : > { %p4935_p0 = por %p4873_p2, %p51_p4  ;;  %p4371_p5 = scmp.lt.s32.totalorder %s4778_s29, 2 }
  0x3e   : > { %s6099_s8 = smov (%p39_p8, %s37_s8), 0  ;;  %p53_p3 = por %p52_p12, %p51_p4 }
  0x3f   : > { %6040 = sst [smem:[#allocation17_spill]] %s6099_s8  ;;  %s283_s14 = sand.u32 1, %s4766_s26  }
  0x40   : > { %4359 = dma.hbm_to_vmem [thread:$0]  (!%p4898_p11), %s6038_s5, 2048, %s267_s20, [#allocation10], %s4783_s22, %s4783_s22, %s4784_s23  }
  0x41   : > { %s41_s17 = ssub.s32 %s4774_s28, %s6099_s8  ;;  %s4331_s20 = smul.u32 432, %s283_s14 }
  0x42   : > { %p42_p10 = scmp.eq.s32.totalorder %s41_s17, 0  ;;  %s4332_s22 = smul.u32 6912, %s4774_s28 }
  0x43   : > { %p4946_p11 = pnand %p4371_p5, %p53_p3  ;;  %s287_s30 = scalar_lea.vmem [#allocation3], %s4331_s20 }
  0x44   : > { %s4951_s10 = scalar_select %p42_p10, %s4766_s26, %s44_s18  }
  0x45   : > { %s293_s21 = scalar_lea.hbm %s6012_s0, %s4332_s22  ;;  %s294_s1 = sshll.u32 %s287_s30, 4  ;;  %s295_s1 = int_to_ptr.vmem [resolvable:$true] %s294_s1 }
  0x46   : > { %s284_s3 = scalar_lea.sflag [#allocation4], %s283_s14  ;;  %p4664_p2 = pneg %p4946_p11 }
  0x47   : > { %s4675_s17 = scalar_lea.vmem %s295_s1, 6912  ;;  %s4785_s5 = smov [#allocation3]  }
  0x48   : > { %p4676_p7 = scmp.ne.s32.totalorder %s295_s1, %s4675_s17  ;;  %s4680_s8 = sshll.u32 %s4785_s5, 4  ;;  %s4681_s8 = int_to_ptr.vmem [resolvable:$false] %s4680_s8 }
  0x49   : > { %s4682_s28 = scalar_lea.vmem %s4681_s8, 13824  ;;  %p4683_p13 = scmp.lt.s32.totalorder %s295_s1, %s4681_s8 }
  0x4a   : > { %p4678_p6 = pnand %p4676_p7, %p4664_p2  ;;  %p4684_p1 = scmp.lt.s32.totalorder %s4682_s28, %s4675_s17 }
  0x4c   : > { %p4679_p9 = pneg %p4678_p6  ;;  %p4685_p4 = por %p4684_p1, %p4683_p13 }
  0x4e   : > { %p4686_p8 = pnand %p4685_p4, %p4679_p9 }
  0x50   : > { %4689 = shalt.err (!%p4686_p8)
}
  0x51   : > { %s4786_s18 = smov 128   ;;  %s4787_s20 = smov 8  }
  0x52   : > { %4363 = dma.hbm_to_vmem [thread:$0]  (!%p4946_p11), %s293_s21, 6912, %s295_s1, %s284_s3, %s4786_s18, %s4786_s18, %s4787_s20  }
  0x53   : > { %p6042_p12 = scmp.ne.s32.totalorder %s6034_s13, 0 }
  0x55   : > { %306 = sbr.rel (%p6042_p12) target bundleno = 1214 (0x4be), region = 48 }
  0x5a   : > { %s4963_s14 = sand.u32 1, %s4762_s25   ;;  %p6043_p5 = scmp.ne.s32.totalorder %s6032_s11, 0 }
  0x5b   : > { %s4333_s5 = smul.u32 432, %s4963_s14  ;;  %s309_s8 = scalar_lea.sflag [#allocation4], %s4963_s14 }
  0x5d   : > { %s4967_s28 = scalar_lea.vmem [#allocation3], %s4333_s5 }
  0x5e   : > { %4741 = dma.done.wait (%p6043_p5), %s309_s8, 6912  }
  0x5f   : > { %4743 = vsyncadd (%p6043_p5), %s309_s8, 4294960384  ;;  %p6044_p3 = scmp.ne.s32.totalorder %s6030_s9, 0 }
  0x61   : > { %4745 = dma.done.wait (%p6044_p3), [#allocation7], 10240  }
  0x62   : > { %4747 = vsyncadd (%p6044_p3), [#allocation7], 4294957056 }
  0x63   : > { %4749 = dma.done.wait (%p6044_p3), [#allocation10], 2048  }
  0x64   : > { %4751 = vsyncadd (%p6044_p3), [#allocation10], 4294965248  ;;  %v4788_v0 = vmov 0.0   ;;  %vm4789_vm0 = vmmov 0   ;;  %v4435_v1 = vld [vmem:[#allocation6 + $0x38] sm:$0xff]   ;;  %v4436_v2 = vld [vmem:[#allocation6 + $0x30] sm:$0xff]  }
  0x65   : > { %4143 = vmatprep.subr.bf16.mxu0 %v4788_v0  ;;  %4159 = vmatprep.mubr.msk.bf16.mxu0 %vm4789_vm0, %v4788_v0  ;;  %946 = vst [vmem:[#allocation2] sm:$0xff] %v4788_v0  ;;  %947 = vst [vmem:[#allocation2 + $0x8] sm:$0xff] %v4788_v0  ;;  %v4437_v3 = vld [vmem:[#allocation6 + $0x28] sm:$0xff]   ;;  %v4438_v4 = vld [vmem:[#allocation6 + $0x20] sm:$0xff]   ;;  %vm4791_vm3 = vmmov 1   ;;  %s3386_s15 = sshll.u32 %s4963_s14, 8 }
  0x66   : > { %948 = vst [vmem:[#allocation2 + $0x10] sm:$0xff] %v4788_v0  ;;  %955 = vst [vmem:[#allocation2 + $0x198] sm:$0xff] %v4788_v0  ;;  %4144 = vmatpush3.bf16.msra.mxu0 %v4435_v1  ;;  %v4439_v5 = vld [vmem:[#allocation6 + $0x18] sm:$0xff]   ;;  %v4440_v6 = vld [vmem:[#allocation6 + $0x10] sm:$0xff]   ;;  %s5892_s21 = scalar_lea.vmem [#allocation11], %s3386_s15  ;;  %s3523_s30 = sshll.u32 %s4770_s27, 12 }
  0x67   : > { %956 = vst [vmem:[#allocation2 + $0x1a0] sm:$0xff] %v4788_v0  ;;  %957 = vst [vmem:[#allocation2 + $0x1a8] sm:$0xff] %v4788_v0  ;;  %4145 = vmatprep.subr.bf16.mxu0 %v4788_v0  ;;  %v4441_v7 = vld [vmem:[#allocation6 + $0x8] sm:$0xff]   ;;  %v4442_v8 = vld [vmem:[#allocation6] sm:$0xff]   ;;  %s3255_s17 = sshll.u32 %s5892_s21, 4  ;;  %s5961_s5 = scalar_lea.hbm %s6019_s7, %s3523_s30  ;;  %s5963_s17 = int_to_ptr.vmem [resolvable:$true] %s3255_s17 }
  0x68   : > { %v360_v9 = vld [vmem:[%s4967_s28] sm:$0xff]  ;;  %v361_v10 = vld [vmem:[%s4967_s28 + $0x8] sm:$0xff]  ;;  %v362_v12 = vld [vmem:[%s4967_s28 + $0x10] sm:$0xff]  ;;  %s3240_s8 = scalar_lea.sflag [#allocation5], %s4963_s14  ;;  %s4792_s27 = smov [#allocation11]  }
  0x69   : > { %v414_v11 = vpack.c.bf16 %v361_v10, %v360_v9  ;;  %v363_v13 = vld [vmem:[%s4967_s28 + $0x18] sm:$0xff]  ;;  %v364_v15 = vld [vmem:[%s4967_s28 + $0x20] sm:$0xff]  ;;  %v365_v16 = vld [vmem:[%s4967_s28 + $0x28] sm:$0xff]  ;;  %s4694_s1 = sshll.u32 %s4792_s27, 4  ;;  %s4695_s1 = int_to_ptr.vmem [resolvable:$false] %s4694_s1 }
  0x6a   : > { %4146 = vmatpush3.bf16.msra.mxu0 %v4436_v2  ;;  %v415_v14 = vpack.c.bf16 %v363_v13, %v362_v12  ;;  %v416_v17 = vpack.c.bf16 %v365_v16, %v364_v15  ;;  %v4443_v18 = vld [vmem:[#allocation8 + $0x78] sm:$0xff]   ;;  %v366_v20 = vld [vmem:[%s4967_s28 + $0x30] sm:$0xff]  ;;  %v368_v23 = vld [vmem:[%s4967_s28 + $0x40] sm:$0xff]  ;;  %s4696_s3 = scalar_lea.vmem %s4695_s1, 8192  ;;  %p4697_p7 = scmp.lt.s32.totalorder %s5963_s17, %s4695_s1 }
  0x6b   : > { %4147 = vmatprep.subr.bf16.mxu0 %v4788_v0  ;;  %v4444_v19 = vld [vmem:[#allocation8 + $0x38] sm:$0xff]   ;;  %4315 = vmatprep.subr.bf16.mxu1 %v4443_v18  ;;  %v370_v26 = vld [vmem:[%s4967_s28 + $0x50] sm:$0xff]  ;;  %v372_v31 = vld [vmem:[%s4967_s28 + $0x60] sm:$0xff] }
  0x6c   : > { %v367_v21 = vld [vmem:[%s4967_s28 + $0x38] sm:$0xff]  ;;  %4323 = vmatpush3.bf16.msra.mxu1 %v4444_v19  ;;  %v369_v24 = vld [vmem:[%s4967_s28 + $0x48] sm:$0xff]  ;;  %v4445_v29 = vld [vmem:[#allocation8 + $0x70] sm:$0xff]  }
  0x6d   : > { %v417_v22 = vpack.c.bf16 %v367_v21, %v366_v20  ;;  %v418_v25 = vpack.c.bf16 %v369_v24, %v368_v23  ;;  %v371_v27 = vld [vmem:[%s4967_s28 + $0x58] sm:$0xff]  ;;  %v4446_v30 = vld [vmem:[#allocation8 + $0x30] sm:$0xff]   ;;  %v373_v32 = vld [vmem:[%s4967_s28 + $0x68] sm:$0xff]  ;;  %4316 = vmatprep.subr.bf16.mxu1 %v4445_v29 }
  0x6e   : > { %4148 = vmatpush3.bf16.msra.mxu0 %v4437_v3  ;;  %v419_v28 = vpack.c.bf16 %v371_v27, %v370_v26  ;;  %v420_v33 = vpack.c.bf16 %v373_v32, %v372_v31  ;;  %v374_v34 = vld [vmem:[%s4967_s28 + $0x70] sm:$0xff]  ;;  %v375_v35 = vld [vmem:[%s4967_s28 + $0x78] sm:$0xff]  ;;  %v376_v37 = vld [vmem:[%s4967_s28 + $0x80] sm:$0xff] }
  0x6f   : > { %4149 = vmatprep.subr.bf16.mxu0 %v4788_v0  ;;  %v421_v36 = vpack.c.bf16 %v375_v35, %v374_v34  ;;  %v377_v38 = vld [vmem:[%s4967_s28 + $0x88] sm:$0xff]  ;;  %v378_v40 = vld [vmem:[%s4967_s28 + $0x90] sm:$0xff]  ;;  %v379_v41 = vld [vmem:[%s4967_s28 + $0x98] sm:$0xff] }
  0x70   : > { %4324 = vmatpush3.bf16.msra.mxu1 %v4446_v30  ;;  %v422_v39 = vpack.c.bf16 %v377_v38, %v376_v37  ;;  %v4447_v42 = vld [vmem:[#allocation8 + $0x68] sm:$0xff]   ;;  %v423_v43 = vpack.c.bf16 %v379_v41, %v378_v40  ;;  %v4449_v45 = vld [vmem:[#allocation8 + $0x60] sm:$0xff]   ;;  %v4451_v49 = vld [vmem:[#allocation8 + $0x58] sm:$0xff]  }
  0x71   : > { %v4448_v44 = vld [vmem:[#allocation8 + $0x28] sm:$0xff]   ;;  %4317 = vmatprep.subr.bf16.mxu1 %v4447_v42  ;;  %v4450_v46 = vld [vmem:[#allocation8 + $0x20] sm:$0xff]   ;;  %v4452_v51 = vld [vmem:[#allocation8 + $0x18] sm:$0xff]  }
  0x72   : > { %4150 = vmatpush3.bf16.msra.mxu0 %v4438_v4  ;;  %v380_v47 = vld [vmem:[%s4967_s28 + $0xa0] sm:$0xff]  ;;  %v381_v48 = vld [vmem:[%s4967_s28 + $0xa8] sm:$0xff]  ;;  %v382_v54 = vld [vmem:[%s4967_s28 + $0xb0] sm:$0xff] }
  0x73   : > { %4151 = vmatprep.subr.bf16.mxu0 %v4788_v0  ;;  %v424_v50 = vpack.c.bf16 %v381_v48, %v380_v47  ;;  %v4453_v52 = vld [vmem:[#allocation8 + $0x50] sm:$0xff]   ;;  %v383_v55 = vld [vmem:[%s4967_s28 + $0xb8] sm:$0xff]  ;;  %v4457_v59 = vld [vmem:[#allocation8 + $0x40] sm:$0xff]  }
  0x74   : > { %4325 = vmatpush3.bf16.msra.mxu1 %v4448_v44  ;;  %v4454_v53 = vld [vmem:[#allocation8 + $0x10] sm:$0xff]   ;;  %v4455_v56 = vld [vmem:[#allocation8 + $0x48] sm:$0xff]   ;;  %v425_v57 = vpack.c.bf16 %v383_v55, %v382_v54  ;;  %v4458_v60 = vld [vmem:[#allocation8] sm:$0xff]  }
  0x75   : > { %4318 = vmatprep.subr.bf16.mxu1 %v4449_v45  ;;  %v4456_v58 = vld [vmem:[#allocation8 + $0x8] sm:$0xff]   ;;  %v384_v61 = vld [vmem:[%s4967_s28 + $0xc0] sm:$0xff]  ;;  %v386_v1 = vld [vmem:[%s4967_s28 + $0xd0] sm:$0xff] }
  0x76   : > { %4152 = vmatpush3.bf16.msra.mxu0 %v4439_v5  ;;  %v385_v62 = vld [vmem:[%s4967_s28 + $0xc8] sm:$0xff]  ;;  %v387_v2 = vld [vmem:[%s4967_s28 + $0xd8] sm:$0xff]  ;;  %v388_v4 = vld [vmem:[%s4967_s28 + $0xe0] sm:$0xff] }
  0x77   : > { %4153 = vmatprep.subr.bf16.mxu0 %v4788_v0  ;;  %v426_v63 = vpack.c.bf16 %v385_v62, %v384_v61  ;;  %v427_v3 = vpack.c.bf16 %v387_v2, %v386_v1  ;;  %v389_v5 = vld [vmem:[%s4967_s28 + $0xe8] sm:$0xff]  ;;  %v392_v10 = vld [vmem:[%s4967_s28 + $0x100] sm:$0xff]  ;;  %v395_v15 = vld [vmem:[%s4967_s28 + $0x118] sm:$0xff] }
  0x78   : > { %4326 = vmatpush3.bf16.msra.mxu1 %v4450_v46  ;;  %v4459_v12 = vld [vmem:[#allocation8 + $0x178] sm:$0xff]   ;;  %v398_v20 = vld [vmem:[%s4967_s28 + $0x130] sm:$0xff]  ;;  %v400_v23 = vld [vmem:[%s4967_s28 + $0x140] sm:$0xff] }
  0x79   : > { %4319 = vmatprep.subr.bf16.mxu1 %v4451_v49  ;;  %v399_v21 = vld [vmem:[%s4967_s28 + $0x138] sm:$0xff]  ;;  %v401_v24 = vld [vmem:[%s4967_s28 + $0x148] sm:$0xff]  ;;  %v402_v26 = vld [vmem:[%s4967_s28 + $0x150] sm:$0xff] }
  0x7a   : > { %4154 = vmatpush3.bf16.msra.mxu0 %v4440_v6  ;;  %v428_v6 = vpack.c.bf16 %v389_v5, %v388_v4  ;;  %v403_v27 = vld [vmem:[%s4967_s28 + $0x158] sm:$0xff]  ;;  %v406_v32 = vld [vmem:[%s4967_s28 + $0x170] sm:$0xff]  ;;  %v408_v35 = vld [vmem:[%s4967_s28 + $0x180] sm:$0xff] }
  0x7b   : > { %4155 = vmatprep.subr.bf16.mxu0 %v4788_v0  ;;  %v411_v40 = vld [vmem:[%s4967_s28 + $0x198] sm:$0xff]  ;;  %v5102_v47 = vld [vmem:[%s6014_s2] ss:$0 sm:$0xff] }
  0x7c   : > { %4327 = vmatpush3.bf16.msra.mxu1 %v4452_v51  ;;  %v412_v48 = vld [vmem:[%s4967_s28 + $0x1a0] sm:$0xff]  ;;  %v4475_v54 = vld [vmem:[#allocation8 + $0xf8] sm:$0xff]  }
  0x7d   : > { %4320 = vmatprep.subr.bf16.mxu1 %v4453_v52  ;;  %v4460_v5 = vld [vmem:[#allocation8 + $0x138] sm:$0xff]  }
  0x7e   : > { %4156 = vmatpush3.bf16.msra.mxu0 %v4441_v7  ;;  %v390_v7 = vld [vmem:[%s4967_s28 + $0xf0] sm:$0xff] }
  0x7f   : > { %4157 = vmatprep.subr.bf16.mxu0 %v4788_v0 }
  0x80   : > { %4328 = vmatpush3.bf16.msra.mxu1 %v4454_v53 }
  0x81   : > { %4321 = vmatprep.subr.bf16.mxu1 %v4455_v56 }
  0x82   : > { %4158 = vmatpush3.bf16.msra.mxu0 %v4442_v8  ;;  %v391_v8 = vld [vmem:[%s4967_s28 + $0xf8] sm:$0xff] }
  0x83   : > { %3559 = vmatprep.subr.bf16.mxu0 %v4443_v18  ;;  %v429_v9 = vpack.c.bf16 %v391_v8, %v390_v7  ;;  %v397_v18 = vld [vmem:[%s4967_s28 + $0x128] sm:$0xff]  ;;  %v4461_v7 = vld [vmem:[#allocation8 + $0x170] sm:$0xff]  }
  0x84   : > { %4329 = vmatpush3.bf16.msra.mxu1 %v4456_v58 }
  0x85   : > { %4160 = vmatmul.mubr.bf16.vlgmr.msra.gmra.mxu0 %v414_v11  ;;  %4322 = vmatprep.subr.bf16.mxu1 %v4457_v59  ;;  %v393_v11 = vld [vmem:[%s4967_s28 + $0x108] sm:$0xff] }
  0x86   : > { %4163 = vmatprep.mubr.msk.bf16.mxu0 %vm4789_vm0, %v4788_v0  ;;  %3560 = vmatpush3.bf16.msra.mxu0 %v4444_v19  ;;  %v430_v13 = vpack.c.bf16 %v393_v11, %v392_v10  ;;  %v4790_v10 = vmov 0.0|0.0  }
  0x87   : > { %3561 = vmatprep.subr.bf16.mxu0 %v4445_v29  ;;  %v404_v29 = vld [vmem:[%s4967_s28 + $0x160] sm:$0xff] }
  0x88   : > { %4330 = vmatpush3.bf16.msra.mxu1 %v4458_v60 }
  0x89   : > { %3671 = vmatprep.subr.bf16.mxu1 %v4475_v54 }
  0x8a   : > { %3562 = vmatpush3.bf16.msra.mxu0 %v4446_v30  ;;  %v405_v30 = vld [vmem:[%s4967_s28 + $0x168] sm:$0xff] }
  0x8b   : > { %3563 = vmatprep.subr.bf16.mxu0 %v4447_v42  ;;  %v436_v31 = vpack.c.bf16 %v405_v30, %v404_v29  ;;  %v4466_v30 = vld [vmem:[#allocation8 + $0x120] sm:$0xff]  }
  0x8d   : > { %4164 = vmatmul.mubr.bf16.gmra.mxu0 %v415_v14  ;;  %v394_v14 = vld [vmem:[%s4967_s28 + $0x110] sm:$0xff] }
  0x8e   : > { %4167 = vmatprep.mubr.msk.bf16.mxu0 %vm4789_vm0, %v4788_v0  ;;  %3564 = vmatpush3.bf16.msra.mxu0 %v4448_v44  ;;  %v431_v16 = vpack.c.bf16 %v395_v15, %v394_v14  ;;  %v815_v44 = vlaneseq  ;;  %v4463_v15 = vld [vmem:[#allocation8 + $0x168] sm:$0xff]  }
  0x8f   : > { %3565 = vmatprep.subr.bf16.mxu0 %v4449_v45 }
  0x92   : > { %3566 = vmatpush3.bf16.msra.mxu0 %v4450_v46 }
  0x93   : > { %3567 = vmatprep.subr.bf16.mxu0 %v4451_v49  ;;  %v413_v49 = vld [vmem:[%s4967_s28 + $0x1a8] sm:$0xff] }
  0x95   : > { %4168 = vmatmul.mubr.bf16.gmra.mxu0 %v416_v17  ;;  %v396_v17 = vld [vmem:[%s4967_s28 + $0x120] sm:$0xff] }
  0x96   : > { %4171 = vmatprep.mubr.msk.bf16.mxu0 %vm4789_vm0, %v4788_v0  ;;  %3568 = vmatpush3.bf16.msra.mxu0 %v4452_v51  ;;  %v432_v19 = vpack.c.bf16 %v397_v18, %v396_v17 }
  0x97   : > { %3569 = vmatprep.subr.bf16.mxu0 %v4453_v52  ;;  %v1006_v52 = vld [vmem:[#allocation2 + $0x1] sm:$0xff] }
  0x9a   : > { %3570 = vmatpush3.bf16.msra.mxu0 %v4454_v53  ;;  %v1007_v53 = vld [vmem:[#allocation2 + $0x9] sm:$0xff] }
  0x9b   : > { %3571 = vmatprep.subr.bf16.mxu0 %v4455_v56  ;;  %v440_v56 = vpack.c.bf16 %v413_v49, %v412_v48  ;;  %v4471_v49 = vld [vmem:[#allocation8 + $0x148] sm:$0xff]  }
  0x9d   : > { %4172 = vmatmul.mubr.bf16.gmra.mxu0 %v417_v22  ;;  %v433_v22 = vpack.c.bf16 %v399_v21, %v398_v20  ;;  %v4464_v20 = vld [vmem:[#allocation8 + $0x128] sm:$0xff]  }
  0x9e   : > { %4175 = vmatprep.mubr.msk.bf16.mxu0 %vm4789_vm0, %v4788_v0  ;;  %3572 = vmatpush3.bf16.msra.mxu0 %v4456_v58  ;;  %v1038_v58 = vpack.c.bf16 %v1007_v53, %v1006_v52 }
  0x9f   : > { %3573 = vmatprep.subr.bf16.mxu0 %v4457_v59 }
  0xa2   : > { %3574 = vmatpush3.bf16.msra.mxu0 %v4458_v60 }
  0xa3   : > { %3783 = vmatprep.subr.bf16.mxu0 %v4459_v12 }
  0xa5   : > { %4176 = vmatmul.mubr.bf16.gmra.mxu0 %v418_v25  ;;  %v434_v25 = vpack.c.bf16 %v401_v24, %v400_v23 }
  0xa6   : > { %4179 = vmatprep.mubr.msk.bf16.mxu0 %vm4789_vm0, %v4788_v0 }
  0xad   : > { %4180 = vmatmul.mubr.bf16.gmra.mxu0 %v419_v28  ;;  %v435_v28 = vpack.c.bf16 %v403_v27, %v402_v26 }
  0xae   : > { %4183 = vmatprep.mubr.msk.bf16.mxu0 %vm4789_vm0, %v4788_v0 }
  0xb5   : > { %4184 = vmatmul.mubr.bf16.gmra.mxu0 %v420_v33  ;;  %v407_v33 = vld [vmem:[%s4967_s28 + $0x178] sm:$0xff] }
  0xb6   : > { %4187 = vmatprep.mubr.msk.bf16.mxu0 %vm4789_vm0, %v4788_v0  ;;  %v437_v34 = vpack.c.bf16 %v407_v33, %v406_v32  ;;  %v4467_v32 = vld [vmem:[#allocation8 + $0x158] sm:$0xff]  }
  0xbd   : > { %4188 = vmatmul.mubr.bf16.gmra.mxu0 %v421_v36  ;;  %v409_v36 = vld [vmem:[%s4967_s28 + $0x188] sm:$0xff] }
  0xbe   : > { %4191 = vmatprep.mubr.msk.bf16.mxu0 %vm4789_vm0, %v4788_v0  ;;  %v438_v37 = vpack.c.bf16 %v409_v36, %v408_v35 }
  0xc5   : > { %4192 = vmatmul.mubr.bf16.gmra.mxu0 %v422_v39  ;;  %v410_v39 = vld [vmem:[%s4967_s28 + $0x190] sm:$0xff] }
  0xc6   : > { %4195 = vmatprep.mubr.msk.bf16.mxu0 %vm4789_vm0, %v4788_v0 }
  0xcd   : > { %4196 = vmatmul.mubr.bf16.gmra.mxu0 %v423_v43  ;;  %v439_v43 = vpack.c.bf16 %v411_v40, %v410_v39  ;;  %v4468_v39 = vld [vmem:[#allocation8 + $0x118] sm:$0xff]  }
  0xce   : > { %4199 = vmatprep.mubr.msk.bf16.mxu0 %vm4789_vm0, %v4788_v0 }
  0xd5   : > { %4200 = vmatmul.mubr.bf16.gmra.mxu0 %v424_v50  ;;  %v5108_v50 = vshrl.u32 %v815_v44, 7 }
  0xd6   : > { %4203 = vmatprep.mubr.msk.bf16.mxu0 %vm4789_vm0, %v4788_v0 }
  0xd7   : > { %vm819_vm1 = vcmp.ge.s32.totalorder %v5108_v50, 1 }
  0xd8   : > { %vm5145_vm4 = vmpackc.low %vm4791_vm3, %vm819_vm1 }
  0xdd   : > { %4204 = vmatmul.mubr.bf16.gmra.mxu0 %v425_v57 }
  0xde   : > { %4207 = vmatprep.mubr.msk.bf16.mxu0 %vm4789_vm0, %v4788_v0 }
  0xe5   : > { %4208 = vmatmul.mubr.bf16.gmra.mxu0 %v426_v63  ;;  %v5119_v63 = vadd.s32 16, %v5108_v50 }
  0xe6   : > { %4211 = vmatprep.mubr.msk.bf16.mxu0 %vm4789_vm0, %v4788_v0 }
  0xe7   : > { %vm824_vm2 = vcmp.le.s32.totalorder %v5119_v63, 16 }
  0xed   : > { %4212 = vmatmul.mubr.bf16.gmra.mxu0 %v427_v3 }
  0xee   : > { %4215 = vmatprep.mubr.msk.bf16.mxu0 %vm4789_vm0, %v4788_v0 }
  0xf5   : > { %4216 = vmatmul.mubr.bf16.gmra.mxu0 %v428_v6 }
  0xf6   : > { %4219 = vmatprep.mubr.msk.bf16.mxu0 %vm4789_vm0, %v4788_v0 }
  0xfd   : > { %4220 = vmatmul.mubr.bf16.gmra.mxu0 %v429_v9 }
  0xfe   : > { %4223 = vmatprep.mubr.msk.bf16.mxu0 %vm4789_vm0, %v4788_v0 }
 0x105   : > { %4224 = vmatmul.mubr.bf16.gmra.mxu0 %v430_v13  ;;  %v4462_v13 = vld [vmem:[#allocation8 + $0x130] sm:$0xff]  }
 0x106   : > { %4227 = vmatprep.mubr.msk.bf16.mxu0 %vm4789_vm0, %v4788_v0 }
 0x10d   : > { %4228 = vmatmul.mubr.bf16.gmra.mxu0 %v431_v16 }
 0x10e   : > { %4231 = vmatprep.mubr.msk.bf16.mxu0 %vm4789_vm0, %v4788_v0 }
 0x115   : > { %4232 = vmatmul.mubr.bf16.gmra.mxu0 %v432_v19 }
 0x116   : > { %4235 = vmatprep.mubr.msk.bf16.mxu0 %vm4789_vm0, %v4788_v0 }
 0x11d   : > { %4236 = vmatmul.mubr.bf16.gmra.mxu0 %v433_v22  ;;  %v4465_v22 = vld [vmem:[#allocation8 + $0x160] sm:$0xff]  }
 0x11e   : > { %4239 = vmatprep.mubr.msk.bf16.mxu0 %vm4789_vm0, %v4788_v0 }
 0x125   : > { %4240 = vmatmul.mubr.bf16.gmra.mxu0 %v434_v25 }
 0x126   : > { %4243 = vmatprep.mubr.msk.bf16.mxu0 %vm4789_vm0, %v4788_v0 }
 0x12d   : > { %4244 = vmatmul.mubr.bf16.gmra.mxu0 %v435_v28 }
 0x12e   : > { %4247 = vmatprep.mubr.msk.bf16.mxu0 %vm4789_vm0, %v4788_v0 }
 0x135   : > { %4248 = vmatmul.mubr.bf16.gmra.mxu0 %v436_v31 }
 0x136   : > { %4251 = vmatprep.mubr.msk.bf16.mxu0 %vm4789_vm0, %v4788_v0 }
 0x13d   : > { %4252 = vmatmul.mubr.bf16.gmra.mxu0 %v437_v34 }
 0x13e   : > { %4255 = vmatprep.mubr.msk.bf16.mxu0 %vm4789_vm0, %v4788_v0 }
 0x145   : > { %v546_v38 = vpop.f32.mrf.mxu0  ;;  %4256 = vmatmul.mubr.bf16.gmra.mxu0 %v438_v37 }
 0x146   : > { %4259 = vmatprep.mubr.msk.bf16.mxu0 %vm4789_vm0, %v4788_v0 }
 0x147   : > { %v4161_v41 = vpop.f32.mrf.mxu0 }
 0x148   : > { %v4469_v41 = vld [vmem:[#allocation8 + $0x150] sm:$0xff]  }
 0x149   : > { %v549_v42 = vpop.f32.mrf.mxu0 }
 0x14b   : > { %v4162_v45 = vpop.f32.mrf.mxu0 }
 0x14d   : > { %v554_v46 = vpop.f32.mrf.mxu0  ;;  %4260 = vmatmul.mubr.bf16.gmra.mxu0 %v439_v43 }
 0x14e   : > { %4263 = vmatprep.mubr.msk.bf16.mxu0 %vm4789_vm0, %v4788_v0  ;;  %v4470_v46 = vld [vmem:[#allocation8 + $0x110] sm:$0xff]  }
 0x14f   : > { %v4165_v51 = vpop.f32.mrf.mxu0 }
 0x151   : > { %v557_v55 = vpop.f32.mrf.mxu0 }
 0x152   : > { %v5111_v57 = vadd.f32 %v5102_v47, %v557_v55 }
 0x153   : > { %v4166_v59 = vpop.f32.mrf.mxu0 }
 0x154   : > { %v764_v0 = vmax.f32 %v5111_v57, 0.0  ;;  %v4472_v57 = vld [vmem:[#allocation8 + $0x108] sm:$0xff]   ;;  %v4473_v59 = vld [vmem:[#allocation8 + $0x140] sm:$0xff]  }
 0x155   : > { %v562_v60 = vpop.f32.mrf.mxu0  ;;  %4264 = vmatmul.mubr.bf16.gmra.mxu0 %v440_v56 }
 0x156   : > { %v837_v61 = vsel %vm819_vm1, %v764_v0, 0.0  ;;  %v563_v62 = vadd.f32 %v5102_v47, %v562_v60  ;;  %2007 = vmatprep.mubr.bf16.mxu0 %v1038_v58 }
 0x157   : > { %891 = vst [vmem:[#allocation2 + $0x18] sm:$0xff] %v837_v61  ;;  %v4169_v1 = vpop.f32.mrf.mxu0 }
 0x158   : > { %v765_v2 = vmax.f32 %v563_v62, 0.0 }
 0x159   : > { %v565_v3 = vpop.f32.mrf.mxu0 }
 0x15a   : > { %892 = vst [vmem:[#allocation2 + $0x20] sm:$0xff] %v765_v2  ;;  %v566_v4 = vadd.f32 %v5102_v47, %v565_v3  ;;  %v4534_v37 = vpack.c.bf16 %v765_v2, %v764_v0  ;;  %v4474_v2 = vld [vmem:[#allocation8 + $0x100] sm:$0xff]  }
 0x15b   : > { %v4170_v6 = vpop.f32.mrf.mxu0 }
 0x15c   : > { %v766_v8 = vmax.f32 %v566_v4, 0.0 }
 0x15d   : > { %v570_v9 = vpop.f32.mrf.mxu0  ;;  %2008 = vmatmul.mubr.bf16.vlgmr.msra.gmra.mxu0 %v4790_v10 }
 0x15e   : > { %v839_v11 = vsel %vm824_vm2, %v766_v8, 0.0  ;;  %v5126_v12 = vadd.f32 %v5102_v47, %v570_v9  ;;  %3784 = vmatpush3.bf16.msra.mxu0 %v4460_v5 }
 0x15f   : > { %893 = vst [vmem:[#allocation2 + $0x28] sm:$0xff] %v839_v11  ;;  %v4173_v14 = vpop.f32.mrf.mxu0  ;;  %3785 = vmatprep.subr.bf16.mxu0 %v4461_v7 }
 0x160   : > { %v767_v16 = vmax.f32 %v5126_v12, 0.0 }
 0x161   : > { %v573_v17 = vpop.f32.mrf.mxu0  ;;  %v1008_v26 = vld [vmem:[#allocation2 + $0x19] sm:$0xff] }
 0x162   : > { %v840_v18 = vsel %vm819_vm1, %v767_v16, 0.0  ;;  %v574_v19 = vadd.f32 %v5102_v47, %v573_v17  ;;  %3786 = vmatpush3.bf16.msra.mxu0 %v4462_v13 }
 0x163   : > { %894 = vst [vmem:[#allocation2 + $0x30] sm:$0xff] %v840_v18  ;;  %v4174_v21 = vpop.f32.mrf.mxu0  ;;  %3787 = vmatprep.subr.bf16.mxu0 %v4463_v15 }
 0x164   : > { %v768_v23 = vmax.f32 %v574_v19, 0.0 }
 0x165   : > { %v578_v24 = vpop.f32.mrf.mxu0 }
 0x166   : > { %895 = vst [vmem:[#allocation2 + $0x38] sm:$0xff] %v768_v23  ;;  %v579_v25 = vadd.f32 %v5102_v47, %v578_v24  ;;  %v1009_v27 = vld [vmem:[#allocation2 + $0x21] sm:$0xff]  ;;  %3788 = vmatpush3.bf16.msra.mxu0 %v4464_v20  ;;  %v4537_v62 = vpack.c.bf16 %v768_v23, %v767_v16 }
 0x167   : > { %v4177_v28 = vpop.f32.mrf.mxu0  ;;  %v5135_v29 = vpack.c.bf16 %v1009_v27, %v1008_v26  ;;  %3789 = vmatprep.subr.bf16.mxu0 %v4465_v22  ;;  %v5178_v22 = vld [vmem:[#allocation8 + $0x238] sm:$0xff]  }
 0x168   : > { %v769_v31 = vmax.f32 %v579_v25, 0.0 }
 0x169   : > { %v581_v33 = vpop.f32.mrf.mxu0  ;;  %2015 = vmatprep.mubr.bf16.mxu0 %v5135_v29 }
 0x16a   : > { %v842_v34 = vsel %vm824_vm2, %v769_v31, 0.0  ;;  %v5141_v35 = vadd.f32 %v5102_v47, %v581_v33  ;;  %4535 = vmatmul.mubr.msk.bf16.gmra.mxu0 %vm5145_vm4, %v4534_v37 }
 0x16b   : > { %896 = vst [vmem:[#allocation2 + $0x40] sm:$0xff] %v842_v34  ;;  %v4178_v38 = vpop.f32.mrf.mxu0  ;;  %3790 = vmatpush3.bf16.msra.mxu0 %v4466_v30 }
 0x16c   : > { %v770_v40 = vmax.f32 %v5141_v35, 0.0  ;;  %3791 = vmatprep.subr.bf16.mxu0 %v4467_v32 }
 0x16d   : > { %v586_v42 = vpop.f32.mrf.mxu0  ;;  %v1010_v53 = vld [vmem:[#allocation2 + $0x31] sm:$0xff] }
 0x16e   : > { %v843_v43 = vsel %vm819_vm1, %v770_v40, 0.0  ;;  %v587_v44 = vadd.f32 %v5102_v47, %v586_v42 }
 0x16f   : > { %897 = vst [vmem:[#allocation2 + $0x48] sm:$0xff] %v843_v43  ;;  %v4181_v45 = vpop.f32.mrf.mxu0  ;;  %3792 = vmatpush3.bf16.msra.mxu0 %v4468_v39 }
 0x170   : > { %v771_v48 = vmax.f32 %v587_v44, 0.0  ;;  %3793 = vmatprep.subr.bf16.mxu0 %v4469_v41 }
 0x171   : > { %v589_v51 = vpop.f32.mrf.mxu0 }
 0x172   : > { %898 = vst [vmem:[#allocation2 + $0x50] sm:$0xff] %v771_v48  ;;  %v590_v52 = vadd.f32 %v5102_v47, %v589_v51  ;;  %v1011_v54 = vld [vmem:[#allocation2 + $0x39] sm:$0xff]  ;;  %v4540_v19 = vpack.c.bf16 %v771_v48, %v770_v40 }
 0x173   : > { %v4182_v55 = vpop.f32.mrf.mxu0  ;;  %v5156_v56 = vpack.c.bf16 %v1011_v54, %v1010_v53  ;;  %3794 = vmatpush3.bf16.msra.mxu0 %v4470_v46  ;;  %v1200_v54 = vld [vmem:[#allocation2 + $0x22] sm:$0xff] }
 0x174   : > { %v772_v58 = vmax.f32 %v590_v52, 0.0  ;;  %3795 = vmatprep.subr.bf16.mxu0 %v4471_v49 }
 0x175   : > { %v594_v0 = vpop.f32.mrf.mxu0  ;;  %2023 = vmatprep.mubr.bf16.mxu0 %v5156_v56 }
 0x176   : > { %v845_v60 = vsel %vm824_vm2, %v772_v58, 0.0  ;;  %v595_v61 = vadd.f32 %v5102_v47, %v594_v0  ;;  %4538 = vmatmul.mubr.msk.bf16.gmra.mxu0 %vm5145_vm4, %v4537_v62 }
 0x177   : > { %899 = vst [vmem:[#allocation2 + $0x58] sm:$0xff] %v845_v60  ;;  %v4185_v1 = vpop.f32.mrf.mxu0  ;;  %3796 = vmatpush3.bf16.msra.mxu0 %v4472_v57 }
 0x178   : > { %v773_v3 = vmax.f32 %v595_v61, 0.0  ;;  %3797 = vmatprep.subr.bf16.mxu0 %v4473_v59  ;;  %v1199_v59 = vld [vmem:[#allocation2 + $0x1a] sm:$0xff] }
 0x179   : > { %v597_v4 = vpop.f32.mrf.mxu0  ;;  %v1012_v11 = vld [vmem:[#allocation2 + $0x49] sm:$0xff]  ;;  %v1231_v60 = vpack.c.bf16 %v1200_v54, %v1199_v59 }
 0x17a   : > { %v846_v5 = vsel %vm819_vm1, %v773_v3, 0.0  ;;  %v598_v6 = vadd.f32 %v5102_v47, %v597_v4  ;;  %v4482_v54 = vld [vmem:[#allocation8 + $0xa0] sm:$0xff]   ;;  %v4483_v59 = vld [vmem:[#allocation8 + $0xd8] sm:$0xff]  }
 0x17b   : > { %900 = vst [vmem:[#allocation2 + $0x60] sm:$0xff] %v846_v5  ;;  %v4186_v7 = vpop.f32.mrf.mxu0  ;;  %3798 = vmatpush3.bf16.msra.mxu0 %v4474_v2 }
 0x17c   : > { %v774_v8 = vmax.f32 %v598_v6, 0.0  ;;  %4267 = vmatprep.subr.bf16.mxu0 %v5178_v22  ;;  %v1202_v7 = vld [vmem:[#allocation2 + $0x3a] sm:$0xff] }
 0x17d   : > { %v602_v9 = vpop.f32.mrf.mxu0 }
 0x17e   : > { %901 = vst [vmem:[#allocation2 + $0x68] sm:$0xff] %v774_v8  ;;  %v603_v10 = vadd.f32 %v5102_v47, %v602_v9  ;;  %v1013_v12 = vld [vmem:[#allocation2 + $0x51] sm:$0xff]  ;;  %v4543_v40 = vpack.c.bf16 %v774_v8, %v773_v3 }
 0x17f   : > { %v4189_v13 = vpop.f32.mrf.mxu0  ;;  %v5170_v14 = vpack.c.bf16 %v1013_v12, %v1012_v11  ;;  %v4490_v11 = vld [vmem:[#allocation8 + $0x230] sm:$0xff]  }
 0x180   : > { %v775_v15 = vmax.f32 %v603_v10, 0.0  ;;  %v1201_v10 = vld [vmem:[#allocation2 + $0x32] sm:$0xff] }
 0x181   : > { %v605_v16 = vpop.f32.mrf.mxu0  ;;  %2031 = vmatprep.mubr.bf16.mxu0 %v5170_v14  ;;  %v5219_v13 = vpack.c.bf16 %v1202_v7, %v1201_v10  ;;  %v4484_v7 = vld [vmem:[#allocation8 + $0x98] sm:$0xff]   ;;  %v4485_v10 = vld [vmem:[#allocation8 + $0xd0] sm:$0xff]  }
 0x182   : > { %v848_v17 = vsel %vm824_vm2, %v775_v15, 0.0  ;;  %v606_v18 = vadd.f32 %v5102_v47, %v605_v16  ;;  %4541 = vmatmul.mubr.msk.bf16.gmra.mxu0 %vm5145_vm4, %v4540_v19 }
 0x183   : > { %902 = vst [vmem:[#allocation2 + $0x70] sm:$0xff] %v848_v17  ;;  %v4190_v20 = vpop.f32.mrf.mxu0 }
 0x184   : > { %v776_v21 = vmax.f32 %v606_v18, 0.0  ;;  %v4476_v20 = vld [vmem:[#allocation8 + $0xb8] sm:$0xff]  }
 0x185   : > { %v610_v23 = vpop.f32.mrf.mxu0  ;;  %v1014_v31 = vld [vmem:[#allocation2 + $0x61] sm:$0xff] }
 0x186   : > { %v849_v24 = vsel %vm819_vm1, %v776_v21, 0.0  ;;  %v611_v25 = vadd.f32 %v5102_v47, %v610_v23  ;;  %v4477_v23 = vld [vmem:[#allocation8 + $0xf0] sm:$0xff]  }
 0x187   : > { %903 = vst [vmem:[#allocation2 + $0x78] sm:$0xff] %v849_v24  ;;  %v4193_v26 = vpop.f32.mrf.mxu0  ;;  %v4491_v24 = vld [vmem:[#allocation8 + $0x228] sm:$0xff]  }
 0x188   : > { %v777_v27 = vmax.f32 %v611_v25, 0.0 }
 0x189   : > { %v613_v28 = vpop.f32.mrf.mxu0 }
 0x18a   : > { %904 = vst [vmem:[#allocation2 + $0x80] sm:$0xff] %v777_v27  ;;  %v614_v30 = vadd.f32 %v5102_v47, %v613_v28  ;;  %v1015_v32 = vld [vmem:[#allocation2 + $0x69] sm:$0xff]  ;;  %v4546_v1 = vpack.c.bf16 %v777_v27, %v776_v21  ;;  %v1204_v28 = vld [vmem:[#allocation2 + $0x52] sm:$0xff] }
 0x18b   : > { %v4194_v33 = vpop.f32.mrf.mxu0  ;;  %v5185_v34 = vpack.c.bf16 %v1015_v32, %v1014_v31  ;;  %v1203_v32 = vld [vmem:[#allocation2 + $0x4a] sm:$0xff] }
 0x18c   : > { %v778_v35 = vmax.f32 %v614_v30, 0.0  ;;  %v4478_v30 = vld [vmem:[#allocation8 + $0xb0] sm:$0xff]   ;;  %v4479_v33 = vld [vmem:[#allocation8 + $0xe8] sm:$0xff]  }
 0x18d   : > { %v618_v37 = vpop.f32.mrf.mxu0  ;;  %2039 = vmatprep.mubr.bf16.mxu0 %v5185_v34 }
 0x18e   : > { %v851_v38 = vsel %vm824_vm2, %v778_v35, 0.0  ;;  %v5191_v39 = vadd.f32 %v5102_v47, %v618_v37  ;;  %4544 = vmatmul.mubr.msk.bf16.gmra.mxu0 %vm5145_vm4, %v4543_v40  ;;  %v5238_v37 = vpack.c.bf16 %v1204_v28, %v1203_v32  ;;  %v4488_v28 = vld [vmem:[#allocation8 + $0x88] sm:$0xff]  }
 0x18f   : > { %905 = vst [vmem:[#allocation2 + $0x88] sm:$0xff] %v851_v38  ;;  %v4197_v41 = vpop.f32.mrf.mxu0  ;;  %v4494_v38 = vld [vmem:[#allocation8 + $0x220] sm:$0xff]  }
 0x190   : > { %v779_v42 = vmax.f32 %v5191_v39, 0.0 }
 0x191   : > { %v621_v43 = vpop.f32.mrf.mxu0  ;;  %v1016_v52 = vld [vmem:[#allocation2 + $0x79] sm:$0xff] }
 0x192   : > { %v852_v44 = vsel %vm819_vm1, %v779_v42, 0.0  ;;  %v622_v45 = vadd.f32 %v5102_v47, %v621_v43 }
 0x193   : > { %906 = vst [vmem:[#allocation2 + $0x90] sm:$0xff] %v852_v44  ;;  %v4198_v46 = vpop.f32.mrf.mxu0  ;;  %v4481_v44 = vld [vmem:[#allocation8 + $0xe0] sm:$0xff]  }
 0x194   : > { %v780_v48 = vmax.f32 %v622_v45, 0.0  ;;  %v4495_v46 = vld [vmem:[#allocation8 + $0x218] sm:$0xff]  }
 0x195   : > { %v626_v49 = vpop.f32.mrf.mxu0 }
 0x196   : > { %907 = vst [vmem:[#allocation2 + $0x98] sm:$0xff] %v780_v48  ;;  %v627_v51 = vadd.f32 %v5102_v47, %v626_v49  ;;  %v1017_v53 = vld [vmem:[#allocation2 + $0x81] sm:$0xff]  ;;  %v4549_v27 = vpack.c.bf16 %v780_v48, %v779_v42  ;;  %v4480_v42 = vld [vmem:[#allocation8 + $0xa8] sm:$0xff]  }
 0x197   : > { %v4201_v55 = vpop.f32.mrf.mxu0  ;;  %v5200_v57 = vpack.c.bf16 %v1017_v53, %v1016_v52 }
 0x198   : > { %v781_v58 = vmax.f32 %v627_v51, 0.0  ;;  %v1206_v51 = vld [vmem:[#allocation2 + $0x6a] sm:$0xff] }
 0x199   : > { %v629_v0 = vpop.f32.mrf.mxu0  ;;  %2047 = vmatprep.mubr.bf16.mxu0 %v5200_v57 }
 0x19a   : > { %v854_v61 = vsel %vm824_vm2, %v781_v58, 0.0  ;;  %v5206_v62 = vadd.f32 %v5102_v47, %v629_v0  ;;  %4547 = vmatmul.mubr.msk.bf16.gmra.mxu0 %vm5145_vm4, %v4546_v1  ;;  %v1205_v58 = vld [vmem:[#allocation2 + $0x62] sm:$0xff] }
 0x19b   : > { %908 = vst [vmem:[#allocation2 + $0xa0] sm:$0xff] %v854_v61  ;;  %v4202_v2 = vpop.f32.mrf.mxu0  ;;  %2329 = vmatprep.mubr.bf16.mxu0 %v1231_v60  ;;  %v5256_v60 = vpack.c.bf16 %v1206_v51, %v1205_v58  ;;  %v4498_v61 = vld [vmem:[#allocation8 + $0x210] sm:$0xff]  }
 0x19c   : > { %v782_v3 = vmax.f32 %v5206_v62, 0.0 }
 0x19d   : > { %v634_v4 = vpop.f32.mrf.mxu0  ;;  %v1018_v16 = vld [vmem:[#allocation2 + $0x91] sm:$0xff] }
 0x19e   : > { %v855_v5 = vsel %vm819_vm1, %v782_v3, 0.0  ;;  %v5216_v6 = vadd.f32 %v5102_v47, %v634_v4 }
 0x19f   : > { %909 = vst [vmem:[#allocation2 + $0xa8] sm:$0xff] %v855_v5  ;;  %v4205_v8 = vpop.f32.mrf.mxu0 }
 0x1a0   : > { %v783_v9 = vmax.f32 %v5216_v6, 0.0  ;;  %v4499_v6 = vld [vmem:[#allocation8 + $0x208] sm:$0xff]  }
 0x1a1   : > { %v637_v12 = vpop.f32.mrf.mxu0 }
 0x1a2   : > { %910 = vst [vmem:[#allocation2 + $0xb0] sm:$0xff] %v783_v9  ;;  %v638_v15 = vadd.f32 %v5102_v47, %v637_v12  ;;  %2330 = vmatmul.mubr.bf16.vlgmr.msra.gmra.mxu0 %v5135_v29  ;;  %v1019_v17 = vld [vmem:[#allocation2 + $0x99] sm:$0xff]  ;;  %v4552_v4 = vpack.c.bf16 %v783_v9, %v782_v3  ;;  %v1208_v9 = vld [vmem:[#allocation2 + $0x82] sm:$0xff] }
 0x1a3   : > { %v4206_v18 = vpop.f32.mrf.mxu0  ;;  %2337 = vmatprep.mubr.bf16.mxu0 %v5219_v13  ;;  %v5226_v19 = vpack.c.bf16 %v1019_v17, %v1018_v16  ;;  %4268 = vmatpush3.bf16.msra.mxu0 %v5178_v22  ;;  %v4486_v12 = vld [vmem:[#allocation8 + $0x90] sm:$0xff]   ;;  %v4487_v17 = vld [vmem:[#allocation8 + $0xc8] sm:$0xff]  }
 0x1a4   : > { %v784_v21 = vmax.f32 %v638_v15, 0.0  ;;  %4269 = vmatprep.subr.bf16.mxu0 %v4490_v11  ;;  %v1207_v16 = vld [vmem:[#allocation2 + $0x7a] sm:$0xff] }
 0x1a5   : > { %v642_v25 = vpop.f32.mrf.mxu0  ;;  %2055 = vmatprep.mubr.bf16.mxu1 %v5226_v19 }
 0x1a6   : > { %v857_v29 = vsel %vm824_vm2, %v784_v21, 0.0  ;;  %v5233_v26 = vadd.f32 %v5102_v47, %v642_v25  ;;  %4550 = vmatmul.mubr.msk.bf16.vlgmr.msra.gmra.mxu1 %vm5145_vm4, %v4549_v27  ;;  %v4500_v21 = vld [vmem:[#allocation8 + $0x200] sm:$0xff]  }
 0x1a7   : > { %911 = vst [vmem:[#allocation2 + $0xb8] sm:$0xff] %v857_v29  ;;  %v4209_v22 = vpop.f32.mrf.mxu0  ;;  %3672 = vmatpush3.bf16.msra.mxu1 %v4476_v20  ;;  %4270 = vmatpush3.bf16.msra.mxu0 %v4490_v11  ;;  %v5280_v20 = vpack.c.bf16 %v1208_v9, %v1207_v16 }
 0x1a8   : > { %v785_v31 = vmax.f32 %v5233_v26, 0.0  ;;  %3673 = vmatprep.subr.bf16.mxu1 %v4477_v23  ;;  %4271 = vmatprep.subr.bf16.mxu0 %v4491_v24 }
 0x1a9   : > { %v645_v35 = vpop.f32.mrf.mxu0 }
 0x1aa   : > { %v858_v39 = vsel %vm819_vm1, %v785_v31, 0.0  ;;  %v5245_v40 = vadd.f32 %v5102_v47, %v645_v35  ;;  %2338 = vmatmul.mubr.bf16.gmra.mxu0 %v5156_v56  ;;  %v1020_v56 = vld [vmem:[#allocation2 + $0xa9] sm:$0xff] }
 0x1ab   : > { %912 = vst [vmem:[#allocation2 + $0xc0] sm:$0xff] %v858_v39  ;;  %v4210_v41 = vpop.f32.mrf.mxu0  ;;  %2345 = vmatprep.mubr.bf16.mxu0 %v5238_v37  ;;  %3674 = vmatpush3.bf16.msra.mxu1 %v4478_v30  ;;  %v4492_v30 = vld [vmem:[#allocation8 + $0xc0] sm:$0xff]  }
 0x1ac   : > { %v786_v43 = vmax.f32 %v5245_v40, 0.0  ;;  %3675 = vmatprep.subr.bf16.mxu1 %v4479_v33  ;;  %4272 = vmatpush3.bf16.msra.mxu0 %v4491_v24  ;;  %v4493_v41 = vld [vmem:[#allocation8 + $0x80] sm:$0xff]  }
 0x1ad   : > { %v650_v45 = vpop.f32.mrf.mxu0  ;;  %4273 = vmatprep.subr.bf16.mxu0 %v4494_v38 }
 0x1ae   : > { %913 = vst [vmem:[#allocation2 + $0xc8] sm:$0xff] %v786_v43  ;;  %v651_v48 = vadd.f32 %v5102_v47, %v650_v45  ;;  %v1021_v49 = vld [vmem:[#allocation2 + $0xb1] sm:$0xff]  ;;  %v4555_v35 = vpack.c.bf16 %v786_v43, %v785_v31  ;;  %v4496_v45 = vld [vmem:[#allocation8 + $0x1f8] sm:$0xff]  }
 0x1af   : > { %v4213_v52 = vpop.f32.mrf.mxu0  ;;  %v5253_v53 = vpack.c.bf16 %v1021_v49, %v1020_v56  ;;  %3676 = vmatpush3.bf16.msra.mxu1 %v4480_v42 }
 0x1b0   : > { %v787_v55 = vmax.f32 %v651_v48, 0.0  ;;  %3677 = vmatprep.subr.bf16.mxu1 %v4481_v44  ;;  %4274 = vmatpush3.bf16.msra.mxu0 %v4494_v38  ;;  %v1210_v38 = vld [vmem:[#allocation2 + $0x9a] sm:$0xff]  ;;  %v1209_v44 = vld [vmem:[#allocation2 + $0x92] sm:$0xff] }
 0x1b1   : > { %v653_v0 = vpop.f32.mrf.mxu0  ;;  %2063 = vmatprep.mubr.bf16.mxu1 %v5253_v53  ;;  %4275 = vmatprep.subr.bf16.mxu0 %v4495_v46  ;;  %v5302_v48 = vpack.c.bf16 %v1210_v38, %v1209_v44 }
 0x1b2   : > { %v860_v1 = vsel %vm824_vm2, %v787_v55, 0.0  ;;  %v5261_v2 = vadd.f32 %v5102_v47, %v653_v0  ;;  %4553 = vmatmul.mubr.msk.bf16.gmra.mxu1 %vm5145_vm4, %v4552_v4  ;;  %2346 = vmatmul.mubr.bf16.gmra.mxu0 %v5170_v14  ;;  %v1211_v0 = vld [vmem:[#allocation2 + $0xaa] sm:$0xff] }
 0x1b3   : > { %914 = vst [vmem:[#allocation2 + $0xd0] sm:$0xff] %v860_v1  ;;  %v4214_v5 = vpop.f32.mrf.mxu0  ;;  %2353 = vmatprep.mubr.bf16.mxu0 %v5256_v60  ;;  %3678 = vmatpush3.bf16.msra.mxu1 %v4482_v54  ;;  %v1212_v54 = vld [vmem:[#allocation2 + $0xb2] sm:$0xff] }
 0x1b4   : > { %v788_v8 = vmax.f32 %v5261_v2, 0.0  ;;  %3679 = vmatprep.subr.bf16.mxu1 %v4483_v59  ;;  %4276 = vmatpush3.bf16.msra.mxu0 %v4495_v46 }
 0x1b5   : > { %v658_v62 = vpop.f32.mrf.mxu0  ;;  %4277 = vmatprep.subr.bf16.mxu0 %v4498_v61  ;;  %v1022_v24 = vld [vmem:[#allocation2 + $0xc1] sm:$0xff] }
 0x1b6   : > { %v861_v3 = vsel %vm819_vm1, %v788_v8, 0.0  ;;  %v5277_v14 = vadd.f32 %v5102_v47, %v658_v62  ;;  %v1213_v9 = vld [vmem:[#allocation2 + $0xc2] sm:$0xff] }
 0x1b7   : > { %915 = vst [vmem:[#allocation2 + $0xd8] sm:$0xff] %v861_v3  ;;  %v4217_v11 = vpop.f32.mrf.mxu0  ;;  %3680 = vmatpush3.bf16.msra.mxu1 %v4484_v7 }
 0x1b8   : > { %v789_v15 = vmax.f32 %v5277_v14, 0.0  ;;  %3681 = vmatprep.subr.bf16.mxu1 %v4485_v10  ;;  %4278 = vmatpush3.bf16.msra.mxu0 %v4498_v61  ;;  %v5313_v61 = vpack.c.bf16 %v1212_v54, %v1211_v0 }
 0x1b9   : > { %v661_v18 = vpop.f32.mrf.mxu0  ;;  %4279 = vmatprep.subr.bf16.mxu0 %v4499_v6 }
 0x1ba   : > { %916 = vst [vmem:[#allocation2 + $0xe0] sm:$0xff] %v789_v15  ;;  %v662_v23 = vadd.f32 %v5102_v47, %v661_v18  ;;  %2354 = vmatmul.mubr.bf16.gmra.mxu0 %v5185_v34  ;;  %v1023_v25 = vld [vmem:[#allocation2 + $0xc9] sm:$0xff]  ;;  %v4558_v5 = vpack.c.bf16 %v789_v15, %v788_v8 }
 0x1bb   : > { %v4218_v29 = vpop.f32.mrf.mxu0  ;;  %2361 = vmatprep.mubr.bf16.mxu0 %v5280_v20  ;;  %v5287_v27 = vpack.c.bf16 %v1023_v25, %v1022_v24  ;;  %3682 = vmatpush3.bf16.msra.mxu1 %v4486_v12  ;;  %v1214_v3 = vld [vmem:[#allocation2 + $0xca] sm:$0xff] }
 0x1bc   : > { %v790_v22 = vmax.f32 %v662_v23, 0.0  ;;  %3683 = vmatprep.subr.bf16.mxu1 %v4487_v17  ;;  %4280 = vmatpush3.bf16.msra.mxu0 %v4499_v6  ;;  %v5332_v12 = vpack.c.bf16 %v1214_v3, %v1213_v9 }
 0x1bd   : > { %v666_v32 = vpop.f32.mrf.mxu0  ;;  %2071 = vmatprep.mubr.bf16.mxu1 %v5287_v27  ;;  %4281 = vmatprep.subr.bf16.mxu0 %v4500_v21 }
 0x1be   : > { %v863_v34 = vsel %vm824_vm2, %v790_v22, 0.0  ;;  %v5293_v33 = vadd.f32 %v5102_v47, %v666_v32  ;;  %4556 = vmatmul.mubr.msk.bf16.gmra.mxu1 %vm5145_vm4, %v4555_v35 }
 0x1bf   : > { %917 = vst [vmem:[#allocation2 + $0xe8] sm:$0xff] %v863_v34  ;;  %v4221_v39 = vpop.f32.mrf.mxu0  ;;  %3684 = vmatpush3.bf16.msra.mxu1 %v4488_v28 }
 0x1c0   : > { %v791_v42 = vmax.f32 %v5293_v33, 0.0  ;;  %3685 = vmatprep.subr.bf16.mxu1 %v4492_v30  ;;  %4282 = vmatpush3.bf16.msra.mxu0 %v4500_v21 }
 0x1c1   : > { %v669_v46 = vpop.f32.mrf.mxu0  ;;  %v1024_v51 = vld [vmem:[#allocation2 + $0xd9] sm:$0xff] }
 0x1c2   : > { %v864_v26 = vsel %vm819_vm1, %v791_v42, 0.0  ;;  %v670_v31 = vadd.f32 %v5102_v47, %v669_v46  ;;  %2362 = vmatmul.mubr.bf16.gmra.mxu0 %v5200_v57  ;;  %v1215_v30 = vld [vmem:[#allocation2 + $0xda] sm:$0xff] }
 0x1c3   : > { %918 = vst [vmem:[#allocation2 + $0xf0] sm:$0xff] %v864_v26  ;;  %v4222_v40 = vpop.f32.mrf.mxu0  ;;  %2369 = vmatprep.mubr.bf16.mxu0 %v5302_v48  ;;  %3686 = vmatpush3.bf16.msra.mxu1 %v4493_v41 }
 0x1c4   : > { %v792_v43 = vmax.f32 %v670_v31, 0.0  ;;  %3895 = vmatprep.subr.bf16.mxu1 %v4496_v45 }
 0x1c5   : > { %v674_v56 = vpop.f32.mrf.mxu0 }
 0x1c6   : > { %919 = vst [vmem:[#allocation2 + $0xf8] sm:$0xff] %v792_v43  ;;  %v675_v49 = vadd.f32 %v5102_v47, %v674_v56  ;;  %v1025_v52 = vld [vmem:[#allocation2 + $0xe1] sm:$0xff]  ;;  %v4561_v29 = vpack.c.bf16 %v792_v43, %v791_v42 }
 0x1c7   : > { %v4225_v55 = vpop.f32.mrf.mxu0  ;;  %v5310_v58 = vpack.c.bf16 %v1025_v52, %v1024_v51 }
 0x1c8   : > { %v793_v59 = vmax.f32 %v675_v49, 0.0 }
 0x1c9   : > { %v677_v57 = vpop.f32.mrf.mxu0  ;;  %2079 = vmatprep.mubr.bf16.mxu1 %v5310_v58 }
 0x1ca   : > { %v866_v1 = vsel %vm824_vm2, %v793_v59, 0.0  ;;  %v5318_v4 = vadd.f32 %v5102_v47, %v677_v57  ;;  %4559 = vmatmul.mubr.msk.bf16.gmra.mxu1 %vm5145_vm4, %v4558_v5  ;;  %2370 = vmatmul.mubr.bf16.gmra.mxu0 %v5226_v19 }
 0x1cb   : > { %920 = vst [vmem:[#allocation2 + $0x100] sm:$0xff] %v866_v1  ;;  %v4226_v7 = vpop.f32.mrf.mxu0  ;;  %2377 = vmatprep.mubr.bf16.mxu0 %v5313_v61 }
 0x1cc   : > { %v794_v10 = vmax.f32 %v5318_v4, 0.0 }
 0x1cd   : > { %v682_v62 = vpop.f32.mrf.mxu0  ;;  %v1026_v15 = vld [vmem:[#allocation2 + $0xf1] sm:$0xff] }
 0x1ce   : > { %v867_v6 = vsel %vm819_vm1, %v794_v10, 0.0  ;;  %v683_v2 = vadd.f32 %v5102_v47, %v682_v62  ;;  %v1217_v43 = vld [vmem:[#allocation2 + $0xf2] sm:$0xff] }
 0x1cf   : > { %921 = vst [vmem:[#allocation2 + $0x108] sm:$0xff] %v867_v6  ;;  %v4229_v8 = vpop.f32.mrf.mxu0 }
 0x1d0   : > { %v795_v14 = vmax.f32 %v683_v2, 0.0 }
 0x1d1   : > { %v685_v11 = vpop.f32.mrf.mxu0 }
 0x1d2   : > { %922 = vst [vmem:[#allocation2 + $0x110] sm:$0xff] %v795_v14  ;;  %v686_v19 = vadd.f32 %v5102_v47, %v685_v11  ;;  %2378 = vmatmul.mubr.bf16.gmra.mxu0 %v5253_v53  ;;  %v1027_v16 = vld [vmem:[#allocation2 + $0xf9] sm:$0xff]  ;;  %v1216_v53 = vld [vmem:[#allocation2 + $0xe2] sm:$0xff]  ;;  %v4564_v52 = vpack.c.bf16 %v795_v14, %v794_v10 }
 0x1d3   : > { %v4230_v17 = vpop.f32.mrf.mxu0  ;;  %2385 = vmatprep.mubr.bf16.mxu0 %v5332_v12  ;;  %v1048_v18 = vpack.c.bf16 %v1027_v16, %v1026_v15  ;;  %v5345_v34 = vpack.c.bf16 %v1216_v53, %v1215_v30  ;;  %v1218_v46 = vld [vmem:[#allocation2 + $0xfa] sm:$0xff] }
 0x1d4   : > { %v796_v21 = vmax.f32 %v686_v19, 0.0  ;;  %v5353_v49 = vpack.c.bf16 %v1218_v46, %v1217_v43 }
 0x1d5   : > { %v690_v23 = vpop.f32.mrf.mxu0  ;;  %2087 = vmatprep.mubr.bf16.mxu1 %v1048_v18 }
 0x1d6   : > { %v869_v24 = vsel %vm824_vm2, %v796_v21, 0.0  ;;  %v5340_v25 = vadd.f32 %v5102_v47, %v690_v23  ;;  %4562 = vmatmul.mubr.msk.bf16.gmra.mxu1 %vm5145_vm4, %v4561_v29 }
 0x1d7   : > { %923 = vst [vmem:[#allocation2 + $0x118] sm:$0xff] %v869_v24  ;;  %v4233_v28 = vpop.f32.mrf.mxu0 }
 0x1d8   : > { %v797_v22 = vmax.f32 %v5340_v25, 0.0 }
 0x1d9   : > { %v693_v32 = vpop.f32.mrf.mxu0  ;;  %v1028_v44 = vld [vmem:[#allocation2 + $0x109] sm:$0xff] }
 0x1da   : > { %v870_v33 = vsel %vm819_vm1, %v797_v22, 0.0  ;;  %v694_v35 = vadd.f32 %v5102_v47, %v693_v32  ;;  %2386 = vmatmul.mubr.bf16.gmra.mxu0 %v5287_v27  ;;  %v1219_v7 = vld [vmem:[#allocation2 + $0x10a] sm:$0xff] }
 0x1db   : > { %924 = vst [vmem:[#allocation2 + $0x120] sm:$0xff] %v870_v33  ;;  %v4234_v38 = vpop.f32.mrf.mxu0  ;;  %2393 = vmatprep.mubr.bf16.mxu0 %v5345_v34 }
 0x1dc   : > { %v798_v39 = vmax.f32 %v694_v35, 0.0 }
 0x1dd   : > { %v698_v41 = vpop.f32.mrf.mxu0 }
 0x1de   : > { %925 = vst [vmem:[#allocation2 + $0x128] sm:$0xff] %v798_v39  ;;  %v699_v42 = vadd.f32 %v5102_v47, %v698_v41  ;;  %v1029_v45 = vld [vmem:[#allocation2 + $0x111] sm:$0xff]  ;;  %v4567_v15 = vpack.c.bf16 %v798_v39, %v797_v22 }
 0x1df   : > { %v4237_v26 = vpop.f32.mrf.mxu0  ;;  %v1049_v31 = vpack.c.bf16 %v1029_v45, %v1028_v44  ;;  %v1220_v1 = vld [vmem:[#allocation2 + $0x112] sm:$0xff] }
 0x1e0   : > { %v799_v40 = vmax.f32 %v699_v42, 0.0  ;;  %v5368_v62 = vpack.c.bf16 %v1220_v1, %v1219_v7 }
 0x1e1   : > { %v701_v56 = vpop.f32.mrf.mxu0  ;;  %2095 = vmatprep.mubr.bf16.mxu1 %v1049_v31 }
 0x1e2   : > { %v872_v27 = vsel %vm824_vm2, %v799_v40, 0.0  ;;  %v5358_v51 = vadd.f32 %v5102_v47, %v701_v56  ;;  %4565 = vmatmul.mubr.msk.bf16.gmra.mxu1 %vm5145_vm4, %v4564_v52  ;;  %2394 = vmatmul.mubr.bf16.gmra.mxu0 %v5310_v58 }
 0x1e3   : > { %926 = vst [vmem:[#allocation2 + $0x130] sm:$0xff] %v872_v27  ;;  %v4238_v54 = vpop.f32.mrf.mxu0  ;;  %2401 = vmatprep.mubr.bf16.mxu0 %v5353_v49 }
 0x1e4   : > { %v800_v55 = vmax.f32 %v5358_v51, 0.0 }
 0x1e5   : > { %v706_v59 = vpop.f32.mrf.mxu0  ;;  %v1030_v6 = vld [vmem:[#allocation2 + $0x121] sm:$0xff] }
 0x1e6   : > { %v873_v0 = vsel %vm819_vm1, %v800_v55, 0.0  ;;  %v707_v57 = vadd.f32 %v5102_v47, %v706_v59  ;;  %v1221_v21 = vld [vmem:[#allocation2 + $0x122] sm:$0xff] }
 0x1e7   : > { %927 = vst [vmem:[#allocation2 + $0x138] sm:$0xff] %v873_v0  ;;  %v4241_v4 = vpop.f32.mrf.mxu0 }
 0x1e8   : > { %v801_v5 = vmax.f32 %v707_v57, 0.0 }
 0x1e9   : > { %v709_v10 = vpop.f32.mrf.mxu0 }
 0x1ea   : > { %928 = vst [vmem:[#allocation2 + $0x140] sm:$0xff] %v801_v5  ;;  %v710_v58 = vadd.f32 %v5102_v47, %v709_v10  ;;  %2402 = vmatmul.mubr.bf16.gmra.mxu0 %v1048_v18  ;;  %v1031_v2 = vld [vmem:[#allocation2 + $0x129] sm:$0xff] }
 0x1eb   : > { %v4242_v3 = vpop.f32.mrf.mxu0  ;;  %2409 = vmatprep.mubr.bf16.mxu0 %v5368_v62  ;;  %v1050_v8 = vpack.c.bf16 %v1031_v2, %v1030_v6  ;;  %v1222_v16 = vld [vmem:[#allocation2 + $0x12a] sm:$0xff] }
 0x1ec   : > { %v802_v14 = vmax.f32 %v710_v58, 0.0  ;;  %v5380_v24 = vpack.c.bf16 %v1222_v16, %v1221_v21 }
 0x1ed   : > { %v714_v9 = vpop.f32.mrf.mxu0  ;;  %2103 = vmatprep.mubr.bf16.mxu1 %v1050_v8 }
 0x1ee   : > { %v875_v11 = vsel %vm824_vm2, %v802_v14, 0.0  ;;  %v5375_v19 = vadd.f32 %v5102_v47, %v714_v9  ;;  %4568 = vmatmul.mubr.msk.bf16.gmra.mxu1 %vm5145_vm4, %v4567_v15 }
 0x1ef   : > { %929 = vst [vmem:[#allocation2 + $0x148] sm:$0xff] %v875_v11  ;;  %v4245_v17 = vpop.f32.mrf.mxu0 }
 0x1f0   : > { %v803_v18 = vmax.f32 %v5375_v19, 0.0 }
 0x1f1   : > { %v717_v23 = vpop.f32.mrf.mxu0  ;;  %v1032_v32 = vld [vmem:[#allocation2 + $0x139] sm:$0xff] }
 0x1f2   : > { %v876_v25 = vsel %vm819_vm1, %v803_v18, 0.0  ;;  %v718_v29 = vadd.f32 %v5102_v47, %v717_v23  ;;  %2410 = vmatmul.mubr.bf16.gmra.mxu0 %v1049_v31  ;;  %v1223_v42 = vld [vmem:[#allocation2 + $0x13a] sm:$0xff]  ;;  %v4570_v31 = vpack.c.bf16 %v801_v5, %v800_v55 }
 0x1f3   : > { %930 = vst [vmem:[#allocation2 + $0x150] sm:$0xff] %v876_v25  ;;  %v4246_v53 = vpop.f32.mrf.mxu0  ;;  %2417 = vmatprep.mubr.bf16.mxu0 %v5380_v24  ;;  %v1104_v23 = vld [vmem:[#allocation2 + $0x20] sm:$0xff] }
 0x1f4   : > { %v5386_v28 = vmax.f32 %v718_v29, 0.0 }
 0x1f5   : > { %v722_v22 = vpop.f32.mrf.mxu0 }
 0x1f6   : > { %931 = vst [vmem:[#allocation2 + $0x158] sm:$0xff] %v5386_v28  ;;  %v723_v30 = vadd.f32 %v5102_v47, %v722_v22  ;;  %v1033_v33 = vld [vmem:[#allocation2 + $0x141] sm:$0xff] }
 0x1f7   : > { %v1224_v35 = vld [vmem:[#allocation2 + $0x142] sm:$0xff]  ;;  %v4249_v38 = vpop.f32.mrf.mxu0  ;;  %v1051_v39 = vpack.c.bf16 %v1033_v33, %v1032_v32 }
 0x1f8   : > { %v805_v41 = vmax.f32 %v723_v30, 0.0  ;;  %v5390_v45 = vpack.c.bf16 %v1224_v35, %v1223_v42  ;;  %v1103_v35 = vld [vmem:[#allocation2 + $0x18] sm:$0xff] }
 0x1f9   : > { %v725_v44 = vpop.f32.mrf.mxu0  ;;  %2111 = vmatprep.mubr.bf16.mxu1 %v1051_v39  ;;  %v1135_v38 = vpack.c.bf16 %v1104_v23, %v1103_v35  ;;  %v4508_v35 = vld [vmem:[#allocation8 + $0x198] sm:$0xff]  }
 0x1fa   : > { %v878_v46 = vsel %vm824_vm2, %v805_v41, 0.0  ;;  %v5395_v26 = vadd.f32 %v5102_v47, %v725_v44  ;;  %4571 = vmatmul.mubr.msk.bf16.gmra.mxu1 %vm5145_vm4, %v4570_v31  ;;  %2418 = vmatmul.mubr.bf16.gmra.mxu0 %v1050_v8  ;;  %v4573_v8 = vpack.c.bf16 %v5386_v28, %v803_v18 }
 0x1fb   : > { %932 = vst [vmem:[#allocation2 + $0x160] sm:$0xff] %v878_v46  ;;  %v4250_v40 = vpop.f32.mrf.mxu0  ;;  %2425 = vmatprep.mubr.bf16.mxu0 %v5390_v45  ;;  %v1054_v46 = vld [vmem:[#allocation2 + $0x2] sm:$0xff] }
 0x1fc   : > { %v806_v43 = vmax.f32 %v5395_v26, 0.0  ;;  %v1055_v26 = vld [vmem:[#allocation2 + $0xa] sm:$0xff] }
 0x1fd   : > { %v730_v56 = vpop.f32.mrf.mxu0  ;;  %v1034_v59 = vld [vmem:[#allocation2 + $0x151] sm:$0xff]  ;;  %v1086_v40 = vpack.c.bf16 %v1055_v26, %v1054_v46  ;;  %v4510_v26 = vld [vmem:[#allocation8 + $0x190] sm:$0xff]  }
 0x1fe   : > { %v879_v27 = vsel %vm819_vm1, %v806_v43, 0.0  ;;  %v731_v51 = vadd.f32 %v5102_v47, %v730_v56  ;;  %v1225_v1 = vld [vmem:[#allocation2 + $0x152] sm:$0xff] }
 0x1ff   : > { %933 = vst [vmem:[#allocation2 + $0x168] sm:$0xff] %v879_v27  ;;  %v4253_v52 = vpop.f32.mrf.mxu0  ;;  %v1106_v56 = vld [vmem:[#allocation2 + $0x38] sm:$0xff]  ;;  %v4497_v27 = vld [vmem:[#allocation8 + $0x1b8] sm:$0xff]  }
 0x200   : > { %v807_v54 = vmax.f32 %v731_v51, 0.0  ;;  %v1105_v51 = vld [vmem:[#allocation2 + $0x30] sm:$0xff] }
 0x201   : > { %v733_v55 = vpop.f32.mrf.mxu0 }
 0x202   : > { %934 = vst [vmem:[#allocation2 + $0x170] sm:$0xff] %v807_v54  ;;  %v734_v0 = vadd.f32 %v5102_v47, %v733_v55  ;;  %2426 = vmatmul.mubr.bf16.gmra.mxu0 %v1051_v39  ;;  %v1035_v57 = vld [vmem:[#allocation2 + $0x159] sm:$0xff]  ;;  %v5433_v42 = vpack.c.bf16 %v807_v54, %v806_v43  ;;  %v5438_v54 = vpack.c.bf16 %v1106_v56, %v1105_v51 }
 0x203   : > { %v1226_v4 = vld [vmem:[#allocation2 + $0x15a] sm:$0xff]  ;;  %v4254_v5 = vpop.f32.mrf.mxu0  ;;  %v1052_v7 = vpack.c.bf16 %v1035_v57, %v1034_v59 }
 0x204   : > { %v5405_v10 = vpack.c.bf16 %v1226_v4, %v1225_v1  ;;  %v808_v58 = vmax.f32 %v734_v0, 0.0  ;;  %v4531_v47 = vld [vmem:[%s6014_s2] ss:$0 sm:$0xff]  ;;  %v4512_v51 = vld [vmem:[#allocation8 + $0x188] sm:$0xff]  }
 0x205   : > { %v738_v6 = vpop.f32.mrf.mxu0  ;;  %2119 = vmatprep.mubr.bf16.mxu1 %v1052_v7  ;;  %v4501_v43 = vld [vmem:[#allocation8 + $0x1f0] sm:$0xff]  }
 0x206   : > { %2433 = vmatprep.mubr.bf16.mxu0 %v5405_v10  ;;  %v881_v2 = vsel %vm824_vm2, %v808_v58, 0.0  ;;  %v5413_v3 = vadd.f32 %v4531_v47, %v738_v6  ;;  %4574 = vmatmul.mubr.msk.bf16.gmra.mxu1 %vm5145_vm4, %v4573_v8  ;;  %v4503_v58 = vld [vmem:[#allocation8 + $0x1e8] sm:$0xff]   ;;  %v1112_v56 = vld [vmem:[#allocation2 + $0x80] sm:$0xff] }
 0x207   : > { %935 = vst [vmem:[#allocation2 + $0x178] sm:$0xff] %v881_v2  ;;  %v4257_v14 = vpop.f32.mrf.mxu0  ;;  %v1057_v2 = vld [vmem:[#allocation2 + $0x22] sm:$0xff]  ;;  %v1056_v8 = vld [vmem:[#allocation2 + $0x1a] sm:$0xff] }
 0x208   : > { %v809_v9 = vmax.f32 %v5413_v3, 0.0 }
 0x209   : > { %v741_v11 = vpop.f32.mrf.mxu0  ;;  %v1036_v21 = vld [vmem:[#allocation2 + $0x169] sm:$0xff] }
 0x20a   : > { %v882_v19 = vsel %vm819_vm1, %v809_v9, 0.0  ;;  %v5423_v15 = vadd.f32 %v4531_v47, %v741_v11  ;;  %2434 = vmatmul.mubr.bf16.gmra.mxu0 %v1052_v7  ;;  %v1227_v53 = vld [vmem:[#allocation2 + $0x16a] sm:$0xff]  ;;  %v4502_v7 = vld [vmem:[#allocation8 + $0x1b0] sm:$0xff]   ;;  %v4504_v11 = vld [vmem:[#allocation8 + $0x1a8] sm:$0xff]  }
 0x20b   : > { %936 = vst [vmem:[#allocation2 + $0x180] sm:$0xff] %v882_v19  ;;  %v4258_v16 = vpop.f32.mrf.mxu0  ;;  %v1087_v19 = vpack.c.bf16 %v1057_v2, %v1056_v8 }
 0x20c   : > { %v810_v17 = vmax.f32 %v5423_v15, 0.0  ;;  %v1107_v16 = vld [vmem:[#allocation2 + $0x48] sm:$0xff] }
 0x20d   : > { %v746_v18 = vpop.f32.mrf.mxu0 }
 0x20e   : > { %937 = vst [vmem:[#allocation2 + $0x188] sm:$0xff] %v810_v17  ;;  %v747_v25 = vadd.f32 %v4531_v47, %v746_v18  ;;  %v1037_v29 = vld [vmem:[#allocation2 + $0x171] sm:$0xff] }
 0x20f   : > { %v1228_v22 = vld [vmem:[#allocation2 + $0x172] sm:$0xff]  ;;  %v1053_v30 = vpack.c.bf16 %v1037_v29, %v1036_v21  ;;  %v4261_v32 = vpop.f32.mrf.mxu0 }
 0x210   : > { %v5428_v50 = vpack.c.bf16 %v1228_v22, %v1227_v53  ;;  %v811_v33 = vmax.f32 %v747_v25, 0.0  ;;  %v1108_v47 = vld [vmem:[#allocation2 + $0x50] sm:$0xff]  ;;  %v4507_v22 = vld [vmem:[#allocation8 + $0x1d8] sm:$0xff]  }
 0x211   : > { %2127 = vmatprep.mubr.bf16.mxu1 %v1053_v30  ;;  %v749_v39 = vpop.f32.mrf.mxu0  ;;  %v4505_v21 = vld [vmem:[#allocation8 + $0x1e0] sm:$0xff]   ;;  %v5447_v23 = vpack.c.bf16 %v1108_v47, %v1107_v16  ;;  %v1110_v32 = vld [vmem:[#allocation2 + $0x68] sm:$0xff] }
 0x212   : > { %2441 = vmatprep.mubr.bf16.mxu0 %v5428_v50  ;;  %v884_v41 = vsel %vm824_vm2, %v811_v33, 0.0  ;;  %4577 = vmatmul.mubr.msk.bf16.gmra.mxu1 %vm5145_vm4, %v5433_v42  ;;  %v4506_v53 = vld [vmem:[#allocation8 + $0x1a0] sm:$0xff]   ;;  %v1109_v39 = vld [vmem:[#allocation2 + $0x60] sm:$0xff] }
 0x213   : > { %2442 = vmatmul.mubr.bf16.gmra.mxu0 %v1053_v30  ;;  %938 = vst [vmem:[#allocation2 + $0x190] sm:$0xff] %v884_v41  ;;  %2168 = vmatprep.mubr.bf16.mxu1 %v1135_v38  ;;  %v4262_v44 = vpop.f32.mrf.mxu0  ;;  %v1059_v30 = vld [vmem:[#allocation2 + $0x3a] sm:$0xff]  ;;  %v1058_v33 = vld [vmem:[#allocation2 + $0x32] sm:$0xff] }
 0x214   : > { %v1088_v38 = vpack.c.bf16 %v1059_v30, %v1058_v33  ;;  %v4509_v41 = vld [vmem:[#allocation8 + $0x1d0] sm:$0xff]   ;;  %v5454_v44 = vpack.c.bf16 %v1110_v32, %v1109_v39  ;;  %v1118_v33 = vld [vmem:[#allocation2 + $0xc8] sm:$0xff] }
 0x215   : > { %v754_v31 = vpop.f32.mrf.mxu0  ;;  %v1229_v63 = vld [vmem:[#allocation2 + $0x182] sm:$0xff]  ;;  %v1067_v30 = vld [vmem:[#allocation2 + $0x9a] sm:$0xff] }
 0x216   : > { %v1181_v55 = vld [vmem:[#allocation2 + $0x181] sm:$0xff] }
 0x217   : > { %v4265_v52 = vpop.f32.mrf.mxu0 }
 0x219   : > { %v757_v59 = vpop.f32.mrf.mxu0 }
 0x21a   : > { %2169 = vmatmul.mubr.bf16.vlgmr.msra.gmra.mxu1 %v1086_v40  ;;  %v1230_v0 = vld [vmem:[#allocation2 + $0x18a] sm:$0xff] }
 0x21b   : > { %v1182_v57 = vld [vmem:[#allocation2 + $0x189] sm:$0xff]  ;;  %3896 = vmatpush3.bf16.msra.mxu1 %v4497_v27  ;;  %2176 = vmatprep.mubr.bf16.mxu1 %v5438_v54  ;;  %v5441_v1 = vpack.c.bf16 %v1230_v0, %v1229_v63  ;;  %v4266_v5 = vpop.f32.mrf.mxu0 }
 0x21c   : > { %v1198_v4 = vpack.c.bf16 %v1182_v57, %v1181_v55  ;;  %3897 = vmatprep.subr.bf16.mxu1 %v4501_v43  ;;  %v1060_v27 = vld [vmem:[#allocation2 + $0x4a] sm:$0xff]  ;;  %v1111_v55 = vld [vmem:[#allocation2 + $0x78] sm:$0xff]  ;;  %v1062_v5 = vld [vmem:[#allocation2 + $0x62] sm:$0xff] }
 0x21d   : > { %2449 = vmatprep.mubr.bf16.mxu0 %v5441_v1  ;;  %v3575_v6 = vpop.f32.mrf.mxu0  ;;  %v4513_v43 = vld [vmem:[#allocation8 + $0x1c0] sm:$0xff]   ;;  %v5463_v59 = vpack.c.bf16 %v1112_v56, %v1111_v55 }
 0x21e   : > { %2450 = vmatmul.mubr.bf16.gmra.mxu0 %v1198_v4  ;;  %v4514_v0 = vld [vmem:[#allocation8 + $0x180] sm:$0xff]   ;;  %v1114_v4 = vld [vmem:[#allocation2 + $0x98] sm:$0xff] }
 0x21f   : > { %4283 = vmatprep.mubr.bf16.mxu0 %v5219_v13  ;;  %v3576_v14 = vpop.f32.mrf.mxu0  ;;  %3898 = vmatpush3.bf16.msra.mxu1 %v4502_v7  ;;  %v1068_v56 = vld [vmem:[#allocation2 + $0xaa] sm:$0xff] }
 0x220   : > { %v5445_v18 = vadd.f32 %v3576_v14, %v3575_v6  ;;  %3899 = vmatprep.subr.bf16.mxu1 %v4503_v58  ;;  %v1113_v6 = vld [vmem:[#allocation2 + $0x90] sm:$0xff] }
 0x221   : > { %v3578_v25 = vpop.f32.mrf.mxu0  ;;  %v5472_v47 = vpack.c.bf16 %v1114_v4, %v1113_v6  ;;  %v1071_v4 = vld [vmem:[#allocation2 + $0xca] sm:$0xff] }
 0x222   : > { %2177 = vmatmul.mubr.bf16.gmra.mxu1 %v1087_v19  ;;  %v1064_v19 = vld [vmem:[#allocation2 + $0x7a] sm:$0xff]  ;;  %v1121_v6 = vld [vmem:[#allocation2 + $0xf0] sm:$0xff] }
 0x223   : > { %2184 = vmatprep.mubr.bf16.mxu1 %v5447_v23  ;;  %v3579_v29 = vpop.f32.mrf.mxu0  ;;  %3900 = vmatpush3.bf16.msra.mxu1 %v4504_v11 }
 0x224   : > { %v5450_v13 = vadd.f32 %v3579_v29, %v3578_v25  ;;  %3901 = vmatprep.subr.bf16.mxu1 %v4505_v21  ;;  %v1115_v21 = vld [vmem:[#allocation2 + $0xa8] sm:$0xff] }
 0x226   : > { %4284 = vmatmul.mubr.bf16.vlgmr.msra.gmra.mxu0 %v5238_v37  ;;  %v4511_v37 = vld [vmem:[#allocation8 + $0x1c8] sm:$0xff]  }
 0x227   : > { %4287 = vmatprep.mubr.bf16.mxu0 %v5256_v60  ;;  %3902 = vmatpush3.bf16.msra.mxu1 %v4506_v53  ;;  %v1061_v60 = vld [vmem:[#allocation2 + $0x52] sm:$0xff] }
 0x228   : > { %3903 = vmatprep.subr.bf16.mxu1 %v4507_v22  ;;  %v1089_v63 = vpack.c.bf16 %v1061_v60, %v1060_v27  ;;  %v1120_v60 = vld [vmem:[#allocation2 + $0xe0] sm:$0xff] }
 0x22a   : > { %v3581_v46 = vpop.f32.mrf.mxu0  ;;  %2185 = vmatmul.mubr.bf16.gmra.mxu1 %v1088_v38 }
 0x22b   : > { %2192 = vmatprep.mubr.bf16.mxu1 %v5454_v44  ;;  %3904 = vmatpush3.bf16.msra.mxu1 %v4508_v35  ;;  %v1066_v35 = vld [vmem:[#allocation2 + $0x92] sm:$0xff] }
 0x22c   : > { %v3582_v31 = vpop.f32.mrf.mxu0  ;;  %3905 = vmatprep.subr.bf16.mxu1 %v4509_v41  ;;  %v1092_v39 = vpack.c.bf16 %v1067_v30, %v1066_v35  ;;  %v1117_v41 = vld [vmem:[#allocation2 + $0xc0] sm:$0xff] }
 0x22d   : > { %v5457_v40 = vadd.f32 %v3582_v31, %v3581_v46  ;;  %v1069_v31 = vld [vmem:[#allocation2 + $0xb2] sm:$0xff] }
 0x22e   : > { %4288 = vmatmul.mubr.bf16.gmra.mxu0 %v5280_v20  ;;  %v5461_v52 = vpop.f32.mrf.mxu0 }
 0x22f   : > { %4291 = vmatprep.mubr.bf16.mxu0 %v5302_v48  ;;  %3906 = vmatpush3.bf16.msra.mxu1 %v4510_v26  ;;  %v1063_v48 = vld [vmem:[#allocation2 + $0x6a] sm:$0xff]  ;;  %v5488_v26 = vpack.c.bf16 %v1118_v33, %v1117_v41 }
 0x230   : > { %3907 = vmatprep.subr.bf16.mxu1 %v4511_v37  ;;  %v5466_v20 = vpop.f32.mrf.mxu0  ;;  %v1090_v58 = vpack.c.bf16 %v1063_v48, %v1062_v5  ;;  %v1122_v5 = vld [vmem:[#allocation2 + $0xf8] sm:$0xff] }
 0x232   : > { %2193 = vmatmul.mubr.bf16.gmra.mxu1 %v1089_v63  ;;  %v1119_v63 = vld [vmem:[#allocation2 + $0xd8] sm:$0xff] }
 0x233   : > { %2200 = vmatprep.mubr.bf16.mxu1 %v5463_v59  ;;  %3908 = vmatpush3.bf16.msra.mxu1 %v4512_v51  ;;  %v1093_v51 = vpack.c.bf16 %v1069_v31, %v1068_v56 }
 0x234   : > { %3909 = vmatprep.subr.bf16.mxu1 %v4513_v43  ;;  %v5495_v43 = vpack.c.bf16 %v1120_v60, %v1119_v63  ;;  %v4515_v63 = vld [vmem:[#allocation9 + $0x78] sm:$0xff]  }
 0x236   : > { %v3587_v57 = vpop.f32.mrf.mxu0  ;;  %4292 = vmatmul.mubr.bf16.gmra.mxu0 %v5313_v61  ;;  %v1065_v61 = vld [vmem:[#allocation2 + $0x82] sm:$0xff] }
 0x237   : > { %4295 = vmatprep.mubr.bf16.mxu0 %v5332_v12  ;;  %3910 = vmatpush3.bf16.msra.mxu1 %v4514_v0  ;;  %v1116_v12 = vld [vmem:[#allocation2 + $0xb0] sm:$0xff]  ;;  %v1091_v16 = vpack.c.bf16 %v1065_v61, %v1064_v19 }
 0x238   : > { %v3588_v7 = vpop.f32.mrf.mxu0  ;;  %v5479_v25 = vpack.c.bf16 %v1116_v12, %v1115_v21  ;;  %4031 = vmatprep.subr.bf16.mxu1 %v4515_v63 }
 0x239   : > { %v5470_v2 = vadd.f32 %v3588_v7, %v3587_v57  ;;  %v1070_v7 = vld [vmem:[#allocation2 + $0xc2] sm:$0xff] }
 0x23a   : > { %v3590_v8 = vpop.f32.mrf.mxu0  ;;  %2201 = vmatmul.mubr.bf16.gmra.mxu1 %v1090_v58  ;;  %v1094_v58 = vpack.c.bf16 %v1071_v4, %v1070_v7 }
 0x23b   : > { %2208 = vmatprep.mubr.bf16.mxu1 %v5472_v47 }
 0x23c   : > { %v3591_v14 = vpop.f32.mrf.mxu0 }
 0x23d   : > { %v5475_v11 = vadd.f32 %v3591_v14, %v3590_v8  ;;  %v5502_v8 = vpack.c.bf16 %v1122_v5, %v1121_v6 }
 0x23e   : > { %4296 = vmatmul.mubr.bf16.gmra.mxu0 %v5345_v34 }
 0x23f   : > { %4299 = vmatprep.mubr.bf16.mxu0 %v5353_v49 }
 0x242   : > { %v3593_v29 = vpop.f32.mrf.mxu0  ;;  %2209 = vmatmul.mubr.bf16.gmra.mxu1 %v1091_v16  ;;  %v1124_v16 = vld [vmem:[#allocation2 + $0x110] sm:$0xff] }
 0x243   : > { %2216 = vmatprep.mubr.bf16.mxu1 %v5479_v25 }
 0x244   : > { %v3594_v53 = vpop.f32.mrf.mxu0 }
 0x245   : > { %v5482_v22 = vadd.f32 %v3594_v53, %v3593_v29  ;;  %v1123_v29 = vld [vmem:[#allocation2 + $0x108] sm:$0xff] }
 0x246   : > { %v3596_v32 = vpop.f32.mrf.mxu0  ;;  %4300 = vmatmul.mubr.bf16.gmra.mxu0 %v5368_v62  ;;  %v5509_v30 = vpack.c.bf16 %v1124_v16, %v1123_v29 }
 0x247   : > { %4303 = vmatprep.mubr.bf16.mxu0 %v5380_v24 }
 0x248   : > { %v3597_v38 = vpop.f32.mrf.mxu0 }
 0x249   : > { %v5486_v46 = vadd.f32 %v3597_v38, %v3596_v32 }
 0x24a   : > { %2217 = vmatmul.mubr.bf16.gmra.mxu1 %v1092_v39  ;;  %v1126_v39 = vld [vmem:[#allocation2 + $0x128] sm:$0xff] }
 0x24b   : > { %2224 = vmatprep.mubr.bf16.mxu1 %v5488_v26 }
 0x24e   : > { %v3599_v37 = vpop.f32.mrf.mxu0  ;;  %4304 = vmatmul.mubr.bf16.gmra.mxu0 %v5390_v45 }
 0x24f   : > { %4307 = vmatprep.mubr.bf16.mxu0 %v5405_v10 }
 0x250   : > { %v3600_v27 = vpop.f32.mrf.mxu0 }
 0x251   : > { %v5493_v55 = vadd.f32 %v3600_v27, %v3599_v37  ;;  %v1125_v37 = vld [vmem:[#allocation2 + $0x120] sm:$0xff] }
 0x252   : > { %v3602_v0 = vpop.f32.mrf.mxu0  ;;  %2225 = vmatmul.mubr.bf16.gmra.mxu1 %v1093_v51  ;;  %v5519_v27 = vpack.c.bf16 %v1126_v39, %v1125_v37  ;;  %v5537_v39 = vld [vmem:[#allocation2 + $0x150] sm:$0xff] }
 0x253   : > { %2232 = vmatprep.mubr.bf16.mxu1 %v5495_v43 }
 0x254   : > { %v3603_v48 = vpop.f32.mrf.mxu0 }
 0x255   : > { %v5498_v57 = vadd.f32 %v3603_v48, %v3602_v0 }
 0x256   : > { %4308 = vmatmul.mubr.bf16.gmra.mxu0 %v5428_v50 }
 0x257   : > { %4311 = vmatprep.mubr.bf16.mxu0 %v5441_v1 }
 0x25a   : > { %v3605_v14 = vpop.f32.mrf.mxu0  ;;  %2233 = vmatmul.mubr.bf16.gmra.mxu1 %v1094_v58  ;;  %v1128_v58 = vld [vmem:[#allocation2 + $0x140] sm:$0xff] }
 0x25b   : > { %2240 = vmatprep.mubr.bf16.mxu1 %v5502_v8 }
 0x25c   : > { %v3606_v61 = vpop.f32.mrf.mxu0 }
 0x25d   : > { %v5505_v12 = vadd.f32 %v3606_v61, %v3605_v14  ;;  %v1127_v14 = vld [vmem:[#allocation2 + $0x138] sm:$0xff] }
 0x25e   : > { %v3608_v19 = vpop.f32.mrf.mxu0 }
 0x260   : > { %v3609_v21 = vpop.f32.mrf.mxu0 }
 0x261   : > { %v5507_v53 = vadd.f32 %v3609_v21, %v3608_v19  ;;  %v5529_v19 = vpack.c.bf16 %v1128_v58, %v1127_v14 }
 0x262   : > { %2241 = vmatmul.mubr.bf16.gmra.mxu1 %v5345_v34  ;;  %v3799_v1 = vpop.f32.mrf.mxu0 }
 0x263   : > { %2248 = vmatprep.mubr.bf16.mxu1 %v5509_v30 }
 0x264   : > { %v3800_v32 = vpop.f32.mrf.mxu0 }
 0x265   : > { %v5513_v33 = vadd.f32 %v3800_v32, %v3799_v1 }
 0x266   : > { %v3611_v35 = vpop.f32.mrf.mxu1  ;;  %v3802_v38 = vpop.f32.mrf.mxu0 }
 0x268   : > { %v3612_v41 = vpop.f32.mrf.mxu1  ;;  %v3803_v31 = vpop.f32.mrf.mxu0 }
 0x269   : > { %v5515_v60 = vadd.f32 %v3612_v41, %v3611_v35  ;;  %v5517_v56 = vadd.f32 %v3803_v31, %v3802_v38 }
 0x26a   : > { %v3614_v51 = vpop.f32.mrf.mxu1  ;;  %2249 = vmatmul.mubr.bf16.gmra.mxu1 %v5353_v49  ;;  %v3805_v34 = vpop.f32.mrf.mxu0 }
 0x26b   : > { %2256 = vmatprep.mubr.bf16.mxu1 %v5519_v27 }
 0x26c   : > { %v3615_v0 = vpop.f32.mrf.mxu1  ;;  %v3806_v48 = vpop.f32.mrf.mxu0 }
 0x26d   : > { %v5523_v4 = vadd.f32 %v3615_v0, %v3614_v51  ;;  %v5525_v5 = vadd.f32 %v3806_v48, %v3805_v34 }
 0x26e   : > { %v3808_v7 = vpop.f32.mrf.mxu0 }
 0x270   : > { %v3809_v6 = vpop.f32.mrf.mxu0 }
 0x271   : > { %v5527_v61 = vadd.f32 %v3809_v6, %v3808_v7 }
 0x272   : > { %v3617_v49 = vpop.f32.mrf.mxu1  ;;  %2257 = vmatmul.mubr.bf16.gmra.mxu1 %v5368_v62  ;;  %v3811_v16 = vpop.f32.mrf.mxu0  ;;  %v1148_v62 = vpack.c.bf16 %v5386_v28, %v5537_v39 }
 0x273   : > { %2264 = vmatprep.mubr.bf16.mxu1 %v5529_v19 }
 0x274   : > { %v3618_v21 = vpop.f32.mrf.mxu1  ;;  %v3812_v29 = vpop.f32.mrf.mxu0 }
 0x275   : > { %v5533_v1 = vadd.f32 %v3618_v21, %v3617_v49  ;;  %v5535_v32 = vadd.f32 %v3812_v29, %v3811_v16 }
 0x276   : > { %v3620_v35 = vpop.f32.mrf.mxu1  ;;  %v3814_v38 = vpop.f32.mrf.mxu0 }
 0x278   : > { %v3621_v41 = vpop.f32.mrf.mxu1  ;;  %v3815_v31 = vpop.f32.mrf.mxu0 }
 0x279   : > { %v5539_v37 = vadd.f32 %v3621_v41, %v3620_v35  ;;  %v5541_v51 = vadd.f32 %v3815_v31, %v3814_v38  ;;  %v1374_v41 = vld [vmem:[#allocation2 + $0x19a] sm:$0xff]  ;;  %v1375_v31 = vld [vmem:[#allocation2 + $0x1a2] sm:$0xff] }
 0x27a   : > { %2265 = vmatmul.mubr.bf16.gmra.mxu1 %v5380_v24  ;;  %v3817_v34 = vpop.f32.mrf.mxu0 }
 0x27b   : > { %2272 = vmatprep.mubr.bf16.mxu1 %v1148_v62  ;;  %v1391_v62 = vpack.c.bf16 %v1375_v31, %v1374_v41  ;;  %v1296_v41 = vld [vmem:[#allocation2 + $0x31] sm:$0xff] }
 0x27c   : > { %v3818_v63 = vpop.f32.mrf.mxu0 }
 0x27d   : > { %v5546_v0 = vadd.f32 %v3818_v63, %v3817_v34  ;;  %4312 = vmatmul.mubr.bf16.gmra.mxu0 %v1391_v62 }
 0x27e   : > { %v3623_v48 = vpop.f32.mrf.mxu1  ;;  %v3820_v7 = vpop.f32.mrf.mxu0 }
 0x280   : > { %v3624_v58 = vpop.f32.mrf.mxu1  ;;  %v3821_v6 = vpop.f32.mrf.mxu0 }
 0x281   : > { %v5548_v14 = vadd.f32 %v3624_v58, %v3623_v48  ;;  %v5550_v49 = vadd.f32 %v3821_v6, %v3820_v7 }
 0x282   : > { %v3626_v16 = vpop.f32.mrf.mxu1  ;;  %2273 = vmatmul.mubr.bf16.gmra.mxu1 %v5390_v45  ;;  %v3823_v21 = vpop.f32.mrf.mxu0 }
 0x283   : > { %4580 = vmatprep.mubr.msk.bf16.mxu1 %vm5145_vm4, %v5433_v42  ;;  %v4582_v42 = vpack.c.bf16 %v810_v17, %v809_v9 }
 0x284   : > { %v3627_v24 = vpop.f32.mrf.mxu1  ;;  %v3824_v28 = vpop.f32.mrf.mxu0 }
 0x285   : > { %v5556_v29 = vadd.f32 %v3627_v24, %v3626_v16  ;;  %v5558_v35 = vadd.f32 %v3824_v28, %v3823_v21  ;;  %v1297_v28 = vld [vmem:[#allocation2 + $0x39] sm:$0xff] }
 0x286   : > { %v3826_v38 = vpop.f32.mrf.mxu0  ;;  %v1328_v9 = vpack.c.bf16 %v1297_v28, %v1296_v41 }
 0x288   : > { %v3827_v34 = vpop.f32.mrf.mxu0 }
 0x289   : > { %v5560_v63 = vadd.f32 %v3827_v34, %v3826_v38 }
 0x28a   : > { %v3629_v45 = vpop.f32.mrf.mxu1  ;;  %2281 = vmatmul.mubr.bf16.gmra.mxu1 %v5405_v10  ;;  %v3829_v48 = vpop.f32.mrf.mxu0 }
 0x28b   : > { %4583 = vmatprep.mubr.msk.bf16.mxu1 %vm5145_vm4, %v4582_v42 }
 0x28c   : > { %v3630_v7 = vpop.f32.mrf.mxu1  ;;  %v3830_v58 = vpop.f32.mrf.mxu0 }
 0x28d   : > { %v5569_v6 = vadd.f32 %v3630_v7, %v3629_v45  ;;  %v5571_v16 = vadd.f32 %v3830_v58, %v3829_v48  ;;  %v1299_v45 = vld [vmem:[#allocation2 + $0x51] sm:$0xff]  ;;  %v4516_v48 = vld [vmem:[#allocation9 + $0x38] sm:$0xff]  }
 0x28e   : > { %v3632_v21 = vpop.f32.mrf.mxu1  ;;  %v3832_v24 = vpop.f32.mrf.mxu0  ;;  %v1298_v58 = vld [vmem:[#allocation2 + $0x49] sm:$0xff] }
 0x28f   : > { %6047 = vst [vmem:[#allocation18_spill] sm:$0xff] %v5569_v6  ;;  %v4517_v6 = vld [vmem:[#allocation9 + $0x70] sm:$0xff]   ;;  %v1329_v28 = vpack.c.bf16 %v1299_v45, %v1298_v58  ;;  %v4521_v58 = vld [vmem:[#allocation9 + $0x60] sm:$0xff]  }
 0x290   : > { %v3633_v38 = vpop.f32.mrf.mxu1  ;;  %v3833_v10 = vpop.f32.mrf.mxu0 }
 0x291   : > { %v5573_v31 = vadd.f32 %v3633_v38, %v3632_v21  ;;  %v5575_v3 = vadd.f32 %v3833_v10, %v3832_v24  ;;  %v4518_v10 = vld [vmem:[#allocation9 + $0x30] sm:$0xff]  }
 0x292   : > { %2289 = vmatmul.mubr.bf16.gmra.mxu1 %v5428_v50  ;;  %v3835_v36 = vpop.f32.mrf.mxu0 }
 0x293   : > { %6048 = vst [vmem:[#allocation19_spill] sm:$0xff] %v5573_v31  ;;  %2490 = vmatprep.mubr.bf16.mxu1 %v1328_v9 }
 0x294   : > { %v3836_v15 = vpop.f32.mrf.mxu0 }
 0x295   : > { %v5578_v17 = vadd.f32 %v3836_v15, %v3835_v36  ;;  %v4519_v36 = vld [vmem:[#allocation9 + $0x68] sm:$0xff]  }
 0x296   : > { %v3635_v62 = vpop.f32.mrf.mxu1  ;;  %v3838_v34 = vpop.f32.mrf.mxu0 }
 0x298   : > { %v3636_v42 = vpop.f32.mrf.mxu1  ;;  %v3839_v7 = vpop.f32.mrf.mxu0 }
 0x299   : > { %v5580_v21 = vadd.f32 %v3636_v42, %v3635_v62  ;;  %v5582_v24 = vadd.f32 %v3839_v7, %v3838_v34  ;;  %v1301_v42 = vld [vmem:[#allocation2 + $0x69] sm:$0xff]  ;;  %v4520_v34 = vld [vmem:[#allocation9 + $0x28] sm:$0xff]   ;;  %v1300_v7 = vld [vmem:[#allocation2 + $0x61] sm:$0xff] }
 0x29a   : > { %v3638_v38 = vpop.f32.mrf.mxu1  ;;  %v3841_v50 = vpop.f32.mrf.mxu0  ;;  %2491 = vmatmul.mubr.bf16.vlgmr.msra.gmra.mxu1 %v5438_v54 }
 0x29b   : > { %6049 = vst [vmem:[#allocation20_spill] sm:$0xff] %v5580_v21  ;;  %2498 = vmatprep.mubr.bf16.mxu1 %v1329_v28  ;;  %4032 = vmatpush3.bf16.msra.mxu1 %v4516_v48  ;;  %v1330_v48 = vpack.c.bf16 %v1301_v42, %v1300_v7 }
 0x29c   : > { %v3639_v41 = vpop.f32.mrf.mxu1  ;;  %v3842_v9 = vpop.f32.mrf.mxu0  ;;  %4033 = vmatprep.subr.bf16.mxu1 %v4517_v6  ;;  %v4522_v6 = vld [vmem:[#allocation9 + $0x20] sm:$0xff]  }
 0x29d   : > { %v5585_v15 = vadd.f32 %v3639_v41, %v3638_v38  ;;  %v5587_v31 = vadd.f32 %v3842_v9, %v3841_v50 }
 0x29e   : > { %v3844_v62 = vpop.f32.mrf.mxu0 }
 0x29f   : > { %6050 = vst [vmem:[#allocation21_spill] sm:$0xff] %v5585_v15  ;;  %4034 = vmatpush3.bf16.msra.mxu1 %v4518_v10  ;;  %v1303_v15 = vld [vmem:[#allocation2 + $0x81] sm:$0xff] }
 0x2a0   : > { %v3845_v45 = vpop.f32.mrf.mxu0  ;;  %4035 = vmatprep.subr.bf16.mxu1 %v4519_v36 }
 0x2a1   : > { %v5589_v54 = vadd.f32 %v3845_v45, %v3844_v62  ;;  %v1302_v45 = vld [vmem:[#allocation2 + $0x79] sm:$0xff] }
 0x2a2   : > { %v3641_v28 = vpop.f32.mrf.mxu1  ;;  %v3847_v21 = vpop.f32.mrf.mxu0  ;;  %2499 = vmatmul.mubr.bf16.gmra.mxu1 %v5447_v23 }
 0x2a3   : > { %2506 = vmatprep.mubr.bf16.mxu1 %v1330_v48  ;;  %4036 = vmatpush3.bf16.msra.mxu1 %v4520_v34  ;;  %v1331_v34 = vpack.c.bf16 %v1303_v15, %v1302_v45 }
 0x2a4   : > { %v3642_v38 = vpop.f32.mrf.mxu1  ;;  %v3848_v50 = vpop.f32.mrf.mxu0  ;;  %4037 = vmatprep.subr.bf16.mxu1 %v4521_v58  ;;  %v4523_v58 = vld [vmem:[#allocation9 + $0x58] sm:$0xff]  }
 0x2a5   : > { %v5592_v41 = vadd.f32 %v3642_v38, %v3641_v28  ;;  %v5594_v10 = vadd.f32 %v3848_v50, %v3847_v21  ;;  %v4524_v28 = vld [vmem:[#allocation9 + $0x18] sm:$0xff]  }
 0x2a6   : > { %v3644_v9 = vpop.f32.mrf.mxu1  ;;  %v3850_v36 = vpop.f32.mrf.mxu0 }
 0x2a7   : > { %6051 = vst [vmem:[#allocation22_spill] sm:$0xff] %v5592_v41  ;;  %6052 = vst [vmem:[#allocation23_spill] sm:$0xff] %v5594_v10  ;;  %4038 = vmatpush3.bf16.msra.mxu1 %v4522_v6  ;;  %v1305_v41 = vld [vmem:[#allocation2 + $0x99] sm:$0xff] }
 0x2a8   : > { %v3645_v62 = vpop.f32.mrf.mxu1  ;;  %v3851_v42 = vpop.f32.mrf.mxu0  ;;  %4039 = vmatprep.subr.bf16.mxu1 %v4523_v58 }
 0x2a9   : > { %v5596_v7 = vadd.f32 %v3645_v62, %v3644_v9  ;;  %v5598_v23 = vadd.f32 %v3851_v42, %v3850_v36  ;;  %v1304_v62 = vld [vmem:[#allocation2 + $0x91] sm:$0xff] }
 0x2aa   : > { %v3853_v48 = vpop.f32.mrf.mxu0  ;;  %2507 = vmatmul.mubr.bf16.gmra.mxu1 %v5454_v44  ;;  %v1332_v42 = vpack.c.bf16 %v1305_v41, %v1304_v62 }
 0x2ab   : > { %6053 = vst [vmem:[#allocation24_spill] sm:$0xff] %v5596_v7  ;;  %6054 = vst [vmem:[#allocation25_spill] sm:$0xff] %v5598_v23  ;;  %2514 = vmatprep.mubr.bf16.mxu1 %v1331_v34  ;;  %4040 = vmatpush3.bf16.msra.mxu1 %v4524_v28  ;;  %v1307_v7 = vld [vmem:[#allocation2 + $0xb1] sm:$0xff]  ;;  %v1306_v23 = vld [vmem:[#allocation2 + $0xa9] sm:$0xff] }
 0x2ac   : > { %v3854_v21 = vpop.f32.mrf.mxu0 }
 0x2ad   : > { %v5601_v38 = vadd.f32 %v3854_v21, %v3853_v48 }
 0x2ae   : > { %v3647_v50 = vpop.f32.mrf.mxu1  ;;  %v3856_v6 = vpop.f32.mrf.mxu0 }
 0x2af   : > { %6055 = vst [vmem:[#allocation26_spill] sm:$0xff] %v5601_v38 }
 0x2b0   : > { %v3648_v10 = vpop.f32.mrf.mxu1  ;;  %v3857_v9 = vpop.f32.mrf.mxu0 }
 0x2b1   : > { %v5603_v36 = vadd.f32 %v3648_v10, %v3647_v50  ;;  %v5605_v15 = vadd.f32 %v3857_v9, %v3856_v6  ;;  %v1333_v50 = vpack.c.bf16 %v1307_v7, %v1306_v23  ;;  %v4526_v9 = vld [vmem:[#allocation9 + $0x10] sm:$0xff]  }
 0x2b2   : > { %v3650_v44 = vpop.f32.mrf.mxu1  ;;  %v3859_v45 = vpop.f32.mrf.mxu0  ;;  %2515 = vmatmul.mubr.bf16.gmra.mxu1 %v5463_v59  ;;  %v4525_v59 = vld [vmem:[#allocation9 + $0x50] sm:$0xff]  }
 0x2b3   : > { %6056 = vst [vmem:[#allocation27_spill] sm:$0xff] %v5603_v36  ;;  %2522 = vmatprep.mubr.bf16.mxu1 %v1332_v42  ;;  %4041 = vmatprep.subr.bf16.mxu1 %v4525_v59  ;;  %v1308_v23 = vld [vmem:[#allocation2 + $0xc1] sm:$0xff] }
 0x2b4   : > { %v3651_v34 = vpop.f32.mrf.mxu1  ;;  %v3860_v48 = vpop.f32.mrf.mxu0  ;;  %4042 = vmatpush3.bf16.msra.mxu1 %v4526_v9 }
 0x2b5   : > { %v5608_v58 = vadd.f32 %v3651_v34, %v3650_v44  ;;  %v5610_v21 = vadd.f32 %v3860_v48, %v3859_v45 }
 0x2b6   : > { %v3862_v28 = vpop.f32.mrf.mxu0 }
 0x2b7   : > { %6057 = vst [vmem:[#allocation28_spill] sm:$0xff] %v5608_v58  ;;  %v1309_v58 = vld [vmem:[#allocation2 + $0xc9] sm:$0xff] }
 0x2b8   : > { %v3863_v38 = vpop.f32.mrf.mxu0 }
 0x2b9   : > { %v5612_v10 = vadd.f32 %v3863_v38, %v3862_v28 }
 0x2ba   : > { %v3653_v6 = vpop.f32.mrf.mxu1  ;;  %v3865_v41 = vpop.f32.mrf.mxu0  ;;  %2523 = vmatmul.mubr.bf16.gmra.mxu1 %v5472_v47 }
 0x2bb   : > { %6058 = vst [vmem:[#allocation29_spill] sm:$0xff] %v5612_v10  ;;  %2530 = vmatprep.mubr.bf16.mxu1 %v1333_v50  ;;  %v1334_v50 = vpack.c.bf16 %v1309_v58, %v1308_v23 }
 0x2bc   : > { %v3654_v62 = vpop.f32.mrf.mxu1  ;;  %v3866_v42 = vpop.f32.mrf.mxu0 }
 0x2bd   : > { %v5615_v44 = vadd.f32 %v3654_v62, %v3653_v6  ;;  %v5617_v45 = vadd.f32 %v3866_v42, %v3865_v41  ;;  %v1311_v42 = vld [vmem:[#allocation2 + $0xe1] sm:$0xff] }
 0x2be   : > { %v3656_v34 = vpop.f32.mrf.mxu1  ;;  %v3868_v48 = vpop.f32.mrf.mxu0 }
 0x2bf   : > { %6059 = vst [vmem:[#allocation30_spill] sm:$0xff] %v5615_v44  ;;  %6060 = vst [vmem:[#allocation31_spill] sm:$0xff] %v5617_v45  ;;  %v1310_v45 = vld [vmem:[#allocation2 + $0xd9] sm:$0xff] }
 0x2c0   : > { %v3657_v38 = vpop.f32.mrf.mxu1  ;;  %v3869_v7 = vpop.f32.mrf.mxu0 }
 0x2c1   : > { %v5619_v28 = vadd.f32 %v3657_v38, %v3656_v34  ;;  %v5621_v47 = vadd.f32 %v3869_v7, %v3868_v48  ;;  %v1335_v48 = vpack.c.bf16 %v1311_v42, %v1310_v45  ;;  %v4528_v7 = vld [vmem:[#allocation9 + $0x8] sm:$0xff]  }
 0x2c2   : > { %v3871_v36 = vpop.f32.mrf.mxu0  ;;  %2531 = vmatmul.mubr.bf16.gmra.mxu1 %v5479_v25  ;;  %v4527_v25 = vld [vmem:[#allocation9 + $0x48] sm:$0xff]  }
 0x2c3   : > { %6061 = vst [vmem:[#allocation32_spill] sm:$0xff] %v5619_v28  ;;  %2538 = vmatprep.mubr.bf16.mxu1 %v1334_v50  ;;  %4043 = vmatprep.subr.bf16.mxu1 %v4527_v25 }
 0x2c4   : > { %v3872_v6 = vpop.f32.mrf.mxu0  ;;  %4044 = vmatpush3.bf16.msra.mxu1 %v4528_v7 }
 0x2c5   : > { %v5624_v41 = vadd.f32 %v3872_v6, %v3871_v36 }
 0x2c6   : > { %v3659_v59 = vpop.f32.mrf.mxu1  ;;  %v3874_v62 = vpop.f32.mrf.mxu0 }
 0x2c8   : > { %v3660_v44 = vpop.f32.mrf.mxu1  ;;  %v3875_v9 = vpop.f32.mrf.mxu0 }
 0x2c9   : > { %v5626_v10 = vadd.f32 %v3660_v44, %v3659_v59  ;;  %v5628_v34 = vadd.f32 %v3875_v9, %v3874_v62  ;;  %v1313_v44 = vld [vmem:[#allocation2 + $0xf9] sm:$0xff]  ;;  %v1312_v62 = vld [vmem:[#allocation2 + $0xf1] sm:$0xff] }
 0x2ca   : > { %v3662_v38 = vpop.f32.mrf.mxu1  ;;  %v3877_v58 = vpop.f32.mrf.mxu0  ;;  %2539 = vmatmul.mubr.bf16.gmra.mxu1 %v5488_v26  ;;  %v1336_v42 = vpack.c.bf16 %v1313_v44, %v1312_v62 }
 0x2cb   : > { %6062 = vst [vmem:[#allocation33_spill] sm:$0xff] %v5626_v10  ;;  %2546 = vmatprep.mubr.bf16.mxu1 %v1335_v48 }
 0x2cc   : > { %v3663_v36 = vpop.f32.mrf.mxu1  ;;  %v3878_v23 = vpop.f32.mrf.mxu0 }
 0x2cd   : > { %v5631_v50 = vadd.f32 %v3663_v36, %v3662_v38  ;;  %v5633_v6 = vadd.f32 %v3878_v23, %v3877_v58  ;;  %v1315_v23 = vld [vmem:[#allocation2 + $0x111] sm:$0xff] }
 0x2ce   : > { %v3880_v28 = vpop.f32.mrf.mxu0 }
 0x2cf   : > { %6063 = vst [vmem:[#allocation34_spill] sm:$0xff] %v5631_v50  ;;  %6064 = vst [vmem:[#allocation35_spill] sm:$0xff] %v5633_v6  ;;  %v1314_v6 = vld [vmem:[#allocation2 + $0x109] sm:$0xff] }
 0x2d0   : > { %v3881_v59 = vpop.f32.mrf.mxu0 }
 0x2d1   : > { %v5635_v45 = vadd.f32 %v3881_v59, %v3880_v28  ;;  %v1337_v59 = vpack.c.bf16 %v1315_v23, %v1314_v6 }
 0x2d2   : > { %v3665_v9 = vpop.f32.mrf.mxu1  ;;  %2547 = vmatmul.mubr.bf16.gmra.mxu1 %v5495_v43  ;;  %v4529_v43 = vld [vmem:[#allocation9 + $0x40] sm:$0xff]  }
 0x2d3   : > { %v3883_v26 = vpop.f32.mrf.mxu0  ;;  %2554 = vmatprep.mubr.bf16.mxu1 %v1336_v42  ;;  %v4530_v42 = vld [vmem:[#allocation9] sm:$0xff]   ;;  %4045 = vmatprep.subr.bf16.mxu1 %v4529_v43 }
 0x2d4   : > { %v3666_v48 = vpop.f32.mrf.mxu1  ;;  %4046 = vmatpush3.bf16.msra.mxu1 %v4530_v42 }
 0x2d5   : > { %v3884_v10 = vpop.f32.mrf.mxu0  ;;  %v5638_v38 = vadd.f32 %v3666_v48, %v3665_v9 }
 0x2d6   : > { %v5640_v58 = vadd.f32 %v3884_v10, %v3883_v26  ;;  %v3668_v25 = vpop.f32.mrf.mxu1  ;;  %v5650_v10 = vld [vmem:[%s6016_s4] ss:$0 sm:$0xff] }
 0x2d7   : > { %6065 = vst [vmem:[#allocation36_spill] sm:$0xff] %v5638_v38  ;;  %v3886_v36 = vpop.f32.mrf.mxu0  ;;  %v2010_v26 = vadd.f32 %v5445_v18, %v5650_v10  ;;  %v2018_v42 = vadd.f32 %v5457_v40, %v5650_v10 }
 0x2d8   : > { %6066 = vst [vmem:[#allocation37_spill] sm:$0xff] %v5640_v58  ;;  %v3669_v7 = vpop.f32.mrf.mxu1 }
 0x2d9   : > { %v3887_v50 = vpop.f32.mrf.mxu0  ;;  %v5642_v28 = vadd.f32 %v3669_v7, %v3668_v25  ;;  %v1317_v25 = vld [vmem:[#allocation2 + $0x129] sm:$0xff] }
 0x2da   : > { %v5644_v44 = vadd.f32 %v3887_v50, %v3886_v36  ;;  %v3687_v62 = vpop.f32.mrf.mxu1  ;;  %2555 = vmatmul.mubr.bf16.gmra.mxu1 %v5502_v8  ;;  %v1316_v8 = vld [vmem:[#allocation2 + $0x121] sm:$0xff] }
 0x2db   : > { %6067 = vst [vmem:[#allocation38_spill] sm:$0xff] %v5642_v28  ;;  %2562 = vmatprep.mubr.bf16.mxu1 %v1337_v59  ;;  %v1338_v59 = vpack.c.bf16 %v1317_v25, %v1316_v8  ;;  %v2013_v28 = vadd.f32 %v5450_v13, %v5650_v10  ;;  %v3586_v13 = vadd.f32 %v5466_v20, %v5461_v52 }
 0x2dc   : > { %6068 = vst [vmem:[#allocation39_spill] sm:$0xff] %v5644_v44  ;;  %v3688_v9 = vpop.f32.mrf.mxu1 }
 0x2dd   : > { %v3689_v48 = vadd.f32 %v3688_v9, %v3687_v62 }
 0x2de   : > { %v3690_v50 = vpop.f32.mrf.mxu1  ;;  %v3889_v6 = vpop.f32.mrf.mxu0 }
 0x2df   : > { %v2171_v36 = vadd.f32 %v3689_v48, %v2010_v26 }
 0x2e0   : > { %v3691_v23 = vpop.f32.mrf.mxu1  ;;  %v3890_v7 = vpop.f32.mrf.mxu0 }
 0x2e1   : > { %v3692_v44 = vadd.f32 %v3691_v23, %v3690_v50  ;;  %v5656_v38 = vadd.f32 %v3890_v7, %v3889_v6  ;;  %v5659_v58 = vadd.f32 %v5513_v33, %v2171_v36  ;;  %v1319_v6 = vld [vmem:[#allocation2 + $0x141] sm:$0xff] }
 0x2e2   : > { %v3693_v18 = vpop.f32.mrf.mxu1  ;;  %v3892_v62 = vpop.f32.mrf.mxu0  ;;  %2563 = vmatmul.mubr.bf16.gmra.mxu1 %v5509_v30 }
 0x2e3   : > { %v2174_v43 = vadd.f32 %v3692_v44, %v2013_v28  ;;  %2570 = vmatprep.mubr.bf16.mxu1 %v1338_v59  ;;  %v1318_v28 = vld [vmem:[#allocation2 + $0x139] sm:$0xff]  ;;  %v2021_v44 = vadd.f32 %v3586_v13, %v5650_v10 }
 0x2e4   : > { %v3694_v9 = vpop.f32.mrf.mxu1  ;;  %v3893_v26 = vpop.f32.mrf.mxu0  ;;  %v1339_v40 = vpack.c.bf16 %v1319_v6, %v1318_v28  ;;  %v2034_v6 = vadd.f32 %v5482_v22, %v5650_v10 }
 0x2e5   : > { %v3695_v48 = vadd.f32 %v3694_v9, %v3693_v18  ;;  %v5666_v25 = vadd.f32 %v3893_v26, %v3892_v62  ;;  %v5669_v33 = vadd.f32 %v5517_v56, %v2174_v43  ;;  %v2026_v56 = vadd.f32 %v5470_v2, %v5650_v10  ;;  %v1321_v43 = vld [vmem:[#allocation2 + $0x159] sm:$0xff]  ;;  %v1320_v26 = vld [vmem:[#allocation2 + $0x151] sm:$0xff] }
 0x2e6   : > { %v3696_v50 = vpop.f32.mrf.mxu1 }
 0x2e7   : > { %v2179_v36 = vadd.f32 %v3695_v48, %v2018_v42 }
 0x2e8   : > { %v3697_v30 = vpop.f32.mrf.mxu1 }
 0x2e9   : > { %v3698_v8 = vadd.f32 %v3697_v30, %v3696_v50  ;;  %v5673_v23 = vadd.f32 %v5525_v5, %v2179_v36  ;;  %v2029_v5 = vadd.f32 %v5475_v11, %v5650_v10  ;;  %v1273_v30 = vld [vmem:[#allocation2 + $0x158] sm:$0xff] }
 0x2ea   : > { %v3699_v7 = vpop.f32.mrf.mxu1  ;;  %2571 = vmatmul.mubr.bf16.gmra.mxu1 %v5519_v27  ;;  %v1340_v27 = vpack.c.bf16 %v1321_v43, %v1320_v26  ;;  %v1325_v26 = vld [vmem:[#allocation2 + $0x189] sm:$0xff] }
 0x2eb   : > { %v2182_v52 = vadd.f32 %v3698_v8, %v2021_v44  ;;  %2578 = vmatprep.mubr.bf16.mxu1 %v1339_v40  ;;  %v1323_v44 = vld [vmem:[#allocation2 + $0x171] sm:$0xff] }
 0x2ec   : > { %v3700_v20 = vpop.f32.mrf.mxu1 }
 0x2ed   : > { %v3701_v59 = vadd.f32 %v3700_v20, %v3699_v7  ;;  %v5679_v18 = vadd.f32 %v5527_v61, %v2182_v52  ;;  %v1322_v7 = vld [vmem:[#allocation2 + $0x169] sm:$0xff] }
 0x2ee   : > { %v3702_v62 = vpop.f32.mrf.mxu1  ;;  %v1341_v20 = vpack.c.bf16 %v1323_v44, %v1322_v7  ;;  %v2050_v44 = vadd.f32 %v5505_v12, %v5650_v10 }
 0x2ef   : > { %v2187_v42 = vadd.f32 %v3701_v59, %v2026_v56 }
 0x2f0   : > { %v3703_v9 = vpop.f32.mrf.mxu1 }
 0x2f1   : > { %v3704_v13 = vadd.f32 %v3703_v9, %v3702_v62  ;;  %v5684_v48 = vadd.f32 %v5535_v32, %v2187_v42  ;;  %v1292_v32 = vpack.c.bf16 %v1273_v30, %v5537_v39  ;;  %v2042_v62 = vadd.f32 %v5493_v55, %v5650_v10  ;;  %v1275_v42 = vld [vmem:[#allocation2 + $0x170] sm:$0xff]  ;;  %v1326_v30 = vld [vmem:[#allocation2 + $0x199] sm:$0xff] }
 0x2f2   : > { %v3705_v50 = vpop.f32.mrf.mxu1  ;;  %2579 = vmatmul.mubr.bf16.gmra.mxu1 %v5529_v19  ;;  %v2037_v19 = vadd.f32 %v5486_v46, %v5650_v10  ;;  %v1324_v46 = vld [vmem:[#allocation2 + $0x181] sm:$0xff] }
 0x2f3   : > { %v2190_v2 = vadd.f32 %v3704_v13, %v2029_v5  ;;  %2586 = vmatprep.mubr.bf16.mxu1 %v1340_v27  ;;  %v1274_v13 = vld [vmem:[#allocation2 + $0x168] sm:$0xff] }
 0x2f4   : > { %v3706_v61 = vpop.f32.mrf.mxu1  ;;  %v1293_v27 = vpack.c.bf16 %v1275_v42, %v1274_v13  ;;  %v3469_v42 = vld [vmem:[%s4967_s28 + $0x19] sm:$0xff] }
 0x2f5   : > { %v3707_v36 = vadd.f32 %v3706_v61, %v3705_v50  ;;  %v5690_v28 = vadd.f32 %v5541_v51, %v2190_v2  ;;  %v2045_v50 = vadd.f32 %v5498_v57, %v5650_v10  ;;  %v1342_v61 = vpack.c.bf16 %v1325_v26, %v1324_v46 }
 0x2f6   : > { %v3708_v11 = vpop.f32.mrf.mxu1 }
 0x2f7   : > { %v2195_v8 = vadd.f32 %v3707_v36, %v2034_v6 }
 0x2f8   : > { %v3709_v40 = vpop.f32.mrf.mxu1 }
 0x2f9   : > { %v3710_v52 = vadd.f32 %v3709_v40, %v3708_v11  ;;  %v5696_v56 = vadd.f32 %v5546_v0, %v2195_v8  ;;  %v1327_v11 = vld [vmem:[#allocation2 + $0x1a1] sm:$0xff] }
 0x2fa   : > { %v3711_v22 = vpop.f32.mrf.mxu1  ;;  %2587 = vmatmul.mubr.bf16.gmra.mxu1 %v1292_v32  ;;  %v1276_v40 = vld [vmem:[#allocation2 + $0x180] sm:$0xff]  ;;  %v1277_v32 = vld [vmem:[#allocation2 + $0x188] sm:$0xff] }
 0x2fb   : > { %v2198_v59 = vadd.f32 %v3710_v52, %v2037_v19  ;;  %2594 = vmatprep.mubr.bf16.mxu1 %v1341_v20  ;;  %v1343_v19 = vpack.c.bf16 %v1327_v11, %v1326_v30  ;;  %v1294_v20 = vpack.c.bf16 %v1277_v32, %v1276_v40 }
 0x2fc   : > { %v3712_v51 = vpop.f32.mrf.mxu1 }
 0x2fd   : > { %v3713_v43 = vadd.f32 %v3712_v51, %v3711_v22  ;;  %v5701_v39 = vadd.f32 %v5550_v49, %v2198_v59  ;;  %v2053_v22 = vadd.f32 %v5507_v53, %v5650_v10  ;;  %v4532_v53 = vld [vmem:[#allocation2] sm:$0xff] }
 0x2fe   : > { %v3714_v9 = vpop.f32.mrf.mxu1  ;;  %v1295_v13 = vpack.c.bf16 %v4532_v53, %v4532_v53 }
 0x2ff   : > { %v2203_v5 = vadd.f32 %v3713_v43, %v2042_v62 }
 0x300   : > { %v3715_v0 = vpop.f32.mrf.mxu1 }
 0x301   : > { %v3716_v2 = vadd.f32 %v3715_v0, %v3714_v9  ;;  %v5706_v6 = vadd.f32 %v5558_v35, %v2203_v5  ;;  %v2058_v9 = vadd.f32 %v5515_v60, %v5650_v10 }
 0x302   : > { %v3717_v55 = vpop.f32.mrf.mxu1  ;;  %2595 = vmatmul.mubr.bf16.gmra.mxu1 %v1293_v27 }
 0x303   : > { %v2206_v36 = vadd.f32 %v3716_v2, %v2045_v50  ;;  %2602 = vmatprep.mubr.bf16.mxu1 %v1342_v61  ;;  %v2061_v50 = vadd.f32 %v5523_v4, %v5650_v10  ;;  %v2069_v4 = vadd.f32 %v5539_v37, %v5650_v10  ;;  %v2077_v37 = vadd.f32 %v5556_v29, %v5650_v10 }
 0x304   : > { %v3718_v49 = vpop.f32.mrf.mxu1 }
 0x305   : > { %v3719_v8 = vadd.f32 %v3718_v49, %v3717_v55  ;;  %v5711_v57 = vadd.f32 %v5560_v63, %v2206_v36  ;;  %v3470_v63 = vld [vmem:[%s4967_s28 + $0x21] sm:$0xff] }
 0x306   : > { %v3720_v35 = vpop.f32.mrf.mxu1 }
 0x307   : > { %v2211_v7 = vadd.f32 %v3719_v8, %v2050_v44 }
 0x308   : > { %v3721_v52 = vpop.f32.mrf.mxu1 }
 0x309   : > { %v3722_v59 = vadd.f32 %v3721_v52, %v3720_v35  ;;  %v5716_v51 = vadd.f32 %v5571_v16, %v2211_v7  ;;  %v2863_v16 = vpack.c.bf16 %v3470_v63, %v3469_v42  ;;  %v6070_v63 = vld [vmem:[#allocation18_spill] sm:$0xff] }
 0x30a   : > { %v3723_v12 = vpop.f32.mrf.mxu1  ;;  %2603 = vmatmul.mubr.bf16.gmra.mxu1 %v1294_v20 }
 0x30b   : > { %v2214_v62 = vadd.f32 %v3722_v59, %v2053_v22  ;;  %2610 = vmatprep.mubr.bf16.mxu1 %v1343_v19 }
 0x30c   : > { %v3724_v43 = vpop.f32.mrf.mxu1 }
 0x30d   : > { %v3725_v46 = vadd.f32 %v3724_v43, %v3723_v12  ;;  %v5723_v26 = vadd.f32 %v5575_v3, %v2214_v62  ;;  %v2066_v3 = vadd.f32 %v5533_v1, %v5650_v10  ;;  %v2074_v1 = vadd.f32 %v5548_v14, %v5650_v10  ;;  %v6069_v12 = vld [vmem:[#allocation23_spill] sm:$0xff] }
 0x30e   : > { %v3726_v5 = vpop.f32.mrf.mxu1  ;;  %v2082_v14 = vadd.f32 %v6070_v63, %v5650_v10 }
 0x30f   : > { %v2219_v0 = vadd.f32 %v3725_v46, %v2058_v9  ;;  %v6071_v46 = vld [vmem:[#allocation25_spill] sm:$0xff] }
 0x310   : > { %v3727_v27 = vpop.f32.mrf.mxu1 }
 0x311   : > { %v3728_v2 = vadd.f32 %v3727_v27, %v3726_v5  ;;  %v5728_v61 = vadd.f32 %v5578_v17, %v2219_v0  ;;  %v6072_v0 = vld [vmem:[#allocation19_spill] sm:$0xff]  ;;  %v6073_v27 = vld [vmem:[#allocation26_spill] sm:$0xff] }
 0x312   : > { %v3729_v55 = vpop.f32.mrf.mxu1  ;;  %2611 = vmatmul.mubr.bf16.gmra.mxu1 %v1295_v13  ;;  %v2085_v29 = vadd.f32 %v6072_v0, %v5650_v10 }
 0x313   : > { %v2222_v60 = vadd.f32 %v3728_v2, %v2061_v50  ;;  %3046 = vmatprep.mubr.bf16.mxu1 %v2863_v16 }
 0x314   : > { %v3730_v36 = vpop.f32.mrf.mxu1 }
 0x315   : > { %v3731_v49 = vadd.f32 %v3730_v36, %v3729_v55  ;;  %v5733_v30 = vadd.f32 %v5582_v24, %v2222_v60  ;;  %v6074_v36 = vld [vmem:[#allocation20_spill] sm:$0xff] }
 0x316   : > { %v3732_v11 = vpop.f32.mrf.mxu1 }
 0x317   : > { %v2227_v44 = vadd.f32 %v3731_v49, %v2066_v3  ;;  %v2090_v3 = vadd.f32 %v6074_v36, %v5650_v10 }
 0x318   : > { %v3733_v8 = vpop.f32.mrf.mxu1 }
 0x319   : > { %v3734_v17 = vadd.f32 %v3733_v8, %v3732_v11  ;;  %v5738_v40 = vadd.f32 %v5587_v31, %v2227_v44 }
 0x31a   : > { %v3735_v32 = vpop.f32.mrf.mxu1 }
 0x31b   : > { %v2230_v35 = vadd.f32 %v3734_v17, %v2069_v4  ;;  %v6075_v17 = vld [vmem:[#allocation21_spill] sm:$0xff] }
 0x31c   : > { %v3736_v7 = vpop.f32.mrf.mxu1 }
 0x31d   : > { %v3737_v19 = vadd.f32 %v3736_v7, %v3735_v32  ;;  %v5743_v24 = vadd.f32 %v5589_v54, %v2230_v35  ;;  %v2093_v32 = vadd.f32 %v6075_v17, %v5650_v10  ;;  %v6082_v17 = vld [vmem:[#allocation30_spill] sm:$0xff] }
 0x31e   : > { %v3738_v52 = vpop.f32.mrf.mxu1 }
 0x31f   : > { %v2235_v20 = vadd.f32 %v3737_v19, %v2074_v1 }
 0x320   : > { %v3739_v22 = vpop.f32.mrf.mxu1 }
 0x321   : > { %v3740_v59 = vadd.f32 %v3739_v22, %v3738_v52  ;;  %v5748_v31 = vadd.f32 %v6069_v12, %v2235_v20  ;;  %v6076_v20 = vld [vmem:[#allocation22_spill] sm:$0xff] }
 0x322   : > { %v3741_v62 = vpop.f32.mrf.mxu1  ;;  %v2098_v22 = vadd.f32 %v6076_v20, %v5650_v10  ;;  %v6083_v20 = vld [vmem:[#allocation32_spill] sm:$0xff] }
 0x323   : > { %v2238_v43 = vadd.f32 %v3740_v59, %v2077_v37  ;;  %v6077_v59 = vld [vmem:[#allocation29_spill] sm:$0xff] }
 0x324   : > { %v3742_v42 = vpop.f32.mrf.mxu1 }
 0x325   : > { %v3743_v9 = vadd.f32 %v3742_v42, %v3741_v62  ;;  %v5753_v54 = vadd.f32 %v6071_v46, %v2238_v43  ;;  %v6078_v42 = vld [vmem:[#allocation24_spill] sm:$0xff] }
 0x326   : > { %v3744_v5 = vpop.f32.mrf.mxu1  ;;  %v2101_v63 = vadd.f32 %v6078_v42, %v5650_v10  ;;  %v6085_v42 = vld [vmem:[#allocation33_spill] sm:$0xff] }
 0x327   : > { %v2243_v53 = vadd.f32 %v3743_v9, %v2082_v14  ;;  %v6079_v9 = vld [vmem:[#allocation31_spill] sm:$0xff] }
 0x328   : > { %v3745_v13 = vpop.f32.mrf.mxu1 }
 0x329   : > { %v3746_v16 = vadd.f32 %v3745_v13, %v3744_v5  ;;  %v5758_v50 = vadd.f32 %v6073_v27, %v2243_v53  ;;  %v6080_v13 = vld [vmem:[#allocation27_spill] sm:$0xff] }
 0x32a   : > { %v3747_v2 = vpop.f32.mrf.mxu1  ;;  %v2106_v0 = vadd.f32 %v6080_v13, %v5650_v10 }
 0x32b   : > { %v2246_v55 = vadd.f32 %v3746_v16, %v2085_v29 }
 0x32c   : > { %v3748_v60 = vpop.f32.mrf.mxu1 }
 0x32d   : > { %v3749_v49 = vadd.f32 %v3748_v60, %v3747_v2  ;;  %v5763_v11 = vadd.f32 %v5605_v15, %v2246_v55  ;;  %v6081_v60 = vld [vmem:[#allocation28_spill] sm:$0xff] }
 0x32e   : > { %v3750_v44 = vpop.f32.mrf.mxu1  ;;  %v2109_v36 = vadd.f32 %v6081_v60, %v5650_v10 }
 0x32f   : > { %v2251_v8 = vadd.f32 %v3749_v49, %v2090_v3 }
 0x330   : > { %v3751_v4 = vpop.f32.mrf.mxu1 }
 0x331   : > { %v3752_v35 = vadd.f32 %v3751_v4, %v3750_v44  ;;  %v5768_v7 = vadd.f32 %v5610_v21, %v2251_v8 }
 0x332   : > { %v3753_v1 = vpop.f32.mrf.mxu1 }
 0x333   : > { %v2254_v19 = vadd.f32 %v3752_v35, %v2093_v32  ;;  %v2114_v32 = vadd.f32 %v6082_v17, %v5650_v10 }
 0x334   : > { %v3754_v52 = vpop.f32.mrf.mxu1 }
 0x335   : > { %v3755_v37 = vadd.f32 %v3754_v52, %v3753_v1  ;;  %v5773_v15 = vadd.f32 %v6077_v59, %v2254_v19  ;;  %v6084_v59 = vld [vmem:[#allocation35_spill] sm:$0xff] }
 0x336   : > { %v3756_v12 = vpop.f32.mrf.mxu1 }
 0x337   : > { %v2259_v62 = vadd.f32 %v3755_v37, %v2098_v22  ;;  %v2117_v22 = vadd.f32 %v6083_v20, %v5650_v10 }
 0x338   : > { %v3757_v43 = vpop.f32.mrf.mxu1 }
 0x339   : > { %v3758_v14 = vadd.f32 %v3757_v43, %v3756_v12  ;;  %v5778_v21 = vadd.f32 %v6079_v9, %v2259_v62 }
 0x33a   : > { %v3759_v46 = vpop.f32.mrf.mxu1 }
 0x33b   : > { %v2262_v5 = vadd.f32 %v3758_v14, %v2101_v63  ;;  %v2122_v63 = vadd.f32 %v6085_v42, %v5650_v10 }
 0x33c   : > { %v3760_v53 = vpop.f32.mrf.mxu1 }
 0x33d   : > { %v3761_v29 = vadd.f32 %v3760_v53, %v3759_v46  ;;  %v5783_v16 = vadd.f32 %v5621_v47, %v2262_v5  ;;  %v6086_v53 = vld [vmem:[#allocation34_spill] sm:$0xff] }
 0x33e   : > { %v3762_v27 = vpop.f32.mrf.mxu1  ;;  %v2125_v13 = vadd.f32 %v6086_v53, %v5650_v10 }
 0x33f   : > { %v2267_v2 = vadd.f32 %v3761_v29, %v2106_v0  ;;  %v6087_v29 = vld [vmem:[#allocation37_spill] sm:$0xff] }
 0x340   : > { %v3763_v55 = vpop.f32.mrf.mxu1 }
 0x341   : > { %v3764_v3 = vadd.f32 %v3763_v55, %v3762_v27  ;;  %v5788_v49 = vadd.f32 %v5624_v41, %v2267_v2 }
 0x342   : > { %v3765_v44 = vpop.f32.mrf.mxu1 }
 0x343   : > { %v2270_v8 = vadd.f32 %v3764_v3, %v2109_v36  ;;  %v6088_v36 = vld [vmem:[#allocation36_spill] sm:$0xff] }
 0x344   : > { %v3766_v4 = vpop.f32.mrf.mxu1  ;;  %v2130_v3 = vadd.f32 %v6088_v36, %v5650_v10 }
 0x345   : > { %v3767_v35 = vadd.f32 %v3766_v4, %v3765_v44  ;;  %v5793_v47 = vadd.f32 %v5628_v34, %v2270_v8  ;;  %v6089_v8 = vld [vmem:[#allocation39_spill] sm:$0xff] }
 0x346   : > { %v3768_v1 = vpop.f32.mrf.mxu1 }
 0x347   : > { %v2275_v19 = vadd.f32 %v3767_v35, %v2114_v32  ;;  %v4285_v32 = vpop.f32.mrf.mxu0 }
 0x348   : > { %v3769_v52 = vpop.f32.mrf.mxu1 }
 0x349   : > { %v3770_v37 = vadd.f32 %v3769_v52, %v3768_v1  ;;  %v5798_v41 = vadd.f32 %v6084_v59, %v2275_v19  ;;  %v6090_v1 = vld [vmem:[#allocation38_spill] sm:$0xff]  ;;  %v2653_v59 = vpop.f32.mrf.mxu0 }
 0x34a   : > { %v3771_v12 = vpop.f32.mrf.mxu1  ;;  %v2133_v19 = vadd.f32 %v6090_v1, %v5650_v10 }
 0x34b   : > { %v2278_v62 = vadd.f32 %v3770_v37, %v2117_v22 }
 0x34c   : > { %v3772_v43 = vpop.f32.mrf.mxu1 }
 0x34d   : > { %v3773_v14 = vadd.f32 %v3772_v43, %v3771_v12  ;;  %v5803_v34 = vadd.f32 %v5635_v45, %v2278_v62 }
 0x34e   : > { %v3774_v9 = vpop.f32.mrf.mxu1 }
 0x34f   : > { %v2283_v46 = vadd.f32 %v3773_v14, %v2122_v63  ;;  %v4286_v14 = vpop.f32.mrf.mxu0 }
 0x350   : > { %v3775_v5 = vpop.f32.mrf.mxu1 }
 0x351   : > { %v3776_v0 = vadd.f32 %v3775_v5, %v3774_v9  ;;  %v5808_v27 = vadd.f32 %v6087_v29, %v2283_v46  ;;  %v2656_v53 = vpop.f32.mrf.mxu0 }
 0x352   : > { %v3777_v2 = vpop.f32.mrf.mxu1 }
 0x353   : > { %v2286_v55 = vadd.f32 %v3776_v0, %v2125_v13 }
 0x354   : > { %v3778_v60 = vpop.f32.mrf.mxu1 }
 0x355   : > { %v3779_v44 = vadd.f32 %v3778_v60, %v3777_v2  ;;  %v5813_v45 = vadd.f32 %v6089_v8, %v2286_v55  ;;  %v3471_v2 = vld [vmem:[%s4967_s28 + $0x31] sm:$0xff]  ;;  %v3472_v55 = vld [vmem:[%s4967_s28 + $0x39] sm:$0xff] }
 0x356   : > { %v3780_v4 = vpop.f32.mrf.mxu1  ;;  %v2864_v8 = vpack.c.bf16 %v3472_v55, %v3471_v2  ;;  %v3475_v2 = vld [vmem:[%s4967_s28 + $0x61] sm:$0xff]  ;;  %v3476_v55 = vld [vmem:[%s4967_s28 + $0x69] sm:$0xff] }
 0x357   : > { %v2291_v17 = vadd.f32 %v3779_v44, %v2130_v3 }
 0x358   : > { %v3781_v35 = vpop.f32.mrf.mxu1 }
 0x359   : > { %v3782_v52 = vadd.f32 %v3781_v35, %v3780_v4  ;;  %v5818_v20 = vadd.f32 %v5656_v38, %v2291_v17 }
 0x35a   : > { %v3911_v22 = vpop.f32.mrf.mxu1 }
 0x35b   : > { %v2294_v37 = vadd.f32 %v3782_v52, %v2133_v19 }
 0x35c   : > { %v3912_v12 = vpop.f32.mrf.mxu1 }
 0x35d   : > { %v3913_v62 = vadd.f32 %v3912_v12, %v3911_v22  ;;  %v5821_v43 = vadd.f32 %v5666_v25, %v2294_v37  ;;  %v3474_v12 = vld [vmem:[%s4967_s28 + $0x51] sm:$0xff] }
 0x35e   : > { %v3914_v42 = vpop.f32.mrf.mxu1 }
 0x35f   : > { %v2493_v63 = vadd.f32 %v3913_v62, %v5659_v58  ;;  %v4289_v58 = vpop.f32.mrf.mxu0 }
 0x360   : > { %v3915_v9 = vpop.f32.mrf.mxu1 }
 0x361   : > { %v3916_v10 = vadd.f32 %v3915_v9, %v3914_v42  ;;  %v2654_v5 = vadd.f32 %v2653_v59, %v2493_v63  ;;  %v2669_v19 = vpop.f32.mrf.mxu0  ;;  %v3473_v59 = vld [vmem:[%s4967_s28 + $0x49] sm:$0xff] }
 0x362   : > { %v3917_v46 = vpop.f32.mrf.mxu1 }
 0x363   : > { %v2496_v38 = vadd.f32 %v3916_v10, %v5669_v33  ;;  %v2780_v36 = vmax.f32 %v2654_v5, 0.0  ;;  %v4290_v9 = vpop.f32.mrf.mxu0 }
 0x364   : > { %v3918_v13 = vpop.f32.mrf.mxu1 }
 0x365   : > { %v2657_v0 = vadd.f32 %v2656_v53, %v2496_v38  ;;  %v3919_v29 = vadd.f32 %v3918_v13, %v3917_v46 }
 0x366   : > { %v3920_v60 = vpop.f32.mrf.mxu1 }
 0x367   : > { %v2781_v25 = vmax.f32 %v2657_v0, 0.0  ;;  %v2501_v3 = vadd.f32 %v3919_v29, %v5673_v23 }
 0x368   : > { %v3921_v44 = vpop.f32.mrf.mxu1 }
 0x369   : > { %v2847_v4 = vpack.c.bf16 %v2781_v25, %v2780_v36  ;;  %v3922_v17 = vadd.f32 %v3921_v44, %v3920_v60  ;;  %v2662_v33 = vadd.f32 %v4285_v32, %v2501_v3  ;;  %v2865_v32 = vpack.c.bf16 %v3474_v12, %v3473_v59  ;;  %v3478_v59 = vld [vmem:[%s4967_s28 + $0x81] sm:$0xff] }
 0x36a   : > { %v3923_v35 = vpop.f32.mrf.mxu1 }
 0x36b   : > { %v2504_v1 = vadd.f32 %v3922_v17, %v5679_v18  ;;  %3047 = vmatmul.mubr.bf16.vlgmr.msra.gmra.mxu1 %v2847_v4  ;;  %v2782_v23 = vmax.f32 %v2662_v33, 0.0 }
 0x36c   : > { %v3924_v52 = vpop.f32.mrf.mxu1  ;;  %3054 = vmatprep.mubr.bf16.mxu1 %v2864_v8  ;;  %v2866_v8 = vpack.c.bf16 %v3476_v55, %v3475_v2 }
 0x36d   : > { %v2665_v22 = vadd.f32 %v4286_v14, %v2504_v1  ;;  %v3925_v37 = vadd.f32 %v3924_v52, %v3923_v35  ;;  %v2672_v14 = vpop.f32.mrf.mxu0 }
 0x36e   : > { %v3926_v62 = vpop.f32.mrf.mxu1 }
 0x36f   : > { %v2783_v42 = vmax.f32 %v2665_v22, 0.0  ;;  %v2509_v63 = vadd.f32 %v3925_v37, %v5684_v48  ;;  %v4293_v3 = vpop.f32.mrf.mxu0  ;;  %v3477_v37 = vld [vmem:[%s4967_s28 + $0x79] sm:$0xff] }
 0x370   : > { %v3927_v10 = vpop.f32.mrf.mxu1 }
 0x371   : > { %v3928_v46 = vadd.f32 %v3927_v10, %v3926_v62  ;;  %v2848_v18 = vpack.c.bf16 %v2783_v42, %v2782_v23  ;;  %v2670_v38 = vadd.f32 %v2669_v19, %v2509_v63  ;;  %v2685_v1 = vpop.f32.mrf.mxu0 }
 0x372   : > { %v3929_v5 = vpop.f32.mrf.mxu1 }
 0x373   : > { %v2512_v53 = vadd.f32 %v3928_v46, %v5690_v28  ;;  %3055 = vmatmul.mubr.bf16.gmra.mxu1 %v2848_v18  ;;  %v2784_v48 = vmax.f32 %v2670_v38, 0.0  ;;  %v4294_v42 = vpop.f32.mrf.mxu0 }
 0x374   : > { %v3930_v13 = vpop.f32.mrf.mxu1  ;;  %3062 = vmatprep.mubr.bf16.mxu1 %v2865_v32 }
 0x375   : > { %v2673_v0 = vadd.f32 %v2672_v14, %v2512_v53  ;;  %v3931_v29 = vadd.f32 %v3930_v13, %v3929_v5  ;;  %v3479_v14 = vld [vmem:[%s4967_s28 + $0x91] sm:$0xff]  ;;  %v3480_v13 = vld [vmem:[%s4967_s28 + $0x99] sm:$0xff] }
 0x376   : > { %v3932_v60 = vpop.f32.mrf.mxu1 }
 0x377   : > { %v2785_v36 = vmax.f32 %v2673_v0, 0.0  ;;  %v2517_v25 = vadd.f32 %v3931_v29, %v5696_v56 }
 0x378   : > { %v3933_v44 = vpop.f32.mrf.mxu1 }
 0x379   : > { %v3934_v4 = vadd.f32 %v3933_v44, %v3932_v60  ;;  %v2849_v28 = vpack.c.bf16 %v2785_v36, %v2784_v48  ;;  %v2678_v35 = vadd.f32 %v4289_v58, %v2517_v25  ;;  %v2867_v58 = vpack.c.bf16 %v3478_v59, %v3477_v37 }
 0x37a   : > { %v3935_v17 = vpop.f32.mrf.mxu1  ;;  %v2868_v48 = vpack.c.bf16 %v3480_v13, %v3479_v14 }
 0x37b   : > { %v2520_v33 = vadd.f32 %v3934_v4, %v5701_v39  ;;  %3063 = vmatmul.mubr.bf16.gmra.mxu1 %v2849_v28  ;;  %v2786_v56 = vmax.f32 %v2678_v35, 0.0 }
 0x37c   : > { %v3936_v19 = vpop.f32.mrf.mxu1  ;;  %3070 = vmatprep.mubr.bf16.mxu1 %v2866_v8 }
 0x37d   : > { %v2681_v52 = vadd.f32 %v4290_v9, %v2520_v33  ;;  %v3937_v22 = vadd.f32 %v3936_v19, %v3935_v17  ;;  %v2688_v9 = vpop.f32.mrf.mxu0  ;;  %v3481_v33 = vld [vmem:[%s4967_s28 + $0xa9] sm:$0xff] }
 0x37e   : > { %v3938_v12 = vpop.f32.mrf.mxu1 }
 0x37f   : > { %v2787_v62 = vmax.f32 %v2681_v52, 0.0  ;;  %v2525_v23 = vadd.f32 %v3937_v22, %v5706_v6  ;;  %v4297_v55 = vpop.f32.mrf.mxu0 }
 0x380   : > { %v3939_v63 = vpop.f32.mrf.mxu1 }
 0x381   : > { %v3940_v10 = vadd.f32 %v3939_v63, %v3938_v12  ;;  %v2850_v39 = vpack.c.bf16 %v2787_v62, %v2786_v56  ;;  %v2686_v46 = vadd.f32 %v2685_v1, %v2525_v23  ;;  %v2701_v4 = vpop.f32.mrf.mxu0  ;;  %v3482_v1 = vld [vmem:[%s4967_s28 + $0xb1] sm:$0xff] }
 0x382   : > { %v3941_v32 = vpop.f32.mrf.mxu1 }
 0x383   : > { %v2528_v18 = vadd.f32 %v3940_v10, %v5711_v57  ;;  %3071 = vmatmul.mubr.bf16.gmra.mxu1 %v2850_v39  ;;  %v2788_v6 = vmax.f32 %v2686_v46, 0.0  ;;  %v4298_v37 = vpop.f32.mrf.mxu0  ;;  %v3483_v39 = vld [vmem:[%s4967_s28 + $0xc1] sm:$0xff] }
 0x384   : > { %v3942_v5 = vpop.f32.mrf.mxu1  ;;  %3078 = vmatprep.mubr.bf16.mxu1 %v2867_v58 }
 0x385   : > { %v2689_v38 = vadd.f32 %v2688_v9, %v2528_v18  ;;  %v3943_v53 = vadd.f32 %v3942_v5, %v3941_v32  ;;  %v3484_v32 = vld [vmem:[%s4967_s28 + $0xc9] sm:$0xff] }
 0x386   : > { %v3944_v0 = vpop.f32.mrf.mxu1 }
 0x387   : > { %v2789_v29 = vmax.f32 %v2689_v38, 0.0  ;;  %v2533_v2 = vadd.f32 %v3943_v53, %v5716_v51  ;;  %v2870_v53 = vpack.c.bf16 %v3484_v32, %v3483_v39 }
 0x388   : > { %v3945_v60 = vpop.f32.mrf.mxu1 }
 0x389   : > { %v2851_v36 = vpack.c.bf16 %v2789_v29, %v2788_v6  ;;  %v3946_v57 = vadd.f32 %v3945_v60, %v3944_v0  ;;  %v2694_v44 = vadd.f32 %v4293_v3, %v2533_v2  ;;  %v2869_v3 = vpack.c.bf16 %v3482_v1, %v3481_v33 }
 0x38a   : > { %v3947_v25 = vpop.f32.mrf.mxu1 }
 0x38b   : > { %v2536_v8 = vadd.f32 %v3946_v57, %v5723_v26  ;;  %3079 = vmatmul.mubr.bf16.gmra.mxu1 %v2851_v36  ;;  %v2790_v51 = vmax.f32 %v2694_v44, 0.0  ;;  %v3485_v36 = vld [vmem:[%s4967_s28 + $0xd9] sm:$0xff]  ;;  %v3486_v57 = vld [vmem:[%s4967_s28 + $0xe1] sm:$0xff] }
 0x38c   : > { %v3948_v28 = vpop.f32.mrf.mxu1  ;;  %3086 = vmatprep.mubr.bf16.mxu1 %v2868_v48 }
 0x38d   : > { %v2697_v17 = vadd.f32 %v4294_v42, %v2536_v8  ;;  %v3949_v35 = vadd.f32 %v3948_v28, %v3947_v25  ;;  %v2704_v42 = vpop.f32.mrf.mxu0 }
 0x38e   : > { %v3950_v19 = vpop.f32.mrf.mxu1 }
 0x38f   : > { %v2791_v52 = vmax.f32 %v2697_v17, 0.0  ;;  %v2541_v22 = vadd.f32 %v3949_v35, %v5728_v61  ;;  %v4301_v5 = vpop.f32.mrf.mxu0 }
 0x390   : > { %v3951_v59 = vpop.f32.mrf.mxu1 }
 0x391   : > { %v2852_v12 = vpack.c.bf16 %v2791_v52, %v2790_v51  ;;  %v3952_v26 = vadd.f32 %v3951_v59, %v3950_v19  ;;  %v2702_v62 = vadd.f32 %v2701_v4, %v2541_v22  ;;  %v2717_v29 = vpop.f32.mrf.mxu0  ;;  %v3488_v59 = vld [vmem:[%s4967_s28 + $0xf9] sm:$0xff] }
 0x392   : > { %v3953_v56 = vpop.f32.mrf.mxu1 }
 0x393   : > { %v2544_v23 = vadd.f32 %v3952_v26, %v5733_v30  ;;  %3087 = vmatmul.mubr.bf16.gmra.mxu1 %v2852_v12  ;;  %v2792_v61 = vmax.f32 %v2702_v62, 0.0  ;;  %v4302_v4 = vpop.f32.mrf.mxu0 }
 0x394   : > { %v3954_v63 = vpop.f32.mrf.mxu1  ;;  %3094 = vmatprep.mubr.bf16.mxu1 %v2869_v3 }
 0x395   : > { %v2705_v58 = vadd.f32 %v2704_v42, %v2544_v23  ;;  %v3955_v10 = vadd.f32 %v3954_v63, %v3953_v56  ;;  %v2720_v19 = vpop.f32.mrf.mxu0 }
 0x396   : > { %v3956_v46 = vpop.f32.mrf.mxu1 }
 0x397   : > { %v2793_v18 = vmax.f32 %v2705_v58, 0.0  ;;  %v2549_v9 = vadd.f32 %v3955_v10, %v5738_v40  ;;  %v4305_v56 = vpop.f32.mrf.mxu0 }
 0x398   : > { %v3957_v38 = vpop.f32.mrf.mxu1 }
 0x399   : > { %v2853_v14 = vpack.c.bf16 %v2793_v18, %v2792_v61  ;;  %v3958_v30 = vadd.f32 %v3957_v38, %v3956_v46  ;;  %v2710_v0 = vadd.f32 %v4297_v55, %v2549_v9  ;;  %v2871_v55 = vpack.c.bf16 %v3486_v57, %v3485_v36  ;;  %v2733_v39 = vpop.f32.mrf.mxu0  ;;  %v3489_v18 = vld [vmem:[%s4967_s28 + $0x109] sm:$0xff]  ;;  %v3490_v9 = vld [vmem:[%s4967_s28 + $0x111] sm:$0xff] }
 0x39a   : > { %v3959_v13 = vpop.f32.mrf.mxu1 }
 0x39b   : > { %v2552_v6 = vadd.f32 %v3958_v30, %v5743_v24  ;;  %3095 = vmatmul.mubr.bf16.gmra.mxu1 %v2853_v14  ;;  %v2794_v40 = vmax.f32 %v2710_v0, 0.0  ;;  %v4306_v30 = vpop.f32.mrf.mxu0 }
 0x39c   : > { %v3960_v2 = vpop.f32.mrf.mxu1  ;;  %3102 = vmatprep.mubr.bf16.mxu1 %v2870_v53 }
 0x39d   : > { %v2713_v60 = vadd.f32 %v4298_v37, %v2552_v6  ;;  %v3961_v48 = vadd.f32 %v3960_v2, %v3959_v13  ;;  %v3487_v37 = vld [vmem:[%s4967_s28 + $0xf1] sm:$0xff] }
 0x39e   : > { %v3962_v25 = vpop.f32.mrf.mxu1  ;;  %v2872_v23 = vpack.c.bf16 %v3488_v59, %v3487_v37  ;;  %v3493_v37 = vld [vmem:[%s4967_s28 + $0x139] sm:$0xff]  ;;  %v3494_v59 = vld [vmem:[%s4967_s28 + $0x141] sm:$0xff] }
 0x39f   : > { %v2795_v44 = vmax.f32 %v2713_v60, 0.0  ;;  %v2557_v8 = vadd.f32 %v3961_v48, %v5748_v31  ;;  %v2736_v60 = vpop.f32.mrf.mxu0 }
 0x3a0   : > { %v3963_v28 = vpop.f32.mrf.mxu1 }
 0x3a1   : > { %v2854_v17 = vpack.c.bf16 %v2795_v44, %v2794_v40  ;;  %v3964_v24 = vadd.f32 %v3963_v28, %v3962_v25  ;;  %v2718_v33 = vadd.f32 %v2717_v29, %v2557_v8  ;;  %v3491_v25 = vld [vmem:[%s4967_s28 + $0x121] sm:$0xff]  ;;  %v3492_v40 = vld [vmem:[%s4967_s28 + $0x129] sm:$0xff]  ;;  %v4309_v28 = vpop.f32.mrf.mxu0 }
 0x3a2   : > { %v3965_v35 = vpop.f32.mrf.mxu1 }
 0x3a3   : > { %v2560_v1 = vadd.f32 %v3964_v24, %v5753_v54  ;;  %3103 = vmatmul.mubr.bf16.gmra.mxu1 %v2854_v17  ;;  %v2796_v31 = vmax.f32 %v2718_v33, 0.0  ;;  %v2874_v17 = vpack.c.bf16 %v3492_v40, %v3491_v25 }
 0x3a4   : > { %v3966_v51 = vpop.f32.mrf.mxu1  ;;  %3110 = vmatprep.mubr.bf16.mxu1 %v2871_v55 }
 0x3a5   : > { %v2721_v52 = vadd.f32 %v2720_v19, %v2560_v1  ;;  %v3967_v22 = vadd.f32 %v3966_v51, %v3965_v35  ;;  %v2749_v19 = vpop.f32.mrf.mxu0 }
 0x3a6   : > { %v3968_v3 = vpop.f32.mrf.mxu1 }
 0x3a7   : > { %v2797_v12 = vmax.f32 %v2721_v52, 0.0  ;;  %v2565_v26 = vadd.f32 %v3967_v22, %v5758_v50 }
 0x3a8   : > { %v3969_v62 = vpop.f32.mrf.mxu1 }
 0x3a9   : > { %v2855_v42 = vpack.c.bf16 %v2797_v12, %v2796_v31  ;;  %v3970_v54 = vadd.f32 %v3969_v62, %v3968_v3  ;;  %v2726_v58 = vadd.f32 %v4301_v5, %v2565_v26  ;;  %v2873_v5 = vpack.c.bf16 %v3490_v9, %v3489_v18  ;;  %v4310_v26 = vpop.f32.mrf.mxu0 }
 0x3aa   : > { %v3971_v63 = vpop.f32.mrf.mxu1 }
 0x3ab   : > { %v2568_v10 = vadd.f32 %v3970_v54, %v5763_v11  ;;  %3111 = vmatmul.mubr.bf16.gmra.mxu1 %v2855_v42  ;;  %v2798_v50 = vmax.f32 %v2726_v58, 0.0  ;;  %v2752_v58 = vpop.f32.mrf.mxu0 }
 0x3ac   : > { %v3972_v32 = vpop.f32.mrf.mxu1  ;;  %3118 = vmatprep.mubr.bf16.mxu1 %v2872_v23 }
 0x3ad   : > { %v2729_v46 = vadd.f32 %v4302_v4, %v2568_v10  ;;  %v3973_v61 = vadd.f32 %v3972_v32, %v3971_v63 }
 0x3ae   : > { %v3974_v38 = vpop.f32.mrf.mxu1 }
 0x3af   : > { %v2799_v53 = vmax.f32 %v2729_v46, 0.0  ;;  %v2573_v14 = vadd.f32 %v3973_v61, %v5768_v7  ;;  %v3495_v46 = vld [vmem:[%s4967_s28 + $0x151] sm:$0xff]  ;;  %v3496_v61 = vld [vmem:[%s4967_s28 + $0x159] sm:$0xff] }
 0x3b0   : > { %v3975_v13 = vpop.f32.mrf.mxu1 }
 0x3b1   : > { %v2856_v0 = vpack.c.bf16 %v2799_v53, %v2798_v50  ;;  %v3976_v11 = vadd.f32 %v3975_v13, %v3974_v38  ;;  %v2734_v29 = vadd.f32 %v2733_v39, %v2573_v14  ;;  %v4313_v53 = vpop.f32.mrf.mxu0  ;;  %v2876_v14 = vpack.c.bf16 %v3496_v61, %v3495_v46 }
 0x3b2   : > { %v3977_v6 = vpop.f32.mrf.mxu1 }
 0x3b3   : > { %v2576_v2 = vadd.f32 %v3976_v11, %v5773_v15  ;;  %3119 = vmatmul.mubr.bf16.gmra.mxu1 %v2856_v0  ;;  %v2800_v7 = vmax.f32 %v2734_v29, 0.0  ;;  %v2765_v11 = vpop.f32.mrf.mxu0 }
 0x3b4   : > { %v3978_v48 = vpop.f32.mrf.mxu1  ;;  %3126 = vmatprep.mubr.bf16.mxu1 %v2873_v5 }
 0x3b5   : > { %v2737_v36 = vadd.f32 %v2736_v60, %v2576_v2  ;;  %v3979_v57 = vadd.f32 %v3978_v48, %v3977_v6  ;;  %v3497_v60 = vld [vmem:[%s4967_s28 + $0x169] sm:$0xff]  ;;  %v3498_v48 = vld [vmem:[%s4967_s28 + $0x171] sm:$0xff]  ;;  %v4314_v40 = vpop.f32.mrf.mxu0 }
 0x3b6   : > { %v3980_v44 = vpop.f32.mrf.mxu1 }
 0x3b7   : > { %v2801_v8 = vmax.f32 %v2737_v36, 0.0  ;;  %v2581_v4 = vadd.f32 %v3979_v57, %v5778_v21 }
 0x3b8   : > { %v3981_v55 = vpop.f32.mrf.mxu1 }
 0x3b9   : > { %v2857_v24 = vpack.c.bf16 %v2801_v8, %v2800_v7  ;;  %v3982_v15 = vadd.f32 %v3981_v55, %v3980_v44  ;;  %v2742_v33 = vadd.f32 %v4305_v56, %v2581_v4  ;;  %v2875_v56 = vpack.c.bf16 %v3494_v59, %v3493_v37 }
 0x3ba   : > { %v3983_v35 = vpop.f32.mrf.mxu1  ;;  %v2877_v7 = vpack.c.bf16 %v3498_v48, %v3497_v60 }
 0x3bb   : > { %v2584_v1 = vadd.f32 %v3982_v15, %v5783_v16  ;;  %3127 = vmatmul.mubr.bf16.gmra.mxu1 %v2857_v24  ;;  %v2802_v21 = vmax.f32 %v2742_v33, 0.0  ;;  %v3499_v33 = vld [vmem:[%s4967_s28 + $0x181] sm:$0xff] }
 0x3bc   : > { %v3984_v51 = vpop.f32.mrf.mxu1  ;;  %3134 = vmatprep.mubr.bf16.mxu1 %v2874_v17  ;;  %v2768_v17 = vpop.f32.mrf.mxu0 }
 0x3bd   : > { %v2745_v52 = vadd.f32 %v4306_v30, %v2584_v1  ;;  %v3985_v22 = vadd.f32 %v3984_v51, %v3983_v35  ;;  %v3500_v1 = vld [vmem:[%s4967_s28 + $0x189] sm:$0xff]  ;;  %s4690_s28 = scalar_lea.vmem %s5963_s17, 4096 }
 0x3be   : > { %v3986_v3 = vpop.f32.mrf.mxu1  ;;  %v2878_v37 = vpack.c.bf16 %v3500_v1, %v3499_v33  ;;  %p4691_p10 = scmp.ne.s32.totalorder %s5963_s17, %s4690_s28  ;;  %p4698_p6 = scmp.lt.s32.totalorder %s4696_s3, %s4690_s28 }
 0x3bf   : > { %v2803_v31 = vmax.f32 %v2745_v52, 0.0  ;;  %v2589_v12 = vadd.f32 %v3985_v22, %v5788_v49 }
 0x3c0   : > { %v3987_v62 = vpop.f32.mrf.mxu1  ;;  %p4692_p11 = pnand %p4691_p10, %p4935_p0  ;;  %p4699_p9 = por %p4698_p6, %p4697_p7 }
 0x3c1   : > { %v2858_v23 = vpack.c.bf16 %v2803_v31, %v2802_v21  ;;  %v3988_v16 = vadd.f32 %v3987_v62, %v3986_v3  ;;  %v2750_v54 = vadd.f32 %v2749_v19, %v2589_v12 }
 0x3c2   : > { %v3989_v42 = vpop.f32.mrf.mxu1  ;;  %p4693_p2 = pneg %p4692_p11 }
 0x3c3   : > { %v2592_v63 = vadd.f32 %v3988_v16, %v5793_v47  ;;  %3135 = vmatmul.mubr.bf16.gmra.mxu1 %v2858_v23  ;;  %v2804_v49 = vmax.f32 %v2750_v54, 0.0 }
 0x3c4   : > { %v3990_v10 = vpop.f32.mrf.mxu1  ;;  %3142 = vmatprep.mubr.bf16.mxu1 %v2875_v56  ;;  %p4700_p13 = pnand %p4699_p9, %p4693_p2 }
 0x3c5   : > { %v2753_v39 = vadd.f32 %v2752_v58, %v2592_v63  ;;  %v3991_v32 = vadd.f32 %v3990_v10, %v3989_v42 }
 0x3c6   : > { %v3992_v18 = vpop.f32.mrf.mxu1 }
 0x3c7   : > { %v2805_v9 = vmax.f32 %v2753_v39, 0.0  ;;  %v2597_v38 = vadd.f32 %v3991_v32, %v5798_v41 }
 0x3c8   : > { %v3993_v50 = vpop.f32.mrf.mxu1 }
 0x3c9   : > { %v2859_v30 = vpack.c.bf16 %v2805_v9, %v2804_v49  ;;  %v3994_v47 = vadd.f32 %v3993_v50, %v3992_v18  ;;  %v2758_v5 = vadd.f32 %v4309_v28, %v2597_v38 }
 0x3ca   : > { %v3995_v13 = vpop.f32.mrf.mxu1 }
 0x3cb   : > { %v2600_v0 = vadd.f32 %v3994_v47, %v5803_v34  ;;  %3143 = vmatmul.mubr.bf16.gmra.mxu1 %v2859_v30  ;;  %v2806_v41 = vmax.f32 %v2758_v5, 0.0 }
 0x3cc   : > { %v3996_v6 = vpop.f32.mrf.mxu1  ;;  %3150 = vmatprep.mubr.bf16.mxu1 %v2876_v14 }
 0x3cd   : > { %v2761_v29 = vadd.f32 %v4310_v26, %v2600_v0  ;;  %v3997_v2 = vadd.f32 %v3996_v6, %v3995_v13 }
 0x3ce   : > { %v3998_v36 = vpop.f32.mrf.mxu1 }
 0x3cf   : > { %v2807_v57 = vmax.f32 %v2761_v29, 0.0  ;;  %v2605_v25 = vadd.f32 %v3997_v2, %v5808_v27 }
 0x3d0   : > { %v3999_v44 = vpop.f32.mrf.mxu1 }
 0x3d1   : > { %v2860_v8 = vpack.c.bf16 %v2807_v57, %v2806_v41  ;;  %v4000_v34 = vadd.f32 %v3999_v44, %v3998_v36  ;;  %v2766_v28 = vadd.f32 %v2765_v11, %v2605_v25 }
 0x3d2   : > { %v4001_v4 = vpop.f32.mrf.mxu1 }
 0x3d3   : > { %v2608_v55 = vadd.f32 %v4000_v34, %v5813_v45  ;;  %3151 = vmatmul.mubr.bf16.gmra.mxu1 %v2860_v8  ;;  %v2808_v27 = vmax.f32 %v2766_v28, 0.0 }
 0x3d4   : > { %v4002_v24 = vpop.f32.mrf.mxu1  ;;  %3158 = vmatprep.mubr.bf16.mxu1 %v2877_v7 }
 0x3d5   : > { %v2769_v15 = vadd.f32 %v2768_v17, %v2608_v55  ;;  %v4003_v35 = vadd.f32 %v4002_v24, %v4001_v4 }
 0x3d6   : > { %v4004_v19 = vpop.f32.mrf.mxu1 }
 0x3d7   : > { %v2809_v51 = vmax.f32 %v2769_v15, 0.0  ;;  %v2613_v52 = vadd.f32 %v4003_v35, %v5818_v20  ;;  %v5888_v20 = vld [vmem:[%s6018_s6] ss:$0 sm:$0xff] }
 0x3d8   : > { %v4005_v22 = vpop.f32.mrf.mxu1 }
 0x3d9   : > { %v2861_v59 = vpack.c.bf16 %v2809_v51, %v2808_v27  ;;  %v4006_v3 = vadd.f32 %v4005_v22, %v4004_v19  ;;  %v2774_v21 = vadd.f32 %v4313_v53, %v2613_v52 }
 0x3db   : > { %v2616_v45 = vadd.f32 %v4006_v3, %v5821_v43  ;;  %3159 = vmatmul.mubr.bf16.gmra.mxu1 %v2861_v59  ;;  %v2810_v12 = vmax.f32 %v2774_v21, 0.0 }
 0x3dc   : > { %3166 = vmatprep.mubr.bf16.mxu1 %v2878_v37 }
 0x3dd   : > { %v2777_v31 = vadd.f32 %v4314_v40, %v2616_v45 }
 0x3df   : > { %v2811_v26 = vmax.f32 %v2777_v31, 0.0 }
 0x3e1   : > { %v2862_v62 = vpack.c.bf16 %v2811_v26, %v2810_v12 }
 0x3e3   : > { %3167 = vmatmul.mubr.bf16.gmra.mxu1 %v2862_v62 }
 0x42b   : > { %v4047_v56 = vpop.f32.mrf.mxu1 }
 0x42d   : > { %v4048_v23 = vpop.f32.mrf.mxu1 }
 0x42e   : > { %v4049_v16 = vadd.f32 %v4048_v23, %v4047_v56 }
 0x42f   : > { %v4050_v42 = vpop.f32.mrf.mxu1 }
 0x430   : > { %v3049_v54 = vadd.f32 %v4049_v16, %v5888_v20 }
 0x431   : > { %v4051_v43 = vpop.f32.mrf.mxu1 }
 0x432   : > { %v3175_v63 = vmax.f32 %v3049_v54, 0.0  ;;  %v4052_v58 = vadd.f32 %v4051_v43, %v4050_v42 }
 0x433   : > { %v4053_v10 = vpop.f32.mrf.mxu1 }
 0x434   : > { %3207 = vst [vmem:[%s5892_s21] sm:$0xff] %v3175_v63  ;;  %v3052_v39 = vadd.f32 %v4052_v58, %v5888_v20 }
 0x435   : > { %v4054_v32 = vpop.f32.mrf.mxu1 }
 0x436   : > { %v3176_v46 = vmax.f32 %v3052_v39, 0.0  ;;  %v4055_v61 = vadd.f32 %v4054_v32, %v4053_v10 }
 0x437   : > { %v4056_v18 = vpop.f32.mrf.mxu1 }
 0x438   : > { %3208 = vst [vmem:[%s5892_s21 + $0x8] sm:$0xff] %v3176_v46  ;;  %v3057_v49 = vadd.f32 %v4055_v61, %v5888_v20 }
 0x439   : > { %v4057_v9 = vpop.f32.mrf.mxu1 }
 0x43a   : > { %v3177_v38 = vmax.f32 %v3057_v49, 0.0  ;;  %v4058_v50 = vadd.f32 %v4057_v9, %v4056_v18 }
 0x43b   : > { %v4059_v53 = vpop.f32.mrf.mxu1 }
 0x43c   : > { %3209 = vst [vmem:[%s5892_s21 + $0x10] sm:$0xff] %v3177_v38  ;;  %v3060_v14 = vadd.f32 %v4058_v50, %v5888_v20 }
 0x43d   : > { %v4060_v30 = vpop.f32.mrf.mxu1 }
 0x43e   : > { %v3178_v47 = vmax.f32 %v3060_v14, 0.0  ;;  %v4061_v13 = vadd.f32 %v4060_v30, %v4059_v53 }
 0x43f   : > { %v4062_v5 = vpop.f32.mrf.mxu1 }
 0x440   : > { %3210 = vst [vmem:[%s5892_s21 + $0x18] sm:$0xff] %v3178_v47  ;;  %v3065_v0 = vadd.f32 %v4061_v13, %v5888_v20 }
 0x441   : > { %v4063_v11 = vpop.f32.mrf.mxu1 }
 0x442   : > { %v3179_v6 = vmax.f32 %v3065_v0, 0.0  ;;  %v4064_v29 = vadd.f32 %v4063_v11, %v4062_v5 }
 0x443   : > { %v4065_v2 = vpop.f32.mrf.mxu1 }
 0x444   : > { %3211 = vst [vmem:[%s5892_s21 + $0x20] sm:$0xff] %v3179_v6  ;;  %v3068_v60 = vadd.f32 %v4064_v29, %v5888_v20 }
 0x445   : > { %v4066_v48 = vpop.f32.mrf.mxu1 }
 0x446   : > { %v3180_v36 = vmax.f32 %v3068_v60, 0.0  ;;  %v4067_v41 = vadd.f32 %v4066_v48, %v4065_v2 }
 0x447   : > { %v4068_v57 = vpop.f32.mrf.mxu1 }
 0x448   : > { %3212 = vst [vmem:[%s5892_s21 + $0x28] sm:$0xff] %v3180_v36  ;;  %v3073_v25 = vadd.f32 %v4067_v41, %v5888_v20 }
 0x449   : > { %v4069_v40 = vpop.f32.mrf.mxu1 }
 0x44a   : > { %v3181_v44 = vmax.f32 %v3073_v25, 0.0  ;;  %v4070_v7 = vadd.f32 %v4069_v40, %v4068_v57 }
 0x44b   : > { %v4071_v8 = vpop.f32.mrf.mxu1 }
 0x44c   : > { %3213 = vst [vmem:[%s5892_s21 + $0x30] sm:$0xff] %v3181_v44  ;;  %v3076_v34 = vadd.f32 %v4070_v7, %v5888_v20 }
 0x44d   : > { %v4072_v4 = vpop.f32.mrf.mxu1 }
 0x44e   : > { %v3182_v28 = vmax.f32 %v3076_v34, 0.0  ;;  %v4073_v55 = vadd.f32 %v4072_v4, %v4071_v8 }
 0x44f   : > { %v4074_v17 = vpop.f32.mrf.mxu1 }
 0x450   : > { %3214 = vst [vmem:[%s5892_s21 + $0x38] sm:$0xff] %v3182_v28  ;;  %v3081_v24 = vadd.f32 %v4073_v55, %v5888_v20 }
 0x451   : > { %v4075_v15 = vpop.f32.mrf.mxu1 }
 0x452   : > { %v3183_v35 = vmax.f32 %v3081_v24, 0.0  ;;  %v4076_v33 = vadd.f32 %v4075_v15, %v4074_v17 }
 0x453   : > { %v4077_v1 = vpop.f32.mrf.mxu1 }
 0x454   : > { %3215 = vst [vmem:[%s5892_s21 + $0x40] sm:$0xff] %v3183_v35  ;;  %v3084_v19 = vadd.f32 %v4076_v33, %v5888_v20 }
 0x455   : > { %v4078_v27 = vpop.f32.mrf.mxu1 }
 0x456   : > { %v3184_v51 = vmax.f32 %v3084_v19, 0.0  ;;  %v4079_v52 = vadd.f32 %v4078_v27, %v4077_v1 }
 0x457   : > { %v4080_v22 = vpop.f32.mrf.mxu1 }
 0x458   : > { %3216 = vst [vmem:[%s5892_s21 + $0x48] sm:$0xff] %v3184_v51  ;;  %v3089_v37 = vadd.f32 %v4079_v52, %v5888_v20 }
 0x459   : > { %v4081_v59 = vpop.f32.mrf.mxu1 }
 0x45a   : > { %v3185_v3 = vmax.f32 %v3089_v37, 0.0  ;;  %v4082_v21 = vadd.f32 %v4081_v59, %v4080_v22 }
 0x45b   : > { %v4083_v45 = vpop.f32.mrf.mxu1 }
 0x45c   : > { %3217 = vst [vmem:[%s5892_s21 + $0x50] sm:$0xff] %v3185_v3  ;;  %v3092_v31 = vadd.f32 %v4082_v21, %v5888_v20 }
 0x45d   : > { %v4084_v12 = vpop.f32.mrf.mxu1 }
 0x45e   : > { %v3186_v26 = vmax.f32 %v3092_v31, 0.0  ;;  %v4085_v62 = vadd.f32 %v4084_v12, %v4083_v45 }
 0x45f   : > { %v4086_v56 = vpop.f32.mrf.mxu1 }
 0x460   : > { %3218 = vst [vmem:[%s5892_s21 + $0x58] sm:$0xff] %v3186_v26  ;;  %v3097_v23 = vadd.f32 %v4085_v62, %v5888_v20 }
 0x461   : > { %v4087_v16 = vpop.f32.mrf.mxu1 }
 0x462   : > { %v3187_v42 = vmax.f32 %v3097_v23, 0.0  ;;  %v4088_v54 = vadd.f32 %v4087_v16, %v4086_v56 }
 0x463   : > { %v4089_v43 = vpop.f32.mrf.mxu1 }
 0x464   : > { %3219 = vst [vmem:[%s5892_s21 + $0x60] sm:$0xff] %v3187_v42  ;;  %v3100_v63 = vadd.f32 %v4088_v54, %v5888_v20 }
 0x465   : > { %v4090_v58 = vpop.f32.mrf.mxu1 }
 0x466   : > { %v3188_v10 = vmax.f32 %v3100_v63, 0.0  ;;  %v4091_v39 = vadd.f32 %v4090_v58, %v4089_v43 }
 0x467   : > { %v4092_v32 = vpop.f32.mrf.mxu1 }
 0x468   : > { %3220 = vst [vmem:[%s5892_s21 + $0x68] sm:$0xff] %v3188_v10  ;;  %v3105_v46 = vadd.f32 %v4091_v39, %v5888_v20 }
 0x469   : > { %v4093_v61 = vpop.f32.mrf.mxu1 }
 0x46a   : > { %v3189_v18 = vmax.f32 %v3105_v46, 0.0  ;;  %v4094_v49 = vadd.f32 %v4093_v61, %v4092_v32 }
 0x46b   : > { %v4095_v9 = vpop.f32.mrf.mxu1 }
 0x46c   : > { %3221 = vst [vmem:[%s5892_s21 + $0x70] sm:$0xff] %v3189_v18  ;;  %v3108_v38 = vadd.f32 %v4094_v49, %v5888_v20 }
 0x46d   : > { %v4096_v50 = vpop.f32.mrf.mxu1 }
 0x46e   : > { %v3190_v53 = vmax.f32 %v3108_v38, 0.0  ;;  %v4097_v14 = vadd.f32 %v4096_v50, %v4095_v9 }
 0x46f   : > { %v4098_v30 = vpop.f32.mrf.mxu1 }
 0x470   : > { %3222 = vst [vmem:[%s5892_s21 + $0x78] sm:$0xff] %v3190_v53  ;;  %v3113_v47 = vadd.f32 %v4097_v14, %v5888_v20 }
 0x471   : > { %v4099_v13 = vpop.f32.mrf.mxu1 }
 0x472   : > { %v3191_v5 = vmax.f32 %v3113_v47, 0.0  ;;  %v4100_v0 = vadd.f32 %v4099_v13, %v4098_v30 }
 0x473   : > { %v4101_v11 = vpop.f32.mrf.mxu1 }
 0x474   : > { %3223 = vst [vmem:[%s5892_s21 + $0x80] sm:$0xff] %v3191_v5  ;;  %v3116_v6 = vadd.f32 %v4100_v0, %v5888_v20 }
 0x475   : > { %v4102_v29 = vpop.f32.mrf.mxu1 }
 0x476   : > { %v3192_v2 = vmax.f32 %v3116_v6, 0.0  ;;  %v4103_v60 = vadd.f32 %v4102_v29, %v4101_v11 }
 0x477   : > { %v4104_v48 = vpop.f32.mrf.mxu1 }
 0x478   : > { %3224 = vst [vmem:[%s5892_s21 + $0x88] sm:$0xff] %v3192_v2  ;;  %v3121_v36 = vadd.f32 %v4103_v60, %v5888_v20 }
 0x479   : > { %v4105_v41 = vpop.f32.mrf.mxu1 }
 0x47a   : > { %v3193_v57 = vmax.f32 %v3121_v36, 0.0  ;;  %v4106_v25 = vadd.f32 %v4105_v41, %v4104_v48 }
 0x47b   : > { %v4107_v40 = vpop.f32.mrf.mxu1 }
 0x47c   : > { %3225 = vst [vmem:[%s5892_s21 + $0x90] sm:$0xff] %v3193_v57  ;;  %v3124_v44 = vadd.f32 %v4106_v25, %v5888_v20 }
 0x47d   : > { %v4108_v7 = vpop.f32.mrf.mxu1 }
 0x47e   : > { %v3194_v8 = vmax.f32 %v3124_v44, 0.0  ;;  %v4109_v34 = vadd.f32 %v4108_v7, %v4107_v40 }
 0x47f   : > { %v4110_v4 = vpop.f32.mrf.mxu1 }
 0x480   : > { %3226 = vst [vmem:[%s5892_s21 + $0x98] sm:$0xff] %v3194_v8  ;;  %v3129_v28 = vadd.f32 %v4109_v34, %v5888_v20 }
 0x481   : > { %v4111_v55 = vpop.f32.mrf.mxu1 }
 0x482   : > { %v3195_v17 = vmax.f32 %v3129_v28, 0.0  ;;  %v4112_v24 = vadd.f32 %v4111_v55, %v4110_v4 }
 0x483   : > { %v4113_v15 = vpop.f32.mrf.mxu1 }
 0x484   : > { %3227 = vst [vmem:[%s5892_s21 + $0xa0] sm:$0xff] %v3195_v17  ;;  %v3132_v35 = vadd.f32 %v4112_v24, %v5888_v20 }
 0x485   : > { %v4114_v33 = vpop.f32.mrf.mxu1 }
 0x486   : > { %v3196_v1 = vmax.f32 %v3132_v35, 0.0  ;;  %v4115_v19 = vadd.f32 %v4114_v33, %v4113_v15 }
 0x487   : > { %v4116_v27 = vpop.f32.mrf.mxu1 }
 0x488   : > { %3228 = vst [vmem:[%s5892_s21 + $0xa8] sm:$0xff] %v3196_v1  ;;  %v3137_v51 = vadd.f32 %v4115_v19, %v5888_v20 }
 0x489   : > { %v4117_v52 = vpop.f32.mrf.mxu1 }
 0x48a   : > { %v3197_v22 = vmax.f32 %v3137_v51, 0.0  ;;  %v4118_v37 = vadd.f32 %v4117_v52, %v4116_v27 }
 0x48b   : > { %v4119_v59 = vpop.f32.mrf.mxu1 }
 0x48c   : > { %3229 = vst [vmem:[%s5892_s21 + $0xb0] sm:$0xff] %v3197_v22  ;;  %v3140_v3 = vadd.f32 %v4118_v37, %v5888_v20 }
 0x48d   : > { %v4120_v21 = vpop.f32.mrf.mxu1 }
 0x48e   : > { %v3198_v45 = vmax.f32 %v3140_v3, 0.0  ;;  %v4121_v31 = vadd.f32 %v4120_v21, %v4119_v59 }
 0x48f   : > { %v4122_v12 = vpop.f32.mrf.mxu1 }
 0x490   : > { %3230 = vst [vmem:[%s5892_s21 + $0xb8] sm:$0xff] %v3198_v45  ;;  %v3145_v26 = vadd.f32 %v4121_v31, %v5888_v20 }
 0x491   : > { %v4123_v62 = vpop.f32.mrf.mxu1 }
 0x492   : > { %v3199_v56 = vmax.f32 %v3145_v26, 0.0  ;;  %v4124_v23 = vadd.f32 %v4123_v62, %v4122_v12 }
 0x493   : > { %v4125_v16 = vpop.f32.mrf.mxu1 }
 0x494   : > { %3231 = vst [vmem:[%s5892_s21 + $0xc0] sm:$0xff] %v3199_v56  ;;  %v3148_v42 = vadd.f32 %v4124_v23, %v5888_v20 }
 0x495   : > { %v4126_v54 = vpop.f32.mrf.mxu1 }
 0x496   : > { %v3200_v43 = vmax.f32 %v3148_v42, 0.0  ;;  %v4127_v63 = vadd.f32 %v4126_v54, %v4125_v16 }
 0x497   : > { %v4128_v58 = vpop.f32.mrf.mxu1 }
 0x498   : > { %3232 = vst [vmem:[%s5892_s21 + $0xc8] sm:$0xff] %v3200_v43  ;;  %v3153_v10 = vadd.f32 %v4127_v63, %v5888_v20 }
 0x499   : > { %v4129_v39 = vpop.f32.mrf.mxu1 }
 0x49a   : > { %v3201_v32 = vmax.f32 %v3153_v10, 0.0  ;;  %v4130_v46 = vadd.f32 %v4129_v39, %v4128_v58 }
 0x49b   : > { %v4131_v61 = vpop.f32.mrf.mxu1 }
 0x49c   : > { %3233 = vst [vmem:[%s5892_s21 + $0xd0] sm:$0xff] %v3201_v32  ;;  %v3156_v18 = vadd.f32 %v4130_v46, %v5888_v20 }
 0x49d   : > { %v4132_v49 = vpop.f32.mrf.mxu1 }
 0x49e   : > { %v3202_v9 = vmax.f32 %v3156_v18, 0.0  ;;  %v4133_v38 = vadd.f32 %v4132_v49, %v4131_v61 }
 0x49f   : > { %v4134_v50 = vpop.f32.mrf.mxu1 }
 0x4a0   : > { %3234 = vst [vmem:[%s5892_s21 + $0xd8] sm:$0xff] %v3202_v9  ;;  %v3161_v53 = vadd.f32 %v4133_v38, %v5888_v20 }
 0x4a1   : > { %v4135_v14 = vpop.f32.mrf.mxu1 }
 0x4a2   : > { %v3203_v30 = vmax.f32 %v3161_v53, 0.0  ;;  %v4136_v47 = vadd.f32 %v4135_v14, %v4134_v50 }
 0x4a3   : > { %v4137_v13 = vpop.f32.mrf.mxu1 }
 0x4a4   : > { %3235 = vst [vmem:[%s5892_s21 + $0xe0] sm:$0xff] %v3203_v30  ;;  %v3164_v5 = vadd.f32 %v4136_v47, %v5888_v20 }
 0x4a5   : > { %v4138_v0 = vpop.f32.mrf.mxu1 }
 0x4a6   : > { %v3204_v11 = vmax.f32 %v3164_v5, 0.0  ;;  %v4139_v6 = vadd.f32 %v4138_v0, %v4137_v13 }
 0x4a7   : > { %v4140_v29 = vpop.f32.mrf.mxu1 }
 0x4a8   : > { %3236 = vst [vmem:[%s5892_s21 + $0xe8] sm:$0xff] %v3204_v11  ;;  %v3169_v2 = vadd.f32 %v4139_v6, %v5888_v20 }
 0x4a9   : > { %v4141_v60 = vpop.f32.mrf.mxu1 }
 0x4aa   : > { %v3205_v48 = vmax.f32 %v3169_v2, 0.0  ;;  %v4142_v36 = vadd.f32 %v4141_v60, %v4140_v29 }
 0x4ac   : > { %3237 = vst [vmem:[%s5892_s21 + $0xf0] sm:$0xff] %v3205_v48  ;;  %v3172_v41 = vadd.f32 %v4142_v36, %v5888_v20 }
 0x4ae   : > { %v3206_v57 = vmax.f32 %v3172_v41, 0.0 }
 0x4b0   : > { %3238 = vst [vmem:[%s5892_s21 + $0xf8] sm:$0xff] %v3206_v57 }
 0x4b1   : > { %4703 = shalt.err (!%p4700_p13)
}
 0x4b2   : > { %s4704_s9 = scalar_lea.hbm %s5961_s5, 4096  ;;  %s4708_s22 = scalar_lea.hbm %s6019_s7, 8192 }
 0x4b3   : > { %p4705_p1 = scmp.ne.s32.totalorder %s5961_s5, %s4704_s9  ;;  %p4709_p12 = scmp.lt.s32.totalorder %s5961_s5, %s6019_s7 }
 0x4b4   : > { %p4710_p5 = scmp.lt.s32.totalorder %s4708_s22, %s4704_s9 }
 0x4b5   : > { %p4706_p4 = pnand %p4705_p1, %p4935_p0 }
 0x4b6   : > { %p4711_p3 = por %p4710_p5, %p4709_p12 }
 0x4b7   : > { %p4707_p8 = pneg %p4706_p4 }
 0x4b9   : > { %p4712_p10 = pnand %p4711_p3, %p4707_p8 }
 0x4bb   : > { %4715 = shalt.err (!%p4712_p10)
}
 0x4bc   : > { %s4793_s15 = smov 128   ;;  %s4794_s21 = smov 8  }
 0x4bd   : > { %4348 = dma.vmem_to_hbm [thread:$0]  (%p4935_p0), %s5963_s17, 4096, %s5961_s5, %s3240_s8, %s4793_s15, %s4793_s15, %s4794_s21  }
 0x4be PF: > { %s3270_s30 = sand.u32 1, %s4758_s24   ;;  %p6091_p11 = scmp.ne.s32.totalorder %s6033_s12, 0 }
 0x4bf   : > { %p6092_p2 = scmp.ge.s32.totalorder %s4778_s29, 2  ;;  %s3271_s18 = scalar_lea.sflag [#allocation5], %s3270_s30 }
 0x4c1   : > { %p4365_p7 = pnand %p6092_p2, %p6091_p11 }
 0x4c3   : > { %p4366_p6 = pneg %p4365_p7 }
 0x4c5   : > { %4753 = dma.done.wait (%p4366_p6), %s3271_s18, 4096  }
 0x4c6   : > { %4755 = vsyncadd (%p4366_p6), %s3271_s18, 4294963200  ;;  %s25_s29 = sadd.s32 1, %s4778_s29   ;;  %s6093_s27 = sld [smem:[#allocation16_spill]] }
 0x4c7   : > { %p22_p9 = scmp.ge.s32.totalorder %s25_s29, 4   ;;  %s6094_s28 = sld [smem:[#allocation17_spill]] }
 0x4c8   : > { %s6095_s24 = smov %s4762_s25  ;;  %s6096_s25 = smov %s4766_s26 }
 0x4c9   : > { %s6097_s26 = smov %s4951_s10  ;;  %24 = sbr.rel (!%p22_p9) target bundleno = 12 (0xc), region = 118 }
 0x4ce   :  { %3276 = vsyncpa [#allocation4], 1 }
 0x4cf   :  { %3278 = vsyncpa [#allocation4 + $0x1], 1 }
 0x4d0   :  { %3279 = vsyncpa [#allocation7], 1 }
 0x4d1   :  { %3280 = vsyncpa [#allocation10], 1 }
 0x4d2   :  { %3281 = vsyncpa [#allocation5], 1 }
 0x4d3   :  { %3283 = vsyncpa [#allocation5 + $0x1], 1 }

</bundles_post_ra>
